<compile_context>
chip_gen: v6e
topology: v6e:2x2x1
jax: 0.10.0
libtpu: 0.0.40
codegen_flags: <defaults>
</compile_context>

<pallas_src>
import jax
import jax.numpy as jnp
from jax import lax
from jax.experimental import pallas as pl
from jax.experimental.pallas import tpu as pltpu

LANE = 128      # lane width: channel dims padded to a multiple of this
CHUNK = 8       # recurrence unroll / gate-precompute chunk (= sublane count)


def _rup(n, m):
    return ((n + m - 1) // m) * m


def _make_kernel(L, L_pad, Hp):
    """L: real seq len, L_pad: multiple of CHUNK, Hp: lane-padded hidden."""
    n_chunks = L_pad // CHUNK
    last_rows = L - (n_chunks - 1) * CHUNK          # 1..CHUNK real steps in last chunk
    H2 = 2 * Hp

    def sigmoid_t(v):
        # sigmoid(x) == 0.5*(tanh(x/2)+1): single EUP op on the serial path.
        return 0.5 * (jnp.tanh(0.5 * v) + 1.0)

    def kernel(x_ref, w1_ref, b1_ref, w2_ref, b2_ref,
               wih_ref, bih_ref, whh_ref, bhh_ref,
               wd1_ref, bd1_ref, wd2_ref, bd2_ref,
               out_ref, gates_ref, h2_ref):

        # ---- Conv1d(k=3, 'same') -> ReLU, twice ------------------------------
        # Three accumulating tap matmuls on row-shifted activations; no
        # materialized (L, 3*Cin) im2col buffer / lane concat.
        def conv_relu(h, w_ref_, b_ref_, mask_pad_rows):
            z1 = jnp.zeros((1, h.shape[1]), h.dtype)
            h_prev = jnp.concatenate([z1, h[:-1, :]], axis=0).astype(jnp.bfloat16)
            h_next = jnp.concatenate([h[1:, :], z1], axis=0).astype(jnp.bfloat16)
            hb = h.astype(jnp.bfloat16)
            y = (jnp.dot(h_prev, w_ref_[0], preferred_element_type=jnp.float32)
                 + jnp.dot(hb, w_ref_[1], preferred_element_type=jnp.float32)
                 + jnp.dot(h_next, w_ref_[2], preferred_element_type=jnp.float32)
                 + b_ref_[...])
            y = jnp.maximum(y, 0.0)
            if mask_pad_rows and L_pad > L:
                # rows >= L must be exactly zero so the next conv's zero padding
                # at the t == L-1 boundary matches PyTorch.
                rows = lax.broadcasted_iota(jnp.int32, y.shape, 0)
                y = jnp.where(rows < L, y, 0.0)
            return y

        x = x_ref[...]                                           # (L_pad, C_in) f32
        h1 = conv_relu(x, w1_ref, b1_ref, mask_pad_rows=True)    # (L_pad, C1p)
        h2 = conv_relu(h1, w2_ref, b2_ref, mask_pad_rows=False)  # (L_pad, C2p)
        h2_ref[...] = h2.astype(jnp.bfloat16)

        # ---- GRU input-side gate precompute: one fused matmul per chunk ------
        def gate_chunk(base):
            h2c = h2_ref[pl.ds(base, CHUNK), :]                  # (CHUNK, C2p) bf16
            g = (jnp.dot(h2c, wih_ref[...], preferred_element_type=jnp.float32)
                 + bih_ref[...])                                 # (CHUNK, 3Hp) f32
            gates_ref[pl.ds(base, CHUNK), :] = g                 # lane-dense store

        gate_chunk(0)

        # ---- GRU recurrence: one fused (1,Hp)@(Hp,3Hp) matmul per step -------
        def gru_step(h, gx_rz, gx_n):
            gh = (jnp.dot(h, whh_ref[...], preferred_element_type=jnp.float32)
                  + bhh_ref[...])                                # (1, 3Hp)
            rz = sigmoid_t(gx_rz + gh[:, :H2])                   # r|z fused sigmoid
            r = rz[:, :Hp]
            z = rz[:, Hp:]
            n = jnp.tanh(gx_n + r * gh[:, H2:])
            return (1.0 - z) * n + z * h

        def consume(gx, h, n_steps):
            gx_rz = gx[:, :H2]
            gx_n = gx[:, H2:]
            for j in range(n_steps):                             # statically unrolled
                h = gru_step(h, gx_rz[j:j + 1, :], gx_n[j:j + 1, :])
            return h

        def body(gi, h):
            base = pl.multiple_of(gi * CHUNK, CHUNK)
            gx = gates_ref[pl.ds(base, CHUNK), :]                # gates for chunk gi
            # Software pipeline: issue chunk gi+1's gate matmul now; it has no
            # dependence on the serial steps below, so it overlaps the
            # latency-bound recurrence on the otherwise idle MXU.
            gate_chunk(pl.multiple_of((gi + 1) * CHUNK, CHUNK))
            return consume(gx, h, CHUNK)

        h = lax.fori_loop(0, n_chunks - 1, body, jnp.zeros((1, Hp), jnp.float32))
        # Last chunk: only the first `last_rows` steps are real; trailing padded
        # rows of the gates scratch are simply never consumed.
        gx_last = gates_ref[pl.ds((n_chunks - 1) * CHUNK, CHUNK), :]
        h = consume(gx_last, h, last_rows)

        # ---- Dense head (Dropout(0.01) is an eval-mode identity) -------------
        d1 = jnp.dot(h, wd1_ref[...], preferred_element_type=jnp.float32) + bd1_ref[...]
        d2 = jnp.dot(d1, wd2_ref[...], preferred_element_type=jnp.float32) + bd2_ref[...]
        out_ref[...] = d2                                        # (1, Op) lane-dense

    return kernel


def conv1d_rnn_forward(x, kp, out_channel):
    """x: (L, C_in) f32, kp: prepared (padded) params -> (out_channel,) f32."""
    L = x.shape[0]
    Hp = kp["whh"].shape[0]
    C2p = kp["wih"].shape[0]
    Op = kp["bd2"].shape[1]
    L_pad = _rup(L, CHUNK)
    x_pad = jnp.pad(x, ((0, L_pad - L), (0, 0)))     # pad time dim up front

    args = (x_pad, kp["w1"], kp["b1"], kp["w2"], kp["b2"],
            kp["wih"], kp["bih"], kp["whh"], kp["bhh"],
            kp["wd1"], kp["bd1"], kp["wd2"], kp["bd2"])

    # VMEM budget: actual resident footprint + margin, capped at ~80% of the
    # physical capacity (64 MiB on v7x, 128 MiB on v5e/v6e).
    resident = sum(int(a.size) * a.dtype.itemsize for a in args)
    resident += L_pad * 3 * Hp * 4                   # gates scratch (f32)
    resident += L_pad * C2p * 2                      # h2 scratch (bf16)
    resident += 4 * L_pad * C2p * 4                  # conv-phase f32 activations
    try:
        vmem_cap = int(pltpu.get_tpu_info().vmem_capacity_bytes)
    except Exception:
        vmem_cap = 64 << 20
    vmem_limit = int(min(int(0.8 * vmem_cap), max(2 * resident + (4 << 20), 16 << 20)))
    # TODO(synk): when 2*resident exceeds ~0.8*capacity (long L on v7x), switch
    #   to the L-streamed variant (chunked gate tiles via make_async_copy).

    out = pl.pallas_call(
        _make_kernel(L, L_pad, Hp),
        out_shape=jax.ShapeDtypeStruct((1, Op), jnp.float32),
        in_specs=[pl.BlockSpec(memory_space=pltpu.MemorySpace.VMEM) for _ in args],
        out_specs=pl.BlockSpec(memory_space=pltpu.MemorySpace.VMEM),
        scratch_shapes=[pltpu.VMEM((L_pad, 3 * Hp), jnp.float32),   # gates
                        pltpu.VMEM((L_pad, C2p), jnp.bfloat16)],    # conv2 output
        compiler_params=pltpu.CompilerParams(vmem_limit_bytes=vmem_limit),
    )(*args)
    return out[0, :out_channel]


def init_params(key, in_channel, out_channel):
    """PyTorch-default-style uniform init, in PyTorch layouts (f32 masters)."""
    C, C1, C2, H = in_channel, 2 * in_channel, 4 * in_channel, 8 * in_channel
    ks = jax.random.split(key, 12)

    def u(k, shape, fan_in):
        b = 1.0 / (fan_in ** 0.5)
        return jax.random.uniform(k, shape, jnp.float32, -b, b)

    return {
        "conv1_w": u(ks[0], (C1, C, 3), C * 3),   "conv1_b": u(ks[1], (C1,), C * 3),
        "conv2_w": u(ks[2], (C2, C1, 3), C1 * 3), "conv2_b": u(ks[3], (C2,), C1 * 3),
        "gru_wih": u(ks[4], (3 * H, C2), H),      "gru_whh": u(ks[5], (3 * H, H), H),
        "gru_bih": u(ks[6], (3 * H,), H),         "gru_bhh": u(ks[7], (3 * H,), H),
        "dense1_w": u(ks[8], (C2, H), H),         "dense1_b": u(ks[9], (C2,), H),
        "dense2_w": u(ks[10], (out_channel, C2), C2),
        "dense2_b": u(ks[11], (out_channel,), C2),
    }


def prepare_params(p, in_channel, out_channel):
    """Pad / transpose PyTorch-layout params into lane-dense kernel layouts."""
    C, C1, C2, H = in_channel, 2 * in_channel, 4 * in_channel, 8 * in_channel
    C1p, C2p = _rup(C1, LANE), _rup(C2, LANE)
    Hp, Op = _rup(H, LANE), _rup(out_channel, LANE)

    def pad2(a, r, c):
        return jnp.pad(a, ((0, r - a.shape[0]), (0, c - a.shape[1])))

    def conv_taps(w, cin_pad, cout_pad):           # (Cout, Cin, 3) -> (3, Cin_p, Cout_p)
        t = jnp.transpose(w, (2, 1, 0))
        return jnp.pad(t, ((0, 0), (0, cin_pad - t.shape[1]), (0, cout_pad - t.shape[2])))

    def fuse_gate_w(w, in_pad):                    # (3H, in) -> (in_pad, 3*Hp), [r|z|n]
        return jnp.concatenate(
            [pad2(w[g * H:(g + 1) * H, :].T, in_pad, Hp) for g in range(3)], axis=1)

    def fuse_gate_b(b):                            # (3H,) -> (1, 3*Hp)
        return jnp.concatenate(
            [pad2(b[g * H:(g + 1) * H].reshape(1, H), 1, Hp) for g in range(3)], axis=1)

    return {
        "w1": conv_taps(p["conv1_w"], C, C1p).astype(jnp.bfloat16),
        "b1": pad2(p["conv1_b"].reshape(1, C1), 1, C1p),
        "w2": conv_taps(p["conv2_w"], C1p, C2p).astype(jnp.bfloat16),
        "b2": pad2(p["conv2_b"].reshape(1, C2), 1, C2p),
        "wih": fuse_gate_w(p["gru_wih"], C2p).astype(jnp.bfloat16),
        "bih": fuse_gate_b(p["gru_bih"]),
        # recurrent weights stay f32: they sit on the serial critical path.
        "whh": fuse_gate_w(p["gru_whh"], Hp),
        "bhh": fuse_gate_b(p["gru_bhh"]),
        "wd1": pad2(p["dense1_w"].T, Hp, C2p),
        "bd1": pad2(p["dense1_b"].reshape(1, C2), 1, C2p),
        "wd2": pad2(p["dense2_w"].T, C2p, Op),
        "bd2": pad2(p["dense2_b"].reshape(1, out_channel), 1, Op),
    }


def reference_forward(x, p):
    """Pure-JAX f32 reference matching the PyTorch forward (eval mode)."""
    hi = lambda a, b: jnp.dot(a, b, precision=lax.Precision.HIGHEST)

    def conv_relu(h, w, b):                        # w: (Cout, Cin, 3), 'same' pad
        hp = jnp.pad(h, ((1, 1), (0, 0)))
        t = jnp.transpose(w, (2, 1, 0))            # (3, Cin, Cout)
        y = hi(hp[:-2], t[0]) + hi(hp[1:-1], t[1]) + hi(hp[2:], t[2]) + b
        return jnp.maximum(y, 0.0)

    h1 = conv_relu(x, p["conv1_w"], p["conv1_b"])
    h2 = conv_relu(h1, p["conv2_w"], p["conv2_b"])
    H = p["gru_whh"].shape[1]
    gx = hi(h2, p["gru_wih"].T) + p["gru_bih"]     # (L, 3H), gate order [r|z|n]

    def step(h, g):
        gh = hi(h, p["gru_whh"].T) + p["gru_bhh"]  # (3H,)
        r = jax.nn.sigmoid(g[:H] + gh[:H])
        z = jax.nn.sigmoid(g[H:2 * H] + gh[H:2 * H])
        n = jnp.tanh(g[2 * H:] + r * gh[2 * H:])
        return (1.0 - z) * n + z * h, None

    hT, _ = lax.scan(step, jnp.zeros((H,), jnp.float32), gx)
    d1 = hi(hT, p["dense1_w"].T) + p["dense1_b"]
    return hi(d1, p["dense2_w"].T) + p["dense2_b"]


if __name__ == "__main__":
    in_channel, out_channel, L = 4, 3, 16          # small but forward-consistent
    key = jax.random.PRNGKey(0)
    pkey, xkey = jax.random.split(key)

    params = init_params(pkey, in_channel, out_channel)
    kparams = prepare_params(params, in_channel, out_channel)
    x = jax.random.normal(xkey, (L, in_channel), jnp.float32)   # (seq_len, C_in)

    y = jax.block_until_ready(conv1d_rnn_forward(x, kparams, out_channel))
    y_ref = reference_forward(x, params)

    assert y.shape == (out_channel,), y.shape
    assert bool(jnp.all(jnp.isfinite(y)))
    # bf16 MXU operands in the convs / gate precompute vs a full-f32 reference;
    # the recurrence itself stays f32, so a modest tolerance suffices.
    assert bool(jnp.allclose(y, y_ref, atol=2e-2, rtol=2e-2)), (y, y_ref)
    print("KERNEL_OK")
</pallas_src>

<mosaic_0001>
module attributes {stable_mosaic.version = 11 : i64} {
  func.func @kernel(%arg0: memref<16x4xf32, #tpu.memory_space<vmem>>, %arg1: memref<3x4x128xbf16, #tpu.memory_space<vmem>>, %arg2: memref<1x128xf32, #tpu.memory_space<vmem>>, %arg3: memref<3x128x128xbf16, #tpu.memory_space<vmem>>, %arg4: memref<1x128xf32, #tpu.memory_space<vmem>>, %arg5: memref<128x384xbf16, #tpu.memory_space<vmem>>, %arg6: memref<1x384xf32, #tpu.memory_space<vmem>>, %arg7: memref<128x384xf32, #tpu.memory_space<vmem>>, %arg8: memref<1x384xf32, #tpu.memory_space<vmem>>, %arg9: memref<128x128xf32, #tpu.memory_space<vmem>>, %arg10: memref<1x128xf32, #tpu.memory_space<vmem>>, %arg11: memref<128x128xf32, #tpu.memory_space<vmem>>, %arg12: memref<1x128xf32, #tpu.memory_space<vmem>>, %arg13: memref<1x128xf32, #tpu.memory_space<vmem>>, %arg14: memref<16x384xf32, #tpu.memory_space<vmem>>, %arg15: memref<16x128xbf16, #tpu.memory_space<vmem>>) attributes {dimension_semantics = [], scalar_prefetch = 0 : i64, scratch_operands = 2 : i64, tpu.core_type = #tpu.core_type<tc>} {
    %c0 = arith.constant 0 : index
    %c0_0 = arith.constant 0 : index
    %0 = vector.load %arg0[%c0, %c0_0] : memref<16x4xf32, #tpu.memory_space<vmem>>, vector<16x4xf32>
    %cst = arith.constant 0.000000e+00 : f32
    %1 = vector.broadcast %cst : f32 to vector<1x4xf32>
    %2 = vector.extract_strided_slice %0 {offsets = [0, 0], sizes = [15, 4], strides = [1, 1]} : vector<16x4xf32> to vector<15x4xf32>
    %3 = tpu.concatenate %1, %2 in 0 : vector<1x4xf32>, vector<15x4xf32> -> vector<16x4xf32>
    %4 = arith.truncf %3 : vector<16x4xf32> to vector<16x4xbf16>
    %5 = vector.extract_strided_slice %0 {offsets = [1, 0], sizes = [15, 4], strides = [1, 1]} : vector<16x4xf32> to vector<15x4xf32>
    %6 = tpu.concatenate %5, %1 in 0 : vector<15x4xf32>, vector<1x4xf32> -> vector<16x4xf32>
    %7 = arith.truncf %6 : vector<16x4xf32> to vector<16x4xbf16>
    %8 = arith.truncf %0 : vector<16x4xf32> to vector<16x4xbf16>
    %c0_1 = arith.constant 0 : index
    %c0_2 = arith.constant 0 : index
    %c0_3 = arith.constant 0 : index
    %9 = vector.load %arg1[%c0_1, %c0_2, %c0_3] : memref<3x4x128xbf16, #tpu.memory_space<vmem>>, vector<1x4x128xbf16>
    %10 = vector.shape_cast %9 : vector<1x4x128xbf16> to vector<4x128xbf16>
    %cst_4 = arith.constant dense<0.000000e+00> : vector<16x128xf32>
    %11 = tpu.matmul %4, %10, %cst_4 {dimension_numbers = #tpu.dot_dimension_numbers<[1], [0], [0], [1], [0, 0, 1, 1], [], []>} : vector<16x4xbf16>, vector<4x128xbf16>, vector<16x128xf32> -> vector<16x128xf32>
    %c1 = arith.constant 1 : index
    %c0_5 = arith.constant 0 : index
    %c0_6 = arith.constant 0 : index
    %12 = vector.load %arg1[%c1, %c0_5, %c0_6] : memref<3x4x128xbf16, #tpu.memory_space<vmem>>, vector<1x4x128xbf16>
    %13 = vector.shape_cast %12 : vector<1x4x128xbf16> to vector<4x128xbf16>
    %cst_7 = arith.constant dense<0.000000e+00> : vector<16x128xf32>
    %14 = tpu.matmul %8, %13, %cst_7 {dimension_numbers = #tpu.dot_dimension_numbers<[1], [0], [0], [1], [0, 0, 1, 1], [], []>} : vector<16x4xbf16>, vector<4x128xbf16>, vector<16x128xf32> -> vector<16x128xf32>
    %15 = arith.addf %11, %14 : vector<16x128xf32>
    %c2 = arith.constant 2 : index
    %c0_8 = arith.constant 0 : index
    %c0_9 = arith.constant 0 : index
    %16 = vector.load %arg1[%c2, %c0_8, %c0_9] : memref<3x4x128xbf16, #tpu.memory_space<vmem>>, vector<1x4x128xbf16>
    %17 = vector.shape_cast %16 : vector<1x4x128xbf16> to vector<4x128xbf16>
    %cst_10 = arith.constant dense<0.000000e+00> : vector<16x128xf32>
    %18 = tpu.matmul %7, %17, %cst_10 {dimension_numbers = #tpu.dot_dimension_numbers<[1], [0], [0], [1], [0, 0, 1, 1], [], []>} : vector<16x4xbf16>, vector<4x128xbf16>, vector<16x128xf32> -> vector<16x128xf32>
    %19 = arith.addf %15, %18 : vector<16x128xf32>
    %c0_11 = arith.constant 0 : index
    %c0_12 = arith.constant 0 : index
    %20 = vector.load %arg2[%c0_11, %c0_12] : memref<1x128xf32, #tpu.memory_space<vmem>>, vector<1x128xf32>
    %21 = vector.broadcast %20 : vector<1x128xf32> to vector<16x128xf32>
    %22 = arith.addf %19, %21 : vector<16x128xf32>
    %cst_13 = arith.constant 0.000000e+00 : f32
    %23 = vector.broadcast %cst_13 : f32 to vector<16x128xf32>
    %24 = arith.maximumf %22, %23 : vector<16x128xf32>
    %cst_14 = arith.constant 0.000000e+00 : f32
    %25 = vector.broadcast %cst_14 : f32 to vector<1x128xf32>
    %26 = vector.extract_strided_slice %24 {offsets = [0, 0], sizes = [15, 128], strides = [1, 1]} : vector<16x128xf32> to vector<15x128xf32>
    %27 = tpu.concatenate %25, %26 in 0 : vector<1x128xf32>, vector<15x128xf32> -> vector<16x128xf32>
    %28 = arith.truncf %27 : vector<16x128xf32> to vector<16x128xbf16>
    %29 = vector.extract_strided_slice %24 {offsets = [1, 0], sizes = [15, 128], strides = [1, 1]} : vector<16x128xf32> to vector<15x128xf32>
    %30 = tpu.concatenate %29, %25 in 0 : vector<15x128xf32>, vector<1x128xf32> -> vector<16x128xf32>
    %31 = arith.truncf %30 : vector<16x128xf32> to vector<16x128xbf16>
    %32 = arith.truncf %24 : vector<16x128xf32> to vector<16x128xbf16>
    %c0_15 = arith.constant 0 : index
    %c0_16 = arith.constant 0 : index
    %c0_17 = arith.constant 0 : index
    %33 = vector.load %arg3[%c0_15, %c0_16, %c0_17] : memref<3x128x128xbf16, #tpu.memory_space<vmem>>, vector<1x128x128xbf16>
    %34 = vector.shape_cast %33 : vector<1x128x128xbf16> to vector<128x128xbf16>
    %cst_18 = arith.constant dense<0.000000e+00> : vector<16x128xf32>
    %35 = tpu.matmul %28, %34, %cst_18 {dimension_numbers = #tpu.dot_dimension_numbers<[1], [0], [0], [1], [0, 0, 1, 1], [], []>} : vector<16x128xbf16>, vector<128x128xbf16>, vector<16x128xf32> -> vector<16x128xf32>
    %c1_19 = arith.constant 1 : index
    %c0_20 = arith.constant 0 : index
    %c0_21 = arith.constant 0 : index
    %36 = vector.load %arg3[%c1_19, %c0_20, %c0_21] : memref<3x128x128xbf16, #tpu.memory_space<vmem>>, vector<1x128x128xbf16>
    %37 = vector.shape_cast %36 : vector<1x128x128xbf16> to vector<128x128xbf16>
    %cst_22 = arith.constant dense<0.000000e+00> : vector<16x128xf32>
    %38 = tpu.matmul %32, %37, %cst_22 {dimension_numbers = #tpu.dot_dimension_numbers<[1], [0], [0], [1], [0, 0, 1, 1], [], []>} : vector<16x128xbf16>, vector<128x128xbf16>, vector<16x128xf32> -> vector<16x128xf32>
    %39 = arith.addf %35, %38 : vector<16x128xf32>
    %c2_23 = arith.constant 2 : index
    %c0_24 = arith.constant 0 : index
    %c0_25 = arith.constant 0 : index
    %40 = vector.load %arg3[%c2_23, %c0_24, %c0_25] : memref<3x128x128xbf16, #tpu.memory_space<vmem>>, vector<1x128x128xbf16>
    %41 = vector.shape_cast %40 : vector<1x128x128xbf16> to vector<128x128xbf16>
    %cst_26 = arith.constant dense<0.000000e+00> : vector<16x128xf32>
    %42 = tpu.matmul %31, %41, %cst_26 {dimension_numbers = #tpu.dot_dimension_numbers<[1], [0], [0], [1], [0, 0, 1, 1], [], []>} : vector<16x128xbf16>, vector<128x128xbf16>, vector<16x128xf32> -> vector<16x128xf32>
    %43 = arith.addf %39, %42 : vector<16x128xf32>
    %c0_27 = arith.constant 0 : index
    %c0_28 = arith.constant 0 : index
    %44 = vector.load %arg4[%c0_27, %c0_28] : memref<1x128xf32, #tpu.memory_space<vmem>>, vector<1x128xf32>
    %45 = vector.broadcast %44 : vector<1x128xf32> to vector<16x128xf32>
    %46 = arith.addf %43, %45 : vector<16x128xf32>
    %cst_29 = arith.constant 0.000000e+00 : f32
    %47 = vector.broadcast %cst_29 : f32 to vector<16x128xf32>
    %48 = arith.maximumf %46, %47 : vector<16x128xf32>
    %49 = arith.truncf %48 : vector<16x128xf32> to vector<16x128xbf16>
    %c0_30 = arith.constant 0 : index
    %c0_31 = arith.constant 0 : index
    %50 = vector.load %arg15[%c0_30, %c0_31] : memref<16x128xbf16, #tpu.memory_space<vmem>>, vector<16x128xbf16>
    tpu.vector_store %arg15[%c0_30, %c0_31], %49 {strides = array<i32>} : memref<16x128xbf16, #tpu.memory_space<vmem>>, vector<16x128xbf16>,
    %c0_32 = arith.constant 0 : index
    %c0_33 = arith.constant 0 : index
    %51 = vector.load %arg15[%c0_32, %c0_33] : memref<16x128xbf16, #tpu.memory_space<vmem>>, vector<8x128xbf16>
    %c0_34 = arith.constant 0 : index
    %c0_35 = arith.constant 0 : index
    %52 = vector.load %arg5[%c0_34, %c0_35] : memref<128x384xbf16, #tpu.memory_space<vmem>>, vector<128x384xbf16>
    %cst_36 = arith.constant dense<0.000000e+00> : vector<8x384xf32>
    %53 = tpu.matmul %51, %52, %cst_36 {dimension_numbers = #tpu.dot_dimension_numbers<[1], [0], [0], [1], [0, 0, 1, 1], [], []>} : vector<8x128xbf16>, vector<128x384xbf16>, vector<8x384xf32> -> vector<8x384xf32>
    %c0_37 = arith.constant 0 : index
    %c0_38 = arith.constant 0 : index
    %54 = vector.load %arg6[%c0_37, %c0_38] : memref<1x384xf32, #tpu.memory_space<vmem>>, vector<1x384xf32>
    %55 = vector.broadcast %54 : vector<1x384xf32> to vector<8x384xf32>
    %56 = arith.addf %53, %55 : vector<8x384xf32>
    %c0_39 = arith.constant 0 : index
    %c0_40 = arith.constant 0 : index
    %57 = vector.load %arg14[%c0_39, %c0_40] : memref<16x384xf32, #tpu.memory_space<vmem>>, vector<8x384xf32>
    tpu.vector_store %arg14[%c0_39, %c0_40], %56 {strides = array<i32>} : memref<16x384xf32, #tpu.memory_space<vmem>>, vector<8x384xf32>,
    %cst_41 = arith.constant 0.000000e+00 : f32
    %58 = vector.broadcast %cst_41 : f32 to vector<1x128xf32>
    %c0_i32 = arith.constant 0 : i32
    %c8_i32 = arith.constant 8 : i32
    %59 = arith.muli %c0_i32, %c8_i32 : i32
    %60 = tpu.assume_multiple %59, 8 : i32
    %61 = arith.index_cast %60 : i32 to index
    %c0_42 = arith.constant 0 : index
    %62 = vector.load %arg14[%61, %c0_42] : memref<16x384xf32, #tpu.memory_space<vmem>>, vector<8x384xf32>
    %c1_i32 = arith.constant 1 : i32
    %63 = arith.addi %c0_i32, %c1_i32 : i32
    %c8_i32_43 = arith.constant 8 : i32
    %64 = arith.muli %63, %c8_i32_43 : i32
    %65 = tpu.assume_multiple %64, 8 : i32
    %66 = arith.index_cast %65 : i32 to index
    %c0_44 = arith.constant 0 : index
    %67 = vector.load %arg15[%66, %c0_44] : memref<16x128xbf16, #tpu.memory_space<vmem>>, vector<8x128xbf16>
    %c0_45 = arith.constant 0 : index
    %c0_46 = arith.constant 0 : index
    %68 = vector.load %arg5[%c0_45, %c0_46] : memref<128x384xbf16, #tpu.memory_space<vmem>>, vector<128x384xbf16>
    %cst_47 = arith.constant dense<0.000000e+00> : vector<8x384xf32>
    %69 = tpu.matmul %67, %68, %cst_47 {dimension_numbers = #tpu.dot_dimension_numbers<[1], [0], [0], [1], [0, 0, 1, 1], [], []>} : vector<8x128xbf16>, vector<128x384xbf16>, vector<8x384xf32> -> vector<8x384xf32>
    %c0_48 = arith.constant 0 : index
    %c0_49 = arith.constant 0 : index
    %70 = vector.load %arg6[%c0_48, %c0_49] : memref<1x384xf32, #tpu.memory_space<vmem>>, vector<1x384xf32>
    %71 = vector.broadcast %70 : vector<1x384xf32> to vector<8x384xf32>
    %72 = arith.addf %69, %71 : vector<8x384xf32>
    %73 = arith.index_cast %65 : i32 to index
    %c0_50 = arith.constant 0 : index
    %74 = vector.load %arg14[%73, %c0_50] : memref<16x384xf32, #tpu.memory_space<vmem>>, vector<8x384xf32>
    tpu.vector_store %arg14[%73, %c0_50], %72 {strides = array<i32>} : memref<16x384xf32, #tpu.memory_space<vmem>>, vector<8x384xf32>,
    %75 = vector.extract_strided_slice %62 {offsets = [0, 0], sizes = [8, 256], strides = [1, 1]} : vector<8x384xf32> to vector<8x256xf32>
    %76 = vector.extract_strided_slice %62 {offsets = [0, 256], sizes = [8, 128], strides = [1, 1]} : vector<8x384xf32> to vector<8x128xf32>
    %77 = vector.extract_strided_slice %75 {offsets = [0, 0], sizes = [1, 256], strides = [1, 1]} : vector<8x256xf32> to vector<1x256xf32>
    %78 = vector.extract_strided_slice %76 {offsets = [0, 0], sizes = [1, 128], strides = [1, 1]} : vector<8x128xf32> to vector<1x128xf32>
    %c0_51 = arith.constant 0 : index
    %c0_52 = arith.constant 0 : index
    %79 = vector.load %arg7[%c0_51, %c0_52] : memref<128x384xf32, #tpu.memory_space<vmem>>, vector<128x384xf32>
    %cst_53 = arith.constant dense<0.000000e+00> : vector<1x384xf32>
    %80 = tpu.matmul %58, %79, %cst_53 {dimension_numbers = #tpu.dot_dimension_numbers<[1], [0], [0], [1], [0, 0, 1, 1], [], []>} : vector<1x128xf32>, vector<128x384xf32>, vector<1x384xf32> -> vector<1x384xf32>
    %c0_54 = arith.constant 0 : index
    %c0_55 = arith.constant 0 : index
    %81 = vector.load %arg8[%c0_54, %c0_55] : memref<1x384xf32, #tpu.memory_space<vmem>>, vector<1x384xf32>
    %82 = arith.addf %80, %81 : vector<1x384xf32>
    %83 = vector.extract_strided_slice %82 {offsets = [0, 0], sizes = [1, 256], strides = [1, 1]} : vector<1x384xf32> to vector<1x256xf32>
    %84 = arith.addf %77, %83 : vector<1x256xf32>
    %cst_56 = arith.constant 5.000000e-01 : f32
    %85 = vector.broadcast %cst_56 : f32 to vector<1x256xf32>
    %86 = arith.mulf %85, %84 : vector<1x256xf32>
    %87 = math.tanh %86 : vector<1x256xf32>
    %cst_57 = arith.constant 1.000000e+00 : f32
    %88 = vector.broadcast %cst_57 : f32 to vector<1x256xf32>
    %89 = arith.addf %87, %88 : vector<1x256xf32>
    %cst_58 = arith.constant 5.000000e-01 : f32
    %90 = vector.broadcast %cst_58 : f32 to vector<1x256xf32>
    %91 = arith.mulf %90, %89 : vector<1x256xf32>
    %92 = vector.extract_strided_slice %91 {offsets = [0, 0], sizes = [1, 128], strides = [1, 1]} : vector<1x256xf32> to vector<1x128xf32>
    %93 = vector.extract_strided_slice %91 {offsets = [0, 128], sizes = [1, 128], strides = [1, 1]} : vector<1x256xf32> to vector<1x128xf32>
    %94 = vector.extract_strided_slice %82 {offsets = [0, 256], sizes = [1, 128], strides = [1, 1]} : vector<1x384xf32> to vector<1x128xf32>
    %95 = arith.mulf %92, %94 : vector<1x128xf32>
    %96 = arith.addf %78, %95 : vector<1x128xf32>
    %97 = math.tanh %96 : vector<1x128xf32>
    %cst_59 = arith.constant 1.000000e+00 : f32
    %98 = vector.broadcast %cst_59 : f32 to vector<1x128xf32>
    %99 = arith.subf %98, %93 : vector<1x128xf32>
    %100 = arith.mulf %99, %97 : vector<1x128xf32>
    %101 = arith.mulf %93, %58 : vector<1x128xf32>
    %102 = arith.addf %100, %101 : vector<1x128xf32>
    %103 = vector.extract_strided_slice %75 {offsets = [1, 0], sizes = [1, 256], strides = [1, 1]} : vector<8x256xf32> to vector<1x256xf32>
    %104 = vector.extract_strided_slice %76 {offsets = [1, 0], sizes = [1, 128], strides = [1, 1]} : vector<8x128xf32> to vector<1x128xf32>
    %c0_60 = arith.constant 0 : index
    %c0_61 = arith.constant 0 : index
    %105 = vector.load %arg7[%c0_60, %c0_61] : memref<128x384xf32, #tpu.memory_space<vmem>>, vector<128x384xf32>
    %cst_62 = arith.constant dense<0.000000e+00> : vector<1x384xf32>
    %106 = tpu.matmul %102, %105, %cst_62 {dimension_numbers = #tpu.dot_dimension_numbers<[1], [0], [0], [1], [0, 0, 1, 1], [], []>} : vector<1x128xf32>, vector<128x384xf32>, vector<1x384xf32> -> vector<1x384xf32>
    %c0_63 = arith.constant 0 : index
    %c0_64 = arith.constant 0 : index
    %107 = vector.load %arg8[%c0_63, %c0_64] : memref<1x384xf32, #tpu.memory_space<vmem>>, vector<1x384xf32>
    %108 = arith.addf %106, %107 : vector<1x384xf32>
    %109 = vector.extract_strided_slice %108 {offsets = [0, 0], sizes = [1, 256], strides = [1, 1]} : vector<1x384xf32> to vector<1x256xf32>
    %110 = arith.addf %103, %109 : vector<1x256xf32>
    %cst_65 = arith.constant 5.000000e-01 : f32
    %111 = vector.broadcast %cst_65 : f32 to vector<1x256xf32>
    %112 = arith.mulf %111, %110 : vector<1x256xf32>
    %113 = math.tanh %112 : vector<1x256xf32>
    %cst_66 = arith.constant 1.000000e+00 : f32
    %114 = vector.broadcast %cst_66 : f32 to vector<1x256xf32>
    %115 = arith.addf %113, %114 : vector<1x256xf32>
    %cst_67 = arith.constant 5.000000e-01 : f32
    %116 = vector.broadcast %cst_67 : f32 to vector<1x256xf32>
    %117 = arith.mulf %116, %115 : vector<1x256xf32>
    %118 = vector.extract_strided_slice %117 {offsets = [0, 0], sizes = [1, 128], strides = [1, 1]} : vector<1x256xf32> to vector<1x128xf32>
    %119 = vector.extract_strided_slice %117 {offsets = [0, 128], sizes = [1, 128], strides = [1, 1]} : vector<1x256xf32> to vector<1x128xf32>
    %120 = vector.extract_strided_slice %108 {offsets = [0, 256], sizes = [1, 128], strides = [1, 1]} : vector<1x384xf32> to vector<1x128xf32>
    %121 = arith.mulf %118, %120 : vector<1x128xf32>
    %122 = arith.addf %104, %121 : vector<1x128xf32>
    %123 = math.tanh %122 : vector<1x128xf32>
    %cst_68 = arith.constant 1.000000e+00 : f32
    %124 = vector.broadcast %cst_68 : f32 to vector<1x128xf32>
    %125 = arith.subf %124, %119 : vector<1x128xf32>
    %126 = arith.mulf %125, %123 : vector<1x128xf32>
    %127 = arith.mulf %119, %102 : vector<1x128xf32>
    %128 = arith.addf %126, %127 : vector<1x128xf32>
    %129 = vector.extract_strided_slice %75 {offsets = [2, 0], sizes = [1, 256], strides = [1, 1]} : vector<8x256xf32> to vector<1x256xf32>
    %130 = vector.extract_strided_slice %76 {offsets = [2, 0], sizes = [1, 128], strides = [1, 1]} : vector<8x128xf32> to vector<1x128xf32>
    %c0_69 = arith.constant 0 : index
    %c0_70 = arith.constant 0 : index
    %131 = vector.load %arg7[%c0_69, %c0_70] : memref<128x384xf32, #tpu.memory_space<vmem>>, vector<128x384xf32>
    %cst_71 = arith.constant dense<0.000000e+00> : vector<1x384xf32>
    %132 = tpu.matmul %128, %131, %cst_71 {dimension_numbers = #tpu.dot_dimension_numbers<[1], [0], [0], [1], [0, 0, 1, 1], [], []>} : vector<1x128xf32>, vector<128x384xf32>, vector<1x384xf32> -> vector<1x384xf32>
    %c0_72 = arith.constant 0 : index
    %c0_73 = arith.constant 0 : index
    %133 = vector.load %arg8[%c0_72, %c0_73] : memref<1x384xf32, #tpu.memory_space<vmem>>, vector<1x384xf32>
    %134 = arith.addf %132, %133 : vector<1x384xf32>
    %135 = vector.extract_strided_slice %134 {offsets = [0, 0], sizes = [1, 256], strides = [1, 1]} : vector<1x384xf32> to vector<1x256xf32>
    %136 = arith.addf %129, %135 : vector<1x256xf32>
    %cst_74 = arith.constant 5.000000e-01 : f32
    %137 = vector.broadcast %cst_74 : f32 to vector<1x256xf32>
    %138 = arith.mulf %137, %136 : vector<1x256xf32>
    %139 = math.tanh %138 : vector<1x256xf32>
    %cst_75 = arith.constant 1.000000e+00 : f32
    %140 = vector.broadcast %cst_75 : f32 to vector<1x256xf32>
    %141 = arith.addf %139, %140 : vector<1x256xf32>
    %cst_76 = arith.constant 5.000000e-01 : f32
    %142 = vector.broadcast %cst_76 : f32 to vector<1x256xf32>
    %143 = arith.mulf %142, %141 : vector<1x256xf32>
    %144 = vector.extract_strided_slice %143 {offsets = [0, 0], sizes = [1, 128], strides = [1, 1]} : vector<1x256xf32> to vector<1x128xf32>
    %145 = vector.extract_strided_slice %143 {offsets = [0, 128], sizes = [1, 128], strides = [1, 1]} : vector<1x256xf32> to vector<1x128xf32>
    %146 = vector.extract_strided_slice %134 {offsets = [0, 256], sizes = [1, 128], strides = [1, 1]} : vector<1x384xf32> to vector<1x128xf32>
    %147 = arith.mulf %144, %146 : vector<1x128xf32>
    %148 = arith.addf %130, %147 : vector<1x128xf32>
    %149 = math.tanh %148 : vector<1x128xf32>
    %cst_77 = arith.constant 1.000000e+00 : f32
    %150 = vector.broadcast %cst_77 : f32 to vector<1x128xf32>
    %151 = arith.subf %150, %145 : vector<1x128xf32>
    %152 = arith.mulf %151, %149 : vector<1x128xf32>
    %153 = arith.mulf %145, %128 : vector<1x128xf32>
    %154 = arith.addf %152, %153 : vector<1x128xf32>
    %155 = vector.extract_strided_slice %75 {offsets = [3, 0], sizes = [1, 256], strides = [1, 1]} : vector<8x256xf32> to vector<1x256xf32>
    %156 = vector.extract_strided_slice %76 {offsets = [3, 0], sizes = [1, 128], strides = [1, 1]} : vector<8x128xf32> to vector<1x128xf32>
    %c0_78 = arith.constant 0 : index
    %c0_79 = arith.constant 0 : index
    %157 = vector.load %arg7[%c0_78, %c0_79] : memref<128x384xf32, #tpu.memory_space<vmem>>, vector<128x384xf32>
    %cst_80 = arith.constant dense<0.000000e+00> : vector<1x384xf32>
    %158 = tpu.matmul %154, %157, %cst_80 {dimension_numbers = #tpu.dot_dimension_numbers<[1], [0], [0], [1], [0, 0, 1, 1], [], []>} : vector<1x128xf32>, vector<128x384xf32>, vector<1x384xf32> -> vector<1x384xf32>
    %c0_81 = arith.constant 0 : index
    %c0_82 = arith.constant 0 : index
    %159 = vector.load %arg8[%c0_81, %c0_82] : memref<1x384xf32, #tpu.memory_space<vmem>>, vector<1x384xf32>
    %160 = arith.addf %158, %159 : vector<1x384xf32>
    %161 = vector.extract_strided_slice %160 {offsets = [0, 0], sizes = [1, 256], strides = [1, 1]} : vector<1x384xf32> to vector<1x256xf32>
    %162 = arith.addf %155, %161 : vector<1x256xf32>
    %cst_83 = arith.constant 5.000000e-01 : f32
    %163 = vector.broadcast %cst_83 : f32 to vector<1x256xf32>
    %164 = arith.mulf %163, %162 : vector<1x256xf32>
    %165 = math.tanh %164 : vector<1x256xf32>
    %cst_84 = arith.constant 1.000000e+00 : f32
    %166 = vector.broadcast %cst_84 : f32 to vector<1x256xf32>
    %167 = arith.addf %165, %166 : vector<1x256xf32>
    %cst_85 = arith.constant 5.000000e-01 : f32
    %168 = vector.broadcast %cst_85 : f32 to vector<1x256xf32>
    %169 = arith.mulf %168, %167 : vector<1x256xf32>
    %170 = vector.extract_strided_slice %169 {offsets = [0, 0], sizes = [1, 128], strides = [1, 1]} : vector<1x256xf32> to vector<1x128xf32>
    %171 = vector.extract_strided_slice %169 {offsets = [0, 128], sizes = [1, 128], strides = [1, 1]} : vector<1x256xf32> to vector<1x128xf32>
    %172 = vector.extract_strided_slice %160 {offsets = [0, 256], sizes = [1, 128], strides = [1, 1]} : vector<1x384xf32> to vector<1x128xf32>
    %173 = arith.mulf %170, %172 : vector<1x128xf32>
    %174 = arith.addf %156, %173 : vector<1x128xf32>
    %175 = math.tanh %174 : vector<1x128xf32>
    %cst_86 = arith.constant 1.000000e+00 : f32
    %176 = vector.broadcast %cst_86 : f32 to vector<1x128xf32>
    %177 = arith.subf %176, %171 : vector<1x128xf32>
    %178 = arith.mulf %177, %175 : vector<1x128xf32>
    %179 = arith.mulf %171, %154 : vector<1x128xf32>
    %180 = arith.addf %178, %179 : vector<1x128xf32>
    %181 = vector.extract_strided_slice %75 {offsets = [4, 0], sizes = [1, 256], strides = [1, 1]} : vector<8x256xf32> to vector<1x256xf32>
    %182 = vector.extract_strided_slice %76 {offsets = [4, 0], sizes = [1, 128], strides = [1, 1]} : vector<8x128xf32> to vector<1x128xf32>
    %c0_87 = arith.constant 0 : index
    %c0_88 = arith.constant 0 : index
    %183 = vector.load %arg7[%c0_87, %c0_88] : memref<128x384xf32, #tpu.memory_space<vmem>>, vector<128x384xf32>
    %cst_89 = arith.constant dense<0.000000e+00> : vector<1x384xf32>
    %184 = tpu.matmul %180, %183, %cst_89 {dimension_numbers = #tpu.dot_dimension_numbers<[1], [0], [0], [1], [0, 0, 1, 1], [], []>} : vector<1x128xf32>, vector<128x384xf32>, vector<1x384xf32> -> vector<1x384xf32>
    %c0_90 = arith.constant 0 : index
    %c0_91 = arith.constant 0 : index
    %185 = vector.load %arg8[%c0_90, %c0_91] : memref<1x384xf32, #tpu.memory_space<vmem>>, vector<1x384xf32>
    %186 = arith.addf %184, %185 : vector<1x384xf32>
    %187 = vector.extract_strided_slice %186 {offsets = [0, 0], sizes = [1, 256], strides = [1, 1]} : vector<1x384xf32> to vector<1x256xf32>
    %188 = arith.addf %181, %187 : vector<1x256xf32>
    %cst_92 = arith.constant 5.000000e-01 : f32
    %189 = vector.broadcast %cst_92 : f32 to vector<1x256xf32>
    %190 = arith.mulf %189, %188 : vector<1x256xf32>
    %191 = math.tanh %190 : vector<1x256xf32>
    %cst_93 = arith.constant 1.000000e+00 : f32
    %192 = vector.broadcast %cst_93 : f32 to vector<1x256xf32>
    %193 = arith.addf %191, %192 : vector<1x256xf32>
    %cst_94 = arith.constant 5.000000e-01 : f32
    %194 = vector.broadcast %cst_94 : f32 to vector<1x256xf32>
    %195 = arith.mulf %194, %193 : vector<1x256xf32>
    %196 = vector.extract_strided_slice %195 {offsets = [0, 0], sizes = [1, 128], strides = [1, 1]} : vector<1x256xf32> to vector<1x128xf32>
    %197 = vector.extract_strided_slice %195 {offsets = [0, 128], sizes = [1, 128], strides = [1, 1]} : vector<1x256xf32> to vector<1x128xf32>
    %198 = vector.extract_strided_slice %186 {offsets = [0, 256], sizes = [1, 128], strides = [1, 1]} : vector<1x384xf32> to vector<1x128xf32>
    %199 = arith.mulf %196, %198 : vector<1x128xf32>
    %200 = arith.addf %182, %199 : vector<1x128xf32>
    %201 = math.tanh %200 : vector<1x128xf32>
    %cst_95 = arith.constant 1.000000e+00 : f32
    %202 = vector.broadcast %cst_95 : f32 to vector<1x128xf32>
    %203 = arith.subf %202, %197 : vector<1x128xf32>
    %204 = arith.mulf %203, %201 : vector<1x128xf32>
    %205 = arith.mulf %197, %180 : vector<1x128xf32>
    %206 = arith.addf %204, %205 : vector<1x128xf32>
    %207 = vector.extract_strided_slice %75 {offsets = [5, 0], sizes = [1, 256], strides = [1, 1]} : vector<8x256xf32> to vector<1x256xf32>
    %208 = vector.extract_strided_slice %76 {offsets = [5, 0], sizes = [1, 128], strides = [1, 1]} : vector<8x128xf32> to vector<1x128xf32>
    %c0_96 = arith.constant 0 : index
    %c0_97 = arith.constant 0 : index
    %209 = vector.load %arg7[%c0_96, %c0_97] : memref<128x384xf32, #tpu.memory_space<vmem>>, vector<128x384xf32>
    %cst_98 = arith.constant dense<0.000000e+00> : vector<1x384xf32>
    %210 = tpu.matmul %206, %209, %cst_98 {dimension_numbers = #tpu.dot_dimension_numbers<[1], [0], [0], [1], [0, 0, 1, 1], [], []>} : vector<1x128xf32>, vector<128x384xf32>, vector<1x384xf32> -> vector<1x384xf32>
    %c0_99 = arith.constant 0 : index
    %c0_100 = arith.constant 0 : index
    %211 = vector.load %arg8[%c0_99, %c0_100] : memref<1x384xf32, #tpu.memory_space<vmem>>, vector<1x384xf32>
    %212 = arith.addf %210, %211 : vector<1x384xf32>
    %213 = vector.extract_strided_slice %212 {offsets = [0, 0], sizes = [1, 256], strides = [1, 1]} : vector<1x384xf32> to vector<1x256xf32>
    %214 = arith.addf %207, %213 : vector<1x256xf32>
    %cst_101 = arith.constant 5.000000e-01 : f32
    %215 = vector.broadcast %cst_101 : f32 to vector<1x256xf32>
    %216 = arith.mulf %215, %214 : vector<1x256xf32>
    %217 = math.tanh %216 : vector<1x256xf32>
    %cst_102 = arith.constant 1.000000e+00 : f32
    %218 = vector.broadcast %cst_102 : f32 to vector<1x256xf32>
    %219 = arith.addf %217, %218 : vector<1x256xf32>
    %cst_103 = arith.constant 5.000000e-01 : f32
    %220 = vector.broadcast %cst_103 : f32 to vector<1x256xf32>
    %221 = arith.mulf %220, %219 : vector<1x256xf32>
    %222 = vector.extract_strided_slice %221 {offsets = [0, 0], sizes = [1, 128], strides = [1, 1]} : vector<1x256xf32> to vector<1x128xf32>
    %223 = vector.extract_strided_slice %221 {offsets = [0, 128], sizes = [1, 128], strides = [1, 1]} : vector<1x256xf32> to vector<1x128xf32>
    %224 = vector.extract_strided_slice %212 {offsets = [0, 256], sizes = [1, 128], strides = [1, 1]} : vector<1x384xf32> to vector<1x128xf32>
    %225 = arith.mulf %222, %224 : vector<1x128xf32>
    %226 = arith.addf %208, %225 : vector<1x128xf32>
    %227 = math.tanh %226 : vector<1x128xf32>
    %cst_104 = arith.constant 1.000000e+00 : f32
    %228 = vector.broadcast %cst_104 : f32 to vector<1x128xf32>
    %229 = arith.subf %228, %223 : vector<1x128xf32>
    %230 = arith.mulf %229, %227 : vector<1x128xf32>
    %231 = arith.mulf %223, %206 : vector<1x128xf32>
    %232 = arith.addf %230, %231 : vector<1x128xf32>
    %233 = vector.extract_strided_slice %75 {offsets = [6, 0], sizes = [1, 256], strides = [1, 1]} : vector<8x256xf32> to vector<1x256xf32>
    %234 = vector.extract_strided_slice %76 {offsets = [6, 0], sizes = [1, 128], strides = [1, 1]} : vector<8x128xf32> to vector<1x128xf32>
    %c0_105 = arith.constant 0 : index
    %c0_106 = arith.constant 0 : index
    %235 = vector.load %arg7[%c0_105, %c0_106] : memref<128x384xf32, #tpu.memory_space<vmem>>, vector<128x384xf32>
    %cst_107 = arith.constant dense<0.000000e+00> : vector<1x384xf32>
    %236 = tpu.matmul %232, %235, %cst_107 {dimension_numbers = #tpu.dot_dimension_numbers<[1], [0], [0], [1], [0, 0, 1, 1], [], []>} : vector<1x128xf32>, vector<128x384xf32>, vector<1x384xf32> -> vector<1x384xf32>
    %c0_108 = arith.constant 0 : index
    %c0_109 = arith.constant 0 : index
    %237 = vector.load %arg8[%c0_108, %c0_109] : memref<1x384xf32, #tpu.memory_space<vmem>>, vector<1x384xf32>
    %238 = arith.addf %236, %237 : vector<1x384xf32>
    %239 = vector.extract_strided_slice %238 {offsets = [0, 0], sizes = [1, 256], strides = [1, 1]} : vector<1x384xf32> to vector<1x256xf32>
    %240 = arith.addf %233, %239 : vector<1x256xf32>
    %cst_110 = arith.constant 5.000000e-01 : f32
    %241 = vector.broadcast %cst_110 : f32 to vector<1x256xf32>
    %242 = arith.mulf %241, %240 : vector<1x256xf32>
    %243 = math.tanh %242 : vector<1x256xf32>
    %cst_111 = arith.constant 1.000000e+00 : f32
    %244 = vector.broadcast %cst_111 : f32 to vector<1x256xf32>
    %245 = arith.addf %243, %244 : vector<1x256xf32>
    %cst_112 = arith.constant 5.000000e-01 : f32
    %246 = vector.broadcast %cst_112 : f32 to vector<1x256xf32>
    %247 = arith.mulf %246, %245 : vector<1x256xf32>
    %248 = vector.extract_strided_slice %247 {offsets = [0, 0], sizes = [1, 128], strides = [1, 1]} : vector<1x256xf32> to vector<1x128xf32>
    %249 = vector.extract_strided_slice %247 {offsets = [0, 128], sizes = [1, 128], strides = [1, 1]} : vector<1x256xf32> to vector<1x128xf32>
    %250 = vector.extract_strided_slice %238 {offsets = [0, 256], sizes = [1, 128], strides = [1, 1]} : vector<1x384xf32> to vector<1x128xf32>
    %251 = arith.mulf %248, %250 : vector<1x128xf32>
    %252 = arith.addf %234, %251 : vector<1x128xf32>
    %253 = math.tanh %252 : vector<1x128xf32>
    %cst_113 = arith.constant 1.000000e+00 : f32
    %254 = vector.broadcast %cst_113 : f32 to vector<1x128xf32>
    %255 = arith.subf %254, %249 : vector<1x128xf32>
    %256 = arith.mulf %255, %253 : vector<1x128xf32>
    %257 = arith.mulf %249, %232 : vector<1x128xf32>
    %258 = arith.addf %256, %257 : vector<1x128xf32>
    %259 = vector.extract_strided_slice %75 {offsets = [7, 0], sizes = [1, 256], strides = [1, 1]} : vector<8x256xf32> to vector<1x256xf32>
    %260 = vector.extract_strided_slice %76 {offsets = [7, 0], sizes = [1, 128], strides = [1, 1]} : vector<8x128xf32> to vector<1x128xf32>
    %c0_114 = arith.constant 0 : index
    %c0_115 = arith.constant 0 : index
    %261 = vector.load %arg7[%c0_114, %c0_115] : memref<128x384xf32, #tpu.memory_space<vmem>>, vector<128x384xf32>
    %cst_116 = arith.constant dense<0.000000e+00> : vector<1x384xf32>
    %262 = tpu.matmul %258, %261, %cst_116 {dimension_numbers = #tpu.dot_dimension_numbers<[1], [0], [0], [1], [0, 0, 1, 1], [], []>} : vector<1x128xf32>, vector<128x384xf32>, vector<1x384xf32> -> vector<1x384xf32>
    %c0_117 = arith.constant 0 : index
    %c0_118 = arith.constant 0 : index
    %263 = vector.load %arg8[%c0_117, %c0_118] : memref<1x384xf32, #tpu.memory_space<vmem>>, vector<1x384xf32>
    %264 = arith.addf %262, %263 : vector<1x384xf32>
    %265 = vector.extract_strided_slice %264 {offsets = [0, 0], sizes = [1, 256], strides = [1, 1]} : vector<1x384xf32> to vector<1x256xf32>
    %266 = arith.addf %259, %265 : vector<1x256xf32>
    %cst_119 = arith.constant 5.000000e-01 : f32
    %267 = vector.broadcast %cst_119 : f32 to vector<1x256xf32>
    %268 = arith.mulf %267, %266 : vector<1x256xf32>
    %269 = math.tanh %268 : vector<1x256xf32>
    %cst_120 = arith.constant 1.000000e+00 : f32
    %270 = vector.broadcast %cst_120 : f32 to vector<1x256xf32>
    %271 = arith.addf %269, %270 : vector<1x256xf32>
    %cst_121 = arith.constant 5.000000e-01 : f32
    %272 = vector.broadcast %cst_121 : f32 to vector<1x256xf32>
    %273 = arith.mulf %272, %271 : vector<1x256xf32>
    %274 = vector.extract_strided_slice %273 {offsets = [0, 0], sizes = [1, 128], strides = [1, 1]} : vector<1x256xf32> to vector<1x128xf32>
    %275 = vector.extract_strided_slice %273 {offsets = [0, 128], sizes = [1, 128], strides = [1, 1]} : vector<1x256xf32> to vector<1x128xf32>
    %276 = vector.extract_strided_slice %264 {offsets = [0, 256], sizes = [1, 128], strides = [1, 1]} : vector<1x384xf32> to vector<1x128xf32>
    %277 = arith.mulf %274, %276 : vector<1x128xf32>
    %278 = arith.addf %260, %277 : vector<1x128xf32>
    %279 = math.tanh %278 : vector<1x128xf32>
    %cst_122 = arith.constant 1.000000e+00 : f32
    %280 = vector.broadcast %cst_122 : f32 to vector<1x128xf32>
    %281 = arith.subf %280, %275 : vector<1x128xf32>
    %282 = arith.mulf %281, %279 : vector<1x128xf32>
    %283 = arith.mulf %275, %258 : vector<1x128xf32>
    %284 = arith.addf %282, %283 : vector<1x128xf32>
    %c1_i32_123 = arith.constant 1 : i32
    %c8 = arith.constant 8 : index
    %c0_124 = arith.constant 0 : index
    %285 = vector.load %arg14[%c8, %c0_124] : memref<16x384xf32, #tpu.memory_space<vmem>>, vector<8x384xf32>
    %286 = vector.extract_strided_slice %285 {offsets = [0, 0], sizes = [8, 256], strides = [1, 1]} : vector<8x384xf32> to vector<8x256xf32>
    %287 = vector.extract_strided_slice %285 {offsets = [0, 256], sizes = [8, 128], strides = [1, 1]} : vector<8x384xf32> to vector<8x128xf32>
    %288 = vector.extract_strided_slice %286 {offsets = [0, 0], sizes = [1, 256], strides = [1, 1]} : vector<8x256xf32> to vector<1x256xf32>
    %289 = vector.extract_strided_slice %287 {offsets = [0, 0], sizes = [1, 128], strides = [1, 1]} : vector<8x128xf32> to vector<1x128xf32>
    %c0_125 = arith.constant 0 : index
    %c0_126 = arith.constant 0 : index
    %290 = vector.load %arg7[%c0_125, %c0_126] : memref<128x384xf32, #tpu.memory_space<vmem>>, vector<128x384xf32>
    %cst_127 = arith.constant dense<0.000000e+00> : vector<1x384xf32>
    %291 = tpu.matmul %284, %290, %cst_127 {dimension_numbers = #tpu.dot_dimension_numbers<[1], [0], [0], [1], [0, 0, 1, 1], [], []>} : vector<1x128xf32>, vector<128x384xf32>, vector<1x384xf32> -> vector<1x384xf32>
    %c0_128 = arith.constant 0 : index
    %c0_129 = arith.constant 0 : index
    %292 = vector.load %arg8[%c0_128, %c0_129] : memref<1x384xf32, #tpu.memory_space<vmem>>, vector<1x384xf32>
    %293 = arith.addf %291, %292 : vector<1x384xf32>
    %294 = vector.extract_strided_slice %293 {offsets = [0, 0], sizes = [1, 256], strides = [1, 1]} : vector<1x384xf32> to vector<1x256xf32>
    %295 = arith.addf %288, %294 : vector<1x256xf32>
    %cst_130 = arith.constant 5.000000e-01 : f32
    %296 = vector.broadcast %cst_130 : f32 to vector<1x256xf32>
    %297 = arith.mulf %296, %295 : vector<1x256xf32>
    %298 = math.tanh %297 : vector<1x256xf32>
    %cst_131 = arith.constant 1.000000e+00 : f32
    %299 = vector.broadcast %cst_131 : f32 to vector<1x256xf32>
    %300 = arith.addf %298, %299 : vector<1x256xf32>
    %cst_132 = arith.constant 5.000000e-01 : f32
    %301 = vector.broadcast %cst_132 : f32 to vector<1x256xf32>
    %302 = arith.mulf %301, %300 : vector<1x256xf32>
    %303 = vector.extract_strided_slice %302 {offsets = [0, 0], sizes = [1, 128], strides = [1, 1]} : vector<1x256xf32> to vector<1x128xf32>
    %304 = vector.extract_strided_slice %302 {offsets = [0, 128], sizes = [1, 128], strides = [1, 1]} : vector<1x256xf32> to vector<1x128xf32>
    %305 = vector.extract_strided_slice %293 {offsets = [0, 256], sizes = [1, 128], strides = [1, 1]} : vector<1x384xf32> to vector<1x128xf32>
    %306 = arith.mulf %303, %305 : vector<1x128xf32>
    %307 = arith.addf %289, %306 : vector<1x128xf32>
    %308 = math.tanh %307 : vector<1x128xf32>
    %cst_133 = arith.constant 1.000000e+00 : f32
    %309 = vector.broadcast %cst_133 : f32 to vector<1x128xf32>
    %310 = arith.subf %309, %304 : vector<1x128xf32>
    %311 = arith.mulf %310, %308 : vector<1x128xf32>
    %312 = arith.mulf %304, %284 : vector<1x128xf32>
    %313 = arith.addf %311, %312 : vector<1x128xf32>
    %314 = vector.extract_strided_slice %286 {offsets = [1, 0], sizes = [1, 256], strides = [1, 1]} : vector<8x256xf32> to vector<1x256xf32>
    %315 = vector.extract_strided_slice %287 {offsets = [1, 0], sizes = [1, 128], strides = [1, 1]} : vector<8x128xf32> to vector<1x128xf32>
    %c0_134 = arith.constant 0 : index
    %c0_135 = arith.constant 0 : index
    %316 = vector.load %arg7[%c0_134, %c0_135] : memref<128x384xf32, #tpu.memory_space<vmem>>, vector<128x384xf32>
    %cst_136 = arith.constant dense<0.000000e+00> : vector<1x384xf32>
    %317 = tpu.matmul %313, %316, %cst_136 {dimension_numbers = #tpu.dot_dimension_numbers<[1], [0], [0], [1], [0, 0, 1, 1], [], []>} : vector<1x128xf32>, vector<128x384xf32>, vector<1x384xf32> -> vector<1x384xf32>
    %c0_137 = arith.constant 0 : index
    %c0_138 = arith.constant 0 : index
    %318 = vector.load %arg8[%c0_137, %c0_138] : memref<1x384xf32, #tpu.memory_space<vmem>>, vector<1x384xf32>
    %319 = arith.addf %317, %318 : vector<1x384xf32>
    %320 = vector.extract_strided_slice %319 {offsets = [0, 0], sizes = [1, 256], strides = [1, 1]} : vector<1x384xf32> to vector<1x256xf32>
    %321 = arith.addf %314, %320 : vector<1x256xf32>
    %cst_139 = arith.constant 5.000000e-01 : f32
    %322 = vector.broadcast %cst_139 : f32 to vector<1x256xf32>
    %323 = arith.mulf %322, %321 : vector<1x256xf32>
    %324 = math.tanh %323 : vector<1x256xf32>
    %cst_140 = arith.constant 1.000000e+00 : f32
    %325 = vector.broadcast %cst_140 : f32 to vector<1x256xf32>
    %326 = arith.addf %324, %325 : vector<1x256xf32>
    %cst_141 = arith.constant 5.000000e-01 : f32
    %327 = vector.broadcast %cst_141 : f32 to vector<1x256xf32>
    %328 = arith.mulf %327, %326 : vector<1x256xf32>
    %329 = vector.extract_strided_slice %328 {offsets = [0, 0], sizes = [1, 128], strides = [1, 1]} : vector<1x256xf32> to vector<1x128xf32>
    %330 = vector.extract_strided_slice %328 {offsets = [0, 128], sizes = [1, 128], strides = [1, 1]} : vector<1x256xf32> to vector<1x128xf32>
    %331 = vector.extract_strided_slice %319 {offsets = [0, 256], sizes = [1, 128], strides = [1, 1]} : vector<1x384xf32> to vector<1x128xf32>
    %332 = arith.mulf %329, %331 : vector<1x128xf32>
    %333 = arith.addf %315, %332 : vector<1x128xf32>
    %334 = math.tanh %333 : vector<1x128xf32>
    %cst_142 = arith.constant 1.000000e+00 : f32
    %335 = vector.broadcast %cst_142 : f32 to vector<1x128xf32>
    %336 = arith.subf %335, %330 : vector<1x128xf32>
    %337 = arith.mulf %336, %334 : vector<1x128xf32>
    %338 = arith.mulf %330, %313 : vector<1x128xf32>
    %339 = arith.addf %337, %338 : vector<1x128xf32>
    %340 = vector.extract_strided_slice %286 {offsets = [2, 0], sizes = [1, 256], strides = [1, 1]} : vector<8x256xf32> to vector<1x256xf32>
    %341 = vector.extract_strided_slice %287 {offsets = [2, 0], sizes = [1, 128], strides = [1, 1]} : vector<8x128xf32> to vector<1x128xf32>
    %c0_143 = arith.constant 0 : index
    %c0_144 = arith.constant 0 : index
    %342 = vector.load %arg7[%c0_143, %c0_144] : memref<128x384xf32, #tpu.memory_space<vmem>>, vector<128x384xf32>
    %cst_145 = arith.constant dense<0.000000e+00> : vector<1x384xf32>
    %343 = tpu.matmul %339, %342, %cst_145 {dimension_numbers = #tpu.dot_dimension_numbers<[1], [0], [0], [1], [0, 0, 1, 1], [], []>} : vector<1x128xf32>, vector<128x384xf32>, vector<1x384xf32> -> vector<1x384xf32>
    %c0_146 = arith.constant 0 : index
    %c0_147 = arith.constant 0 : index
    %344 = vector.load %arg8[%c0_146, %c0_147] : memref<1x384xf32, #tpu.memory_space<vmem>>, vector<1x384xf32>
    %345 = arith.addf %343, %344 : vector<1x384xf32>
    %346 = vector.extract_strided_slice %345 {offsets = [0, 0], sizes = [1, 256], strides = [1, 1]} : vector<1x384xf32> to vector<1x256xf32>
    %347 = arith.addf %340, %346 : vector<1x256xf32>
    %cst_148 = arith.constant 5.000000e-01 : f32
    %348 = vector.broadcast %cst_148 : f32 to vector<1x256xf32>
    %349 = arith.mulf %348, %347 : vector<1x256xf32>
    %350 = math.tanh %349 : vector<1x256xf32>
    %cst_149 = arith.constant 1.000000e+00 : f32
    %351 = vector.broadcast %cst_149 : f32 to vector<1x256xf32>
    %352 = arith.addf %350, %351 : vector<1x256xf32>
    %cst_150 = arith.constant 5.000000e-01 : f32
    %353 = vector.broadcast %cst_150 : f32 to vector<1x256xf32>
    %354 = arith.mulf %353, %352 : vector<1x256xf32>
    %355 = vector.extract_strided_slice %354 {offsets = [0, 0], sizes = [1, 128], strides = [1, 1]} : vector<1x256xf32> to vector<1x128xf32>
    %356 = vector.extract_strided_slice %354 {offsets = [0, 128], sizes = [1, 128], strides = [1, 1]} : vector<1x256xf32> to vector<1x128xf32>
    %357 = vector.extract_strided_slice %345 {offsets = [0, 256], sizes = [1, 128], strides = [1, 1]} : vector<1x384xf32> to vector<1x128xf32>
    %358 = arith.mulf %355, %357 : vector<1x128xf32>
    %359 = arith.addf %341, %358 : vector<1x128xf32>
    %360 = math.tanh %359 : vector<1x128xf32>
    %cst_151 = arith.constant 1.000000e+00 : f32
    %361 = vector.broadcast %cst_151 : f32 to vector<1x128xf32>
    %362 = arith.subf %361, %356 : vector<1x128xf32>
    %363 = arith.mulf %362, %360 : vector<1x128xf32>
    %364 = arith.mulf %356, %339 : vector<1x128xf32>
    %365 = arith.addf %363, %364 : vector<1x128xf32>
    %366 = vector.extract_strided_slice %286 {offsets = [3, 0], sizes = [1, 256], strides = [1, 1]} : vector<8x256xf32> to vector<1x256xf32>
    %367 = vector.extract_strided_slice %287 {offsets = [3, 0], sizes = [1, 128], strides = [1, 1]} : vector<8x128xf32> to vector<1x128xf32>
    %c0_152 = arith.constant 0 : index
    %c0_153 = arith.constant 0 : index
    %368 = vector.load %arg7[%c0_152, %c0_153] : memref<128x384xf32, #tpu.memory_space<vmem>>, vector<128x384xf32>
    %cst_154 = arith.constant dense<0.000000e+00> : vector<1x384xf32>
    %369 = tpu.matmul %365, %368, %cst_154 {dimension_numbers = #tpu.dot_dimension_numbers<[1], [0], [0], [1], [0, 0, 1, 1], [], []>} : vector<1x128xf32>, vector<128x384xf32>, vector<1x384xf32> -> vector<1x384xf32>
    %c0_155 = arith.constant 0 : index
    %c0_156 = arith.constant 0 : index
    %370 = vector.load %arg8[%c0_155, %c0_156] : memref<1x384xf32, #tpu.memory_space<vmem>>, vector<1x384xf32>
    %371 = arith.addf %369, %370 : vector<1x384xf32>
    %372 = vector.extract_strided_slice %371 {offsets = [0, 0], sizes = [1, 256], strides = [1, 1]} : vector<1x384xf32> to vector<1x256xf32>
    %373 = arith.addf %366, %372 : vector<1x256xf32>
    %cst_157 = arith.constant 5.000000e-01 : f32
    %374 = vector.broadcast %cst_157 : f32 to vector<1x256xf32>
    %375 = arith.mulf %374, %373 : vector<1x256xf32>
    %376 = math.tanh %375 : vector<1x256xf32>
    %cst_158 = arith.constant 1.000000e+00 : f32
    %377 = vector.broadcast %cst_158 : f32 to vector<1x256xf32>
    %378 = arith.addf %376, %377 : vector<1x256xf32>
    %cst_159 = arith.constant 5.000000e-01 : f32
    %379 = vector.broadcast %cst_159 : f32 to vector<1x256xf32>
    %380 = arith.mulf %379, %378 : vector<1x256xf32>
    %381 = vector.extract_strided_slice %380 {offsets = [0, 0], sizes = [1, 128], strides = [1, 1]} : vector<1x256xf32> to vector<1x128xf32>
    %382 = vector.extract_strided_slice %380 {offsets = [0, 128], sizes = [1, 128], strides = [1, 1]} : vector<1x256xf32> to vector<1x128xf32>
    %383 = vector.extract_strided_slice %371 {offsets = [0, 256], sizes = [1, 128], strides = [1, 1]} : vector<1x384xf32> to vector<1x128xf32>
    %384 = arith.mulf %381, %383 : vector<1x128xf32>
    %385 = arith.addf %367, %384 : vector<1x128xf32>
    %386 = math.tanh %385 : vector<1x128xf32>
    %cst_160 = arith.constant 1.000000e+00 : f32
    %387 = vector.broadcast %cst_160 : f32 to vector<1x128xf32>
    %388 = arith.subf %387, %382 : vector<1x128xf32>
    %389 = arith.mulf %388, %386 : vector<1x128xf32>
    %390 = arith.mulf %382, %365 : vector<1x128xf32>
    %391 = arith.addf %389, %390 : vector<1x128xf32>
    %392 = vector.extract_strided_slice %286 {offsets = [4, 0], sizes = [1, 256], strides = [1, 1]} : vector<8x256xf32> to vector<1x256xf32>
    %393 = vector.extract_strided_slice %287 {offsets = [4, 0], sizes = [1, 128], strides = [1, 1]} : vector<8x128xf32> to vector<1x128xf32>
    %c0_161 = arith.constant 0 : index
    %c0_162 = arith.constant 0 : index
    %394 = vector.load %arg7[%c0_161, %c0_162] : memref<128x384xf32, #tpu.memory_space<vmem>>, vector<128x384xf32>
    %cst_163 = arith.constant dense<0.000000e+00> : vector<1x384xf32>
    %395 = tpu.matmul %391, %394, %cst_163 {dimension_numbers = #tpu.dot_dimension_numbers<[1], [0], [0], [1], [0, 0, 1, 1], [], []>} : vector<1x128xf32>, vector<128x384xf32>, vector<1x384xf32> -> vector<1x384xf32>
    %c0_164 = arith.constant 0 : index
    %c0_165 = arith.constant 0 : index
    %396 = vector.load %arg8[%c0_164, %c0_165] : memref<1x384xf32, #tpu.memory_space<vmem>>, vector<1x384xf32>
    %397 = arith.addf %395, %396 : vector<1x384xf32>
    %398 = vector.extract_strided_slice %397 {offsets = [0, 0], sizes = [1, 256], strides = [1, 1]} : vector<1x384xf32> to vector<1x256xf32>
    %399 = arith.addf %392, %398 : vector<1x256xf32>
    %cst_166 = arith.constant 5.000000e-01 : f32
    %400 = vector.broadcast %cst_166 : f32 to vector<1x256xf32>
    %401 = arith.mulf %400, %399 : vector<1x256xf32>
    %402 = math.tanh %401 : vector<1x256xf32>
    %cst_167 = arith.constant 1.000000e+00 : f32
    %403 = vector.broadcast %cst_167 : f32 to vector<1x256xf32>
    %404 = arith.addf %402, %403 : vector<1x256xf32>
    %cst_168 = arith.constant 5.000000e-01 : f32
    %405 = vector.broadcast %cst_168 : f32 to vector<1x256xf32>
    %406 = arith.mulf %405, %404 : vector<1x256xf32>
    %407 = vector.extract_strided_slice %406 {offsets = [0, 0], sizes = [1, 128], strides = [1, 1]} : vector<1x256xf32> to vector<1x128xf32>
    %408 = vector.extract_strided_slice %406 {offsets = [0, 128], sizes = [1, 128], strides = [1, 1]} : vector<1x256xf32> to vector<1x128xf32>
    %409 = vector.extract_strided_slice %397 {offsets = [0, 256], sizes = [1, 128], strides = [1, 1]} : vector<1x384xf32> to vector<1x128xf32>
    %410 = arith.mulf %407, %409 : vector<1x128xf32>
    %411 = arith.addf %393, %410 : vector<1x128xf32>
    %412 = math.tanh %411 : vector<1x128xf32>
    %cst_169 = arith.constant 1.000000e+00 : f32
    %413 = vector.broadcast %cst_169 : f32 to vector<1x128xf32>
    %414 = arith.subf %413, %408 : vector<1x128xf32>
    %415 = arith.mulf %414, %412 : vector<1x128xf32>
    %416 = arith.mulf %408, %391 : vector<1x128xf32>
    %417 = arith.addf %415, %416 : vector<1x128xf32>
    %418 = vector.extract_strided_slice %286 {offsets = [5, 0], sizes = [1, 256], strides = [1, 1]} : vector<8x256xf32> to vector<1x256xf32>
    %419 = vector.extract_strided_slice %287 {offsets = [5, 0], sizes = [1, 128], strides = [1, 1]} : vector<8x128xf32> to vector<1x128xf32>
    %c0_170 = arith.constant 0 : index
    %c0_171 = arith.constant 0 : index
    %420 = vector.load %arg7[%c0_170, %c0_171] : memref<128x384xf32, #tpu.memory_space<vmem>>, vector<128x384xf32>
    %cst_172 = arith.constant dense<0.000000e+00> : vector<1x384xf32>
    %421 = tpu.matmul %417, %420, %cst_172 {dimension_numbers = #tpu.dot_dimension_numbers<[1], [0], [0], [1], [0, 0, 1, 1], [], []>} : vector<1x128xf32>, vector<128x384xf32>, vector<1x384xf32> -> vector<1x384xf32>
    %c0_173 = arith.constant 0 : index
    %c0_174 = arith.constant 0 : index
    %422 = vector.load %arg8[%c0_173, %c0_174] : memref<1x384xf32, #tpu.memory_space<vmem>>, vector<1x384xf32>
    %423 = arith.addf %421, %422 : vector<1x384xf32>
    %424 = vector.extract_strided_slice %423 {offsets = [0, 0], sizes = [1, 256], strides = [1, 1]} : vector<1x384xf32> to vector<1x256xf32>
    %425 = arith.addf %418, %424 : vector<1x256xf32>
    %cst_175 = arith.constant 5.000000e-01 : f32
    %426 = vector.broadcast %cst_175 : f32 to vector<1x256xf32>
    %427 = arith.mulf %426, %425 : vector<1x256xf32>
    %428 = math.tanh %427 : vector<1x256xf32>
    %cst_176 = arith.constant 1.000000e+00 : f32
    %429 = vector.broadcast %cst_176 : f32 to vector<1x256xf32>
    %430 = arith.addf %428, %429 : vector<1x256xf32>
    %cst_177 = arith.constant 5.000000e-01 : f32
    %431 = vector.broadcast %cst_177 : f32 to vector<1x256xf32>
    %432 = arith.mulf %431, %430 : vector<1x256xf32>
    %433 = vector.extract_strided_slice %432 {offsets = [0, 0], sizes = [1, 128], strides = [1, 1]} : vector<1x256xf32> to vector<1x128xf32>
    %434 = vector.extract_strided_slice %432 {offsets = [0, 128], sizes = [1, 128], strides = [1, 1]} : vector<1x256xf32> to vector<1x128xf32>
    %435 = vector.extract_strided_slice %423 {offsets = [0, 256], sizes = [1, 128], strides = [1, 1]} : vector<1x384xf32> to vector<1x128xf32>
    %436 = arith.mulf %433, %435 : vector<1x128xf32>
    %437 = arith.addf %419, %436 : vector<1x128xf32>
    %438 = math.tanh %437 : vector<1x128xf32>
    %cst_178 = arith.constant 1.000000e+00 : f32
    %439 = vector.broadcast %cst_178 : f32 to vector<1x128xf32>
    %440 = arith.subf %439, %434 : vector<1x128xf32>
    %441 = arith.mulf %440, %438 : vector<1x128xf32>
    %442 = arith.mulf %434, %417 : vector<1x128xf32>
    %443 = arith.addf %441, %442 : vector<1x128xf32>
    %444 = vector.extract_strided_slice %286 {offsets = [6, 0], sizes = [1, 256], strides = [1, 1]} : vector<8x256xf32> to vector<1x256xf32>
    %445 = vector.extract_strided_slice %287 {offsets = [6, 0], sizes = [1, 128], strides = [1, 1]} : vector<8x128xf32> to vector<1x128xf32>
    %c0_179 = arith.constant 0 : index
    %c0_180 = arith.constant 0 : index
    %446 = vector.load %arg7[%c0_179, %c0_180] : memref<128x384xf32, #tpu.memory_space<vmem>>, vector<128x384xf32>
    %cst_181 = arith.constant dense<0.000000e+00> : vector<1x384xf32>
    %447 = tpu.matmul %443, %446, %cst_181 {dimension_numbers = #tpu.dot_dimension_numbers<[1], [0], [0], [1], [0, 0, 1, 1], [], []>} : vector<1x128xf32>, vector<128x384xf32>, vector<1x384xf32> -> vector<1x384xf32>
    %c0_182 = arith.constant 0 : index
    %c0_183 = arith.constant 0 : index
    %448 = vector.load %arg8[%c0_182, %c0_183] : memref<1x384xf32, #tpu.memory_space<vmem>>, vector<1x384xf32>
    %449 = arith.addf %447, %448 : vector<1x384xf32>
    %450 = vector.extract_strided_slice %449 {offsets = [0, 0], sizes = [1, 256], strides = [1, 1]} : vector<1x384xf32> to vector<1x256xf32>
    %451 = arith.addf %444, %450 : vector<1x256xf32>
    %cst_184 = arith.constant 5.000000e-01 : f32
    %452 = vector.broadcast %cst_184 : f32 to vector<1x256xf32>
    %453 = arith.mulf %452, %451 : vector<1x256xf32>
    %454 = math.tanh %453 : vector<1x256xf32>
    %cst_185 = arith.constant 1.000000e+00 : f32
    %455 = vector.broadcast %cst_185 : f32 to vector<1x256xf32>
    %456 = arith.addf %454, %455 : vector<1x256xf32>
    %cst_186 = arith.constant 5.000000e-01 : f32
    %457 = vector.broadcast %cst_186 : f32 to vector<1x256xf32>
    %458 = arith.mulf %457, %456 : vector<1x256xf32>
    %459 = vector.extract_strided_slice %458 {offsets = [0, 0], sizes = [1, 128], strides = [1, 1]} : vector<1x256xf32> to vector<1x128xf32>
    %460 = vector.extract_strided_slice %458 {offsets = [0, 128], sizes = [1, 128], strides = [1, 1]} : vector<1x256xf32> to vector<1x128xf32>
    %461 = vector.extract_strided_slice %449 {offsets = [0, 256], sizes = [1, 128], strides = [1, 1]} : vector<1x384xf32> to vector<1x128xf32>
    %462 = arith.mulf %459, %461 : vector<1x128xf32>
    %463 = arith.addf %445, %462 : vector<1x128xf32>
    %464 = math.tanh %463 : vector<1x128xf32>
    %cst_187 = arith.constant 1.000000e+00 : f32
    %465 = vector.broadcast %cst_187 : f32 to vector<1x128xf32>
    %466 = arith.subf %465, %460 : vector<1x128xf32>
    %467 = arith.mulf %466, %464 : vector<1x128xf32>
    %468 = arith.mulf %460, %443 : vector<1x128xf32>
    %469 = arith.addf %467, %468 : vector<1x128xf32>
    %470 = vector.extract_strided_slice %286 {offsets = [7, 0], sizes = [1, 256], strides = [1, 1]} : vector<8x256xf32> to vector<1x256xf32>
    %471 = vector.extract_strided_slice %287 {offsets = [7, 0], sizes = [1, 128], strides = [1, 1]} : vector<8x128xf32> to vector<1x128xf32>
    %c0_188 = arith.constant 0 : index
    %c0_189 = arith.constant 0 : index
    %472 = vector.load %arg7[%c0_188, %c0_189] : memref<128x384xf32, #tpu.memory_space<vmem>>, vector<128x384xf32>
    %cst_190 = arith.constant dense<0.000000e+00> : vector<1x384xf32>
    %473 = tpu.matmul %469, %472, %cst_190 {dimension_numbers = #tpu.dot_dimension_numbers<[1], [0], [0], [1], [0, 0, 1, 1], [], []>} : vector<1x128xf32>, vector<128x384xf32>, vector<1x384xf32> -> vector<1x384xf32>
    %c0_191 = arith.constant 0 : index
    %c0_192 = arith.constant 0 : index
    %474 = vector.load %arg8[%c0_191, %c0_192] : memref<1x384xf32, #tpu.memory_space<vmem>>, vector<1x384xf32>
    %475 = arith.addf %473, %474 : vector<1x384xf32>
    %476 = vector.extract_strided_slice %475 {offsets = [0, 0], sizes = [1, 256], strides = [1, 1]} : vector<1x384xf32> to vector<1x256xf32>
    %477 = arith.addf %470, %476 : vector<1x256xf32>
    %cst_193 = arith.constant 5.000000e-01 : f32
    %478 = vector.broadcast %cst_193 : f32 to vector<1x256xf32>
    %479 = arith.mulf %478, %477 : vector<1x256xf32>
    %480 = math.tanh %479 : vector<1x256xf32>
    %cst_194 = arith.constant 1.000000e+00 : f32
    %481 = vector.broadcast %cst_194 : f32 to vector<1x256xf32>
    %482 = arith.addf %480, %481 : vector<1x256xf32>
    %cst_195 = arith.constant 5.000000e-01 : f32
    %483 = vector.broadcast %cst_195 : f32 to vector<1x256xf32>
    %484 = arith.mulf %483, %482 : vector<1x256xf32>
    %485 = vector.extract_strided_slice %484 {offsets = [0, 0], sizes = [1, 128], strides = [1, 1]} : vector<1x256xf32> to vector<1x128xf32>
    %486 = vector.extract_strided_slice %484 {offsets = [0, 128], sizes = [1, 128], strides = [1, 1]} : vector<1x256xf32> to vector<1x128xf32>
    %487 = vector.extract_strided_slice %475 {offsets = [0, 256], sizes = [1, 128], strides = [1, 1]} : vector<1x384xf32> to vector<1x128xf32>
    %488 = arith.mulf %485, %487 : vector<1x128xf32>
    %489 = arith.addf %471, %488 : vector<1x128xf32>
    %490 = math.tanh %489 : vector<1x128xf32>
    %cst_196 = arith.constant 1.000000e+00 : f32
    %491 = vector.broadcast %cst_196 : f32 to vector<1x128xf32>
    %492 = arith.subf %491, %486 : vector<1x128xf32>
    %493 = arith.mulf %492, %490 : vector<1x128xf32>
    %494 = arith.mulf %486, %469 : vector<1x128xf32>
    %495 = arith.addf %493, %494 : vector<1x128xf32>
    %c0_197 = arith.constant 0 : index
    %c0_198 = arith.constant 0 : index
    %496 = vector.load %arg9[%c0_197, %c0_198] : memref<128x128xf32, #tpu.memory_space<vmem>>, vector<128x128xf32>
    %cst_199 = arith.constant dense<0.000000e+00> : vector<1x128xf32>
    %497 = tpu.matmul %495, %496, %cst_199 {dimension_numbers = #tpu.dot_dimension_numbers<[1], [0], [0], [1], [0, 0, 1, 1], [], []>} : vector<1x128xf32>, vector<128x128xf32>, vector<1x128xf32> -> vector<1x128xf32>
    %c0_200 = arith.constant 0 : index
    %c0_201 = arith.constant 0 : index
    %498 = vector.load %arg10[%c0_200, %c0_201] : memref<1x128xf32, #tpu.memory_space<vmem>>, vector<1x128xf32>
    %499 = arith.addf %497, %498 : vector<1x128xf32>
    %c0_202 = arith.constant 0 : index
    %c0_203 = arith.constant 0 : index
    %500 = vector.load %arg11[%c0_202, %c0_203] : memref<128x128xf32, #tpu.memory_space<vmem>>, vector<128x128xf32>
    %cst_204 = arith.constant dense<0.000000e+00> : vector<1x128xf32>
    %501 = tpu.matmul %499, %500, %cst_204 {dimension_numbers = #tpu.dot_dimension_numbers<[1], [0], [0], [1], [0, 0, 1, 1], [], []>} : vector<1x128xf32>, vector<128x128xf32>, vector<1x128xf32> -> vector<1x128xf32>
    %c0_205 = arith.constant 0 : index
    %c0_206 = arith.constant 0 : index
    %502 = vector.load %arg12[%c0_205, %c0_206] : memref<1x128xf32, #tpu.memory_space<vmem>>, vector<1x128xf32>
    %503 = arith.addf %501, %502 : vector<1x128xf32>
    %c0_207 = arith.constant 0 : index
    %c0_208 = arith.constant 0 : index
    %504 = vector.load %arg13[%c0_207, %c0_208] : memref<1x128xf32, #tpu.memory_space<vmem>>, vector<1x128xf32>
    tpu.vector_store %arg13[%c0_207, %c0_208], %503 {strides = array<i32>} : memref<1x128xf32, #tpu.memory_space<vmem>>, vector<1x128xf32>,
    return
  }
}

</mosaic_0001>

<bundles_post_ra>
// kernel: tpu_custom_call.1
= control target key start
LH: loop header
LB: loop body
LE: loop exit
PB: predicated region body
PF: predicated region fallthrough
CT: control target
= control target key end

     0   :  { %18 = vsyncpa [#allocation5], 0  ;;  %s7646_s0 = inlined_call_operand.vmem [shape: f32[16,4], index: 0, kind: input, shape index: {}]   ;;  %s7647_s1 = inlined_call_operand.vmem [shape: bf16[3,4,128], index: 1, kind: input, shape index: {}]   ;;  %s7648_s2 = inlined_call_operand.vmem [shape: f32[1,128], index: 2, kind: input, shape index: {}]   ;;  %s7649_s3 = inlined_call_operand.hbm [shape: bf16[3,128,128], index: 3, kind: input, shape index: {}]   ;;  %s7650_s4 = inlined_call_operand.vmem [shape: f32[1,128], index: 4, kind: input, shape index: {}]   ;;  %s7651_s5 = inlined_call_operand.hbm [shape: bf16[128,384], index: 5, kind: input, shape index: {}]   ;;  %s7652_s6 = inlined_call_operand.vmem [shape: f32[1,384], index: 6, kind: input, shape index: {}]   ;;  %s7653_s7 = inlined_call_operand.hbm [shape: f32[128,384], index: 7, kind: input, shape index: {}]   ;;  %s7654_s8 = inlined_call_operand.vmem [shape: f32[1,384], index: 8, kind: input, shape index: {}]   ;;  %s7655_s9 = inlined_call_operand.hbm [shape: f32[128,128], index: 9, kind: input, shape index: {}]   ;;  %s7656_s10 = inlined_call_operand.vmem [shape: f32[1,128], index: 10, kind: input, shape index: {}]   ;;  %s7657_s11 = inlined_call_operand.hbm [shape: f32[128,128], index: 11, kind: input, shape index: {}]   ;;  %s7658_s12 = inlined_call_operand.vmem [shape: f32[1,128], index: 12, kind: input, shape index: {}]   ;;  %s7659_s13 = inlined_call_operand.hbm [shape: f32[1,128], index: 13, kind: output, shape index: {}]  }
   0x1   :  { %19 = vsyncpa [#allocation8], 0 }
   0x2   :  { %20 = vsyncpa [#allocation11], 0 }
   0x3   :  { %21 = vsyncpa [#allocation6], 0  ;;  %s5777_s25 = smov [#allocation7]  }
   0x4   :  { %s47_s26 = sshll.u32 %s5777_s25, 4  ;;  %s48_s26 = int_to_ptr.vmem [resolvable:$true] %s47_s26 }
   0x5   :  { %s5657_s27 = scalar_lea.vmem %s48_s26, 3072  ;;  %p5662_p1 = scmp.lt.s32.totalorder %s48_s26, %s48_s26 }
   0x6   :  { %p5658_p0 = scmp.ne.s32.totalorder %s48_s26, %s5657_s27  ;;  %p5663_p2 = scmp.lt.s32.totalorder %s5657_s27, %s5657_s27 }
   0x8   :  { %p5664_p3 = por %p5663_p2, %p5662_p1 }
   0xa   :  { %p5665_p4 = pnand %p5664_p3, %p5658_p0 }
   0xc   :  { %5668 = shalt.err (!%p5665_p4)
}
   0xd   :  { %s5778_s28 = smov 192   ;;  %s5779_s29 = smov 12  }
   0xe   :  { %53 = dma.hbm_to_vmem [thread:$0]  %s7651_s5, 3072, %s48_s26, [#allocation8], %s5778_s28, %s5778_s28, %s5779_s29  }
   0xf   :  { %s5780_s15 = smov [#allocation10]  }
  0x10   :  { %s75_s16 = sshll.u32 %s5780_s15, 4  ;;  %s76_s16 = int_to_ptr.vmem [resolvable:$true] %s75_s16 }
  0x11   :  { %s5677_s17 = scalar_lea.vmem %s76_s16, 2048  ;;  %p5682_p6 = scmp.lt.s32.totalorder %s76_s16, %s76_s16 }
  0x12   :  { %p5678_p5 = scmp.ne.s32.totalorder %s76_s16, %s5677_s17  ;;  %p5683_p7 = scmp.lt.s32.totalorder %s5677_s17, %s5677_s17 }
  0x14   :  { %p5684_p8 = por %p5683_p7, %p5682_p6 }
  0x16   :  { %p5685_p9 = pnand %p5684_p8, %p5678_p5 }
  0x18   :  { %5688 = shalt.err (!%p5685_p9)
}
  0x19   :  { %s5781_s18 = smov 128   ;;  %s5782_s19 = smov 8  }
  0x1a   :  { %81 = dma.hbm_to_vmem [thread:$0]  %s7655_s9, 2048, %s76_s16, [#allocation11], %s5781_s18, %s5781_s18, %s5782_s19  }
  0x1b   :  { %s5783_s5 = smov [#allocation4]  }
  0x1c   :  { %s33_s22 = sshll.u32 %s5783_s5, 4  ;;  %s34_s22 = int_to_ptr.vmem [resolvable:$true] %s33_s22 }
  0x1d   :  { %s5697_s23 = scalar_lea.vmem %s34_s22, 3072  ;;  %p5702_p11 = scmp.lt.s32.totalorder %s34_s22, %s34_s22 }
  0x1e   :  { %p5698_p10 = scmp.ne.s32.totalorder %s34_s22, %s5697_s23  ;;  %p5703_p12 = scmp.lt.s32.totalorder %s5697_s23, %s5697_s23 }
  0x20   :  { %p5704_p13 = por %p5703_p12, %p5702_p11 }
  0x22   :  { %p5705_p0 = pnand %p5704_p13, %p5698_p10 }
  0x24   :  { %5708 = shalt.err (!%p5705_p0)
}
  0x25   :  { %s5784_s24 = smov 64   ;;  %s5785_s25 = smov 4  }
  0x26   :  { %39 = dma.hbm_to_vmem [thread:$0]  %s7649_s3, 3072, %s34_s22, [#allocation5], %s5784_s24, %s5784_s24, %s5785_s25  }
  0x27   :  { %s5786_s28 = smov [#allocation9]  }
  0x28   :  { %s61_s29 = sshll.u32 %s5786_s28, 4  ;;  %s62_s29 = int_to_ptr.vmem [resolvable:$true] %s61_s29 }
  0x29   :  { %s5717_s9 = scalar_lea.vmem %s62_s29, 6144  ;;  %p5722_p2 = scmp.lt.s32.totalorder %s62_s29, %s62_s29 }
  0x2a   :  { %p5718_p1 = scmp.ne.s32.totalorder %s62_s29, %s5717_s9  ;;  %p5723_p3 = scmp.lt.s32.totalorder %s5717_s9, %s5717_s9 }
  0x2c   :  { %p5724_p4 = por %p5723_p3, %p5722_p2 }
  0x2e   :  { %p5725_p5 = pnand %p5724_p4, %p5718_p1 }
  0x30   :  { %5728 = shalt.err (!%p5725_p5)
}
  0x31   :  { %s5787_s30 = smov 384   ;;  %s5788_s14 = smov 24  }
  0x32   :  { %67 = dma.hbm_to_vmem [thread:$0]  %s7653_s7, 6144, %s62_s29, [#allocation8], %s5787_s30, %s5787_s30, %s5788_s14  }
  0x33   :  { %s5789_s17 = smov [#allocation12]  }
  0x34   :  { %s89_s20 = sshll.u32 %s5789_s17, 4  ;;  %s90_s20 = int_to_ptr.vmem [resolvable:$true] %s89_s20 }
  0x35   :  { %s5737_s3 = scalar_lea.vmem %s90_s20, 2048  ;;  %p5742_p7 = scmp.lt.s32.totalorder %s90_s20, %s90_s20 }
  0x36   :  { %p5738_p6 = scmp.ne.s32.totalorder %s90_s20, %s5737_s3  ;;  %p5743_p8 = scmp.lt.s32.totalorder %s5737_s3, %s5737_s3 }
  0x38   :  { %p5744_p9 = por %p5743_p8, %p5742_p7 }
  0x3a   :  { %p5745_p10 = pnand %p5744_p9, %p5738_p6 }
  0x3c   :  { %5748 = shalt.err (!%p5745_p10)
}
  0x3d   :  { %95 = dma.hbm_to_vmem [thread:$0]  %s7657_s11, 2048, %s90_s20, [#allocation11], %s5781_s18, %s5781_s18, %s5782_s19  }
  0x3e   :  { %5769 = dma.done.wait [#allocation5], 3072  }
  0x3f   :  { %5770 = vsyncadd [#allocation5], 4294964224 }
  0x40   :  { %5771 = dma.done.wait [#allocation8], 9216  }
  0x41   :  { %5772 = vsyncadd [#allocation8], 4294958080 }
  0x42   :  { %5773 = dma.done.wait [#allocation11], 4096  }
  0x43   :  { %5774 = vsyncadd [#allocation11], 4294963200  ;;  %v7662_v0 = vmov 0.0   ;;  %vm5791_vm0 = vmmov 0   ;;  %vm142_vm1 = vcmask 1041408   ;;  %vm138_vm2 = vcmask 31744  }
  0x44   :  { %4626 = vmatprep.subr.bf16.mxu0 %v7662_v0  ;;  %4628 = vmatprep.mubr.msk.bf16.mxu0 %vm5791_vm0, %v7662_v0  ;;  %v4174_v1 = vld [vmem:[%s7647_s1 + $0x2] sm:$0x3]  ;;  %v115_v3 = vld [vmem:[%s7646_s0 + $0x8] sm:$0xff]  ;;  %vm118_vm3 = vcmask 1040384   ;;  %vm126_vm4 = vcmask 1046528   ;;  %v5393_v21 = vld [vmem:[#allocation4 + $0x70] sm:$0xff]  }
  0x45   :  { %4644 = vmatprep.subr.bf16.mxu1 %v7662_v0  ;;  %4660 = vmatprep.mubr.msk.bf16.mxu1 %vm5791_vm0, %v7662_v0  ;;  %v114_v2 = vld [vmem:[%s7646_s0] sm:$0xff]  ;;  %v144_v4 = vsel %vm142_vm1, %v4174_v1, 0  ;;  %v120_v6 = vrot.slane %v115_v3, 7  ;;  %v128_v9 = vrot.slane %v115_v3, 1  ;;  %v5395_v23 = vld [vmem:[#allocation4 + $0x68] sm:$0xff]   ;;  %v5396_v24 = vld [vmem:[#allocation4 + $0x30] sm:$0xff]  }
  0x46   :  { %v119_v5 = vrot.slane %v114_v2, 7  ;;  %v127_v7 = vrot.slane %v114_v2, 1  ;;  %v135_v8 = vld [vmem:[%s7647_s1] sm:$0x3]  ;;  %4627 = vmatpush3.bf16.msra.mxu0 %v144_v4  ;;  %v134_v10 = vpack.c.bf16 %v115_v3, %v114_v2  ;;  %v4177_v12 = vld [vmem:[%s7647_s1 + $0x4] sm:$0x3]  ;;  %vm4196_vm5 = vmneg %vm118_vm3 }
  0x47   :  { %v191_v11 = vsel %vm142_vm1, %v135_v8, 0  ;;  %4632 = vmatprep.subr.bf16.mxu0 %v7662_v0  ;;  %v240_v14 = vsel %vm142_vm1, %v4177_v12, 0  ;;  %v5392_v15 = vld [vmem:[#allocation4 + $0x78] sm:$0xff]   ;;  %v132_v16 = vsel %vm126_vm4, %v128_v9, 0.0  ;;  %v5397_v25 = vld [vmem:[#allocation4 + $0x60] sm:$0xff]   ;;  %v5398_v26 = vld [vmem:[#allocation4 + $0x28] sm:$0xff]  }
  0x48   :  { %v124_v13 = vsel %vm118_vm3, 0.0, %v119_v5  ;;  %4645 = vmatpush3.bf16.msra.mxu1 %v5392_v15  ;;  %v121_v17 = vsel %vm118_vm3, %v119_v5, %v120_v6  ;;  %v129_v19 = vsel %vm126_vm4, %v127_v7, %v128_v9  ;;  %v5394_v22 = vld [vmem:[#allocation4 + $0x38] sm:$0xff]   ;;  %v5400_v28 = vld [vmem:[#allocation4 + $0x20] sm:$0xff]   ;;  %v5401_v29 = vld [vmem:[#allocation4 + $0x50] sm:$0xff]   ;;  %vm5792_vm6 = vmmov 1   ;;  %s5794_s21 = smov [#allocation13]  }
  0x49   :  { %4629 = vmatmul.mubr.msk.bf16.vlgmr.msra.gmra.mxu0 %vm138_vm2, %v134_v10  ;;  %4646 = vmatprep.subr.bf16.mxu1 %v7662_v0  ;;  %v125_v18 = vpack.c.bf16 %v121_v17, %v124_v13  ;;  %v133_v20 = vpack.c.bf16 %v132_v16, %v129_v19  ;;  %v5399_v27 = vld [vmem:[#allocation4 + $0x58] sm:$0xff]   ;;  %v5403_v31 = vld [vmem:[#allocation4 + $0x48] sm:$0xff]   ;;  %v5404_v32 = vld [vmem:[#allocation4 + $0x10] sm:$0xff]   ;;  %s4162_s5 = sshll.u32 %s5794_s21, 4  ;;  %s4163_s5 = int_to_ptr.vmem [resolvable:$true] %s4162_s5 }
  0x4a   :  { %4633 = vmatpush3.bf16.msra.mxu0 %v191_v11  ;;  %4634 = vmatprep.mubr.msk.bf16.mxu0 %vm5791_vm0, %v7662_v0  ;;  %v5402_v30 = vld [vmem:[#allocation4 + $0x18] sm:$0xff]   ;;  %v5405_v33 = vld [vmem:[#allocation4 + $0x40] sm:$0xff]   ;;  %v5406_v34 = vld [vmem:[#allocation4 + $0x8] sm:$0xff]   ;;  %s5749_s7 = scalar_lea.vmem %s4163_s5, 16  ;;  %s5753_s11 = scalar_lea.vmem %s4163_s5, 32 }
  0x4b   :  { %4638 = vmatprep.subr.bf16.mxu0 %v7662_v0  ;;  %v5407_v35 = vld [vmem:[#allocation4] sm:$0xff]   ;;  %v4179_v46 = vld [vmem:[%s7648_s2] ss:$0 sm:$0xff]  ;;  %vm4197_vm7 = vmpackc.low %vm5792_vm6, %vm4196_vm5  ;;  %p5750_p11 = scmp.ne.s32.totalorder %s4163_s5, %s5749_s7  ;;  %p5754_p12 = scmp.lt.s32.totalorder %s4163_s5, %s4163_s5 }
  0x4c   :  { %4647 = vmatpush3.bf16.msra.mxu1 %v5393_v21  ;;  %v5408_v57 = vld [vmem:[#allocation4 + $0xb8] sm:$0xff]   ;;  %v5409_v63 = vld [vmem:[#allocation4 + $0xb0] sm:$0xff]   ;;  %v5410_v1 = vld [vmem:[#allocation4 + $0xa8] sm:$0xff]   ;;  %p5755_p13 = scmp.lt.s32.totalorder %s5753_s11, %s5749_s7 }
  0x4d   :  { %4648 = vmatprep.subr.bf16.mxu1 %v7662_v0  ;;  %v5411_v2 = vld [vmem:[#allocation4 + $0xa0] sm:$0xff]   ;;  %v5412_v3 = vld [vmem:[#allocation4 + $0x98] sm:$0xff]   ;;  %v5413_v4 = vld [vmem:[#allocation4 + $0x90] sm:$0xff]  }
  0x4e   :  { %v5414_v5 = vld [vmem:[#allocation4 + $0x88] sm:$0xff]   ;;  %v5415_v8 = vld [vmem:[#allocation4 + $0x80] sm:$0xff]   ;;  %vm4208_vm8 = vmpackc.low %vm126_vm4, %vm5792_vm6  ;;  %p5756_p0 = por %p5755_p13, %p5754_p12 }
  0x4f   :  { %v5962_v11 = vld [vmem:[#allocation7 + $0xa8] ss:$12 sps:$4 sm:$0xff]   ;;  %v5418_v12 = vld [vmem:[#allocation7 + $0xac] ss:$12 sps:$4 sm:$0xff]   ;;  %v5419_v13 = vld [vmem:[#allocation7 + $0xb0] ss:$12 sps:$4 sm:$0xff]  }
  0x50   :  { %4649 = vmatpush3.bf16.msra.mxu1 %v5395_v23  ;;  %v5423_v15 = vld [vmem:[#allocation7 + $0x98] ss:$12 sps:$4 sm:$0xff]   ;;  %v5967_v16 = vld [vmem:[#allocation7 + $0x90] ss:$12 sps:$4 sm:$0xff]   ;;  %v5982_v21 = vld [vmem:[#allocation7 + $0x60] ss:$12 sps:$4 sm:$0xff]   ;;  %p5757_p1 = pnand %p5756_p0, %p5750_p11 }
  0x51   :  { %4635 = vmatmul.mubr.msk.bf16.vlgmr.msra.gmra.mxu0 %vm138_vm2, %v125_v18  ;;  %4650 = vmatprep.subr.bf16.mxu1 %v7662_v0  ;;  %v5971_v17 = vld [vmem:[#allocation7 + $0x7c] ss:$12 sps:$4 sm:$0xff]   ;;  %v5427_v18 = vld [vmem:[#allocation7 + $0x80] ss:$12 sps:$4 sm:$0xff]   ;;  %v5974_v19 = vld [vmem:[#allocation7 + $0x78] ss:$12 sps:$4 sm:$0xff]  }
  0x52   :  { %4639 = vmatpush3.bf16.msra.mxu0 %v240_v14  ;;  %4640 = vmatprep.mubr.msk.bf16.mxu0 %vm5791_vm0, %v7662_v0  ;;  %v5964_v14 = vld [vmem:[#allocation7 + $0x94] ss:$12 sps:$4 sm:$0xff]   ;;  %v5986_v23 = vld [vmem:[#allocation7 + $0x4c] ss:$12 sps:$4 sm:$0xff]  }
  0x53   :  { %4664 = vmatprep.subr.bf16.mxu0 %v7662_v0 }
  0x54   :  { %4651 = vmatpush3.bf16.msra.mxu1 %v5397_v25  ;;  %v5435_v25 = vld [vmem:[#allocation7 + $0x50] ss:$12 sps:$4 sm:$0xff]  }
  0x55   :  { %4652 = vmatprep.subr.bf16.mxu1 %v7662_v0 }
  0x58   :  { %4653 = vmatpush3.bf16.msra.mxu1 %v5399_v27  ;;  %v5996_v27 = vld [vmem:[#allocation7 + $0x30] ss:$12 sps:$4 sm:$0xff]  }
  0x59   :  { %4641 = vmatmul.mubr.msk.bf16.vlgmr.msra.gmra.mxu0 %vm138_vm2, %v133_v20  ;;  %4654 = vmatprep.subr.bf16.mxu1 %v7662_v0  ;;  %v5980_v20 = vld [vmem:[#allocation7 + $0x64] ss:$12 sps:$4 sm:$0xff]  }
  0x5a   :  { %4680 = vmatprep.mubr.msk.bf16.mxu0 %vm5791_vm0, %v7662_v0  ;;  %4665 = vmatpush3.bf16.msra.mxu0 %v5394_v22  ;;  %v5431_v22 = vld [vmem:[#allocation7 + $0x68] ss:$12 sps:$4 sm:$0xff]  }
  0x5b   :  { %4666 = vmatprep.subr.bf16.mxu0 %v7662_v0 }
  0x5c   :  { %4655 = vmatpush3.bf16.msra.mxu1 %v5401_v29  ;;  %v6000_v29 = vld [vmem:[#allocation7 + $0x1c] ss:$12 sps:$4 sm:$0xff]  }
  0x5d   :  { %4656 = vmatprep.subr.bf16.mxu1 %v7662_v0 }
  0x5e   :  { %4667 = vmatpush3.bf16.msra.mxu0 %v5396_v24  ;;  %v5989_v24 = vld [vmem:[#allocation7 + $0x48] ss:$12 sps:$4 sm:$0xff]  }
  0x5f   :  { %4668 = vmatprep.subr.bf16.mxu0 %v7662_v0 }
  0x60   :  { %4657 = vmatpush3.bf16.msra.mxu1 %v5403_v31  ;;  %v5443_v31 = vld [vmem:[#allocation7 + $0x20] ss:$12 sps:$4 sm:$0xff]  }
  0x61   :  { %4658 = vmatprep.subr.bf16.mxu1 %v7662_v0 }
  0x62   :  { %4669 = vmatpush3.bf16.msra.mxu0 %v5398_v26  ;;  %v5993_v26 = vld [vmem:[#allocation7 + $0x34] ss:$12 sps:$4 sm:$0xff]  }
  0x63   :  { %4670 = vmatprep.subr.bf16.mxu0 %v7662_v0 }
  0x64   :  { %4659 = vmatpush3.bf16.msra.mxu1 %v5405_v33  ;;  %v6009_v33 = vld [vmem:[#allocation7 + $0x4] ss:$12 sps:$4 sm:$0xff]  }
  0x65   :  { %4684 = vmatprep.subr.bf16.mxu1 %v7662_v0 }
  0x66   :  { %4671 = vmatpush3.bf16.msra.mxu0 %v5400_v28  ;;  %v5439_v28 = vld [vmem:[#allocation7 + $0x38] ss:$12 sps:$4 sm:$0xff]  }
  0x67   :  { %4672 = vmatprep.subr.bf16.mxu0 %v7662_v0 }
  0x6a   :  { %4673 = vmatpush3.bf16.msra.mxu0 %v5402_v30  ;;  %v6003_v30 = vld [vmem:[#allocation7 + $0x18] ss:$12 sps:$4 sm:$0xff]  }
  0x6b   :  { %4674 = vmatprep.subr.bf16.mxu0 %v7662_v0 }
  0x6e   :  { %4675 = vmatpush3.bf16.msra.mxu0 %v5404_v32  ;;  %v6007_v32 = vld [vmem:[#allocation7] ss:$12 sps:$4 sm:$0xff]  }
  0x6f   :  { %4676 = vmatprep.subr.bf16.mxu0 %v7662_v0 }
  0x72   :  { %4677 = vmatpush3.bf16.msra.mxu0 %v5406_v34  ;;  %v5447_v34 = vld [vmem:[#allocation7 + $0x8] ss:$12 sps:$4 sm:$0xff]  }
  0x73   :  { %4678 = vmatprep.subr.bf16.mxu0 %v7662_v0 }
  0x76   :  { %4679 = vmatpush3.bf16.msra.mxu0 %v5407_v35  ;;  %v5793_v35 = vmov 0  }
  0x77   :  { %831 = vmatprep.subr.bf16.mxu0 %v5418_v12 }
 0x109   :  { %v180_v36 = vpop.f32.mrf.mxu0 }
 0x10b   :  { %v4630_v37 = vpop.f32.mrf.mxu0 }
 0x10d   :  { %v183_v38 = vpop.f32.mrf.mxu0 }
 0x10f   :  { %v4631_v39 = vpop.f32.mrf.mxu0 }
 0x111   :  { %v227_v40 = vpop.f32.mrf.mxu0 }
 0x112   :  { %v228_v44 = vadd.f32 %v227_v40, %v180_v36 }
 0x113   :  { %v4636_v41 = vpop.f32.mrf.mxu0 }
 0x115   :  { %v230_v42 = vpop.f32.mrf.mxu0 }
 0x116   :  { %v231_v49 = vadd.f32 %v230_v42, %v183_v38 }
 0x117   :  { %v4637_v43 = vpop.f32.mrf.mxu0 }
 0x119   :  { %v276_v45 = vpop.f32.mrf.mxu0 }
 0x11a   :  { %v283_v47 = vadd.f32 %v276_v45, %v228_v44 }
 0x11b   :  { %v4642_v48 = vpop.f32.mrf.mxu0 }
 0x11c   :  { %v292_v50 = vadd.f32 %v4179_v46, %v283_v47  ;;  %v4211_v47 = vld [vmem:[%s7650_s4] ss:$0 sm:$0xff] }
 0x11d   :  { %v279_v51 = vpop.f32.mrf.mxu0 }
 0x11e   :  { %v284_v52 = vadd.f32 %v279_v51, %v231_v49  ;;  %v294_v54 = vmax.f32 %v292_v50, 0.0 }
 0x11f   :  { %v4643_v53 = vpop.f32.mrf.mxu0 }
 0x120   :  { %v293_v55 = vadd.f32 %v4179_v46, %v284_v52  ;;  %v298_v58 = vrot.slane %v294_v54, 7  ;;  %v305_v7 = vrot.slane %v294_v54, 1 }
 0x122   :  { %v295_v56 = vmax.f32 %v293_v55, 0.0 }
 0x124   :  { %v299_v59 = vrot.slane %v295_v56, 7  ;;  %v312_v60 = vpack.c.bf16 %v295_v56, %v294_v54  ;;  %v306_v6 = vrot.slane %v295_v56, 1 }
 0x126   :  { %v300_v61 = vsel %vm118_vm3, %v298_v58, %v299_v59  ;;  %4661 = vmatmul.mubr.bf16.vlgmr.msra.gmra.mxu1 %v312_v60  ;;  %v307_v9 = vsel %vm126_vm4, %v305_v7, %v306_v6  ;;  %v5449_v60 = vld [vmem:[#allocation7 + $0x98] ss:$12 sps:$4 sm:$0xff]  }
 0x127   :  { %4685 = vmatpush3.bf16.msra.mxu1 %v5408_v57  ;;  %v4198_v62 = vpack.c.bf16 %v300_v61, %v298_v58  ;;  %4700 = vmatprep.mubr.msk.bf16.mxu1 %vm5791_vm0, %v7662_v0  ;;  %v4209_v10 = vpack.c.bf16 %v306_v6, %v307_v9  ;;  %v5448_v58 = vld [vmem:[#allocation7 + $0xb0] ss:$12 sps:$4 sm:$0xff]   ;;  %v5450_v61 = vld [vmem:[#allocation7 + $0x80] ss:$12 sps:$4 sm:$0xff]  }
 0x128   :  { %4686 = vmatprep.subr.bf16.mxu1 %v7662_v0  ;;  %v6048_v6 = vld [vmem:[#allocation9 + $0x178] sm:$0xff]  ;;  %v6052_v9 = vld [vmem:[#allocation9 + $0x150] sm:$0xff] }
 0x129   :  { %4681 = vmatmul.mubr.msk.bf16.vlgmr.msra.gmra.mxu0 %vm4197_vm7, %v4198_v62  ;;  %v5451_v62 = vld [vmem:[#allocation7 + $0x68] ss:$12 sps:$4 sm:$0xff]  }
 0x12a   :  { %832 = vmatpush1.bf16.msra.mxu0 %v5962_v11  ;;  %863 = vmatprep.mubr.bf16.mxu0 %v5793_v35 }
 0x12b   :  { %4687 = vmatpush3.bf16.msra.mxu1 %v5409_v63  ;;  %833 = vmatprep.subr.bf16.mxu0 %v5964_v14  ;;  %v5452_v63 = vld [vmem:[#allocation7 + $0x50] ss:$12 sps:$4 sm:$0xff]  }
 0x12c   :  { %4688 = vmatprep.subr.bf16.mxu1 %v7662_v0 }
 0x12e   :  { %834 = vmatpush1.bf16.msra.mxu0 %v5967_v16 }
 0x12f   :  { %4689 = vmatpush3.bf16.msra.mxu1 %v5410_v1  ;;  %835 = vmatprep.subr.bf16.mxu0 %v5971_v17  ;;  %v5453_v1 = vld [vmem:[#allocation7 + $0x38] ss:$12 sps:$4 sm:$0xff]  }
 0x130   :  { %4690 = vmatprep.subr.bf16.mxu1 %v7662_v0 }
 0x132   :  { %836 = vmatpush1.bf16.msra.mxu0 %v5974_v19 }
 0x133   :  { %4691 = vmatpush3.bf16.msra.mxu1 %v5411_v2  ;;  %837 = vmatprep.subr.bf16.mxu0 %v5980_v20  ;;  %v5454_v2 = vld [vmem:[#allocation7 + $0x20] ss:$12 sps:$4 sm:$0xff]  }
 0x134   :  { %4692 = vmatprep.subr.bf16.mxu1 %v7662_v0 }
 0x136   :  { %838 = vmatpush1.bf16.msra.mxu0 %v5982_v21 }
 0x137   :  { %4693 = vmatpush3.bf16.msra.mxu1 %v5412_v3  ;;  %839 = vmatprep.subr.bf16.mxu0 %v5986_v23  ;;  %v5455_v3 = vld [vmem:[#allocation7 + $0x8] ss:$12 sps:$4 sm:$0xff]  }
 0x138   :  { %4694 = vmatprep.subr.bf16.mxu1 %v7662_v0 }
 0x13a   :  { %840 = vmatpush1.bf16.msra.mxu0 %v5989_v24 }
 0x13b   :  { %4695 = vmatpush3.bf16.msra.mxu1 %v5413_v4  ;;  %841 = vmatprep.subr.bf16.mxu0 %v5993_v26  ;;  %v6041_v4 = vld [vmem:[#allocation9 + $0x170] sm:$0xff] }
 0x13c   :  { %4696 = vmatprep.subr.bf16.mxu1 %v7662_v0  ;;  %7719 = vst [vmem:[#allocation18_spill] sm:$0xff] %v6041_v4 }
 0x13e   :  { %842 = vmatpush1.bf16.msra.mxu0 %v5996_v27 }
 0x13f   :  { %4697 = vmatpush3.bf16.msra.mxu1 %v5414_v5  ;;  %843 = vmatprep.subr.bf16.mxu0 %v6000_v29  ;;  %v6045_v5 = vld [vmem:[#allocation9 + $0x168] sm:$0xff] }
 0x140   :  { %4698 = vmatprep.subr.bf16.mxu1 %v7662_v0 }
 0x142   :  { %844 = vmatpush1.bf16.msra.mxu0 %v6003_v30 }
 0x143   :  { %4699 = vmatpush3.bf16.msra.mxu1 %v5415_v8  ;;  %845 = vmatprep.subr.bf16.mxu0 %v6009_v33  ;;  %v6050_v8 = vld [vmem:[#allocation9 + $0x158] sm:$0xff] }
 0x144   :  { %4704 = vmatprep.subr.bf16.mxu1 %v7662_v0 }
 0x146   :  { %4701 = vmatmul.mubr.msk.bf16.vlgmr.msra.gmra.mxu1 %vm4208_vm8, %v4209_v10  ;;  %846 = vmatpush1.bf16.msra.mxu0 %v6007_v32  ;;  %v6054_v10 = vld [vmem:[#allocation9 + $0x160] sm:$0xff] }
 0x147   :  { %4720 = vmatprep.mubr.msk.bf16.mxu1 %vm5791_vm0, %v7662_v0  ;;  %4705 = vmatpush3.bf16.msra.mxu1 %v5419_v13  ;;  %v6064_v13 = vld [vmem:[#allocation9 + $0x148] sm:$0xff] }
 0x148   :  { %4706 = vmatprep.subr.bf16.mxu1 %v7662_v0  ;;  %1100 = vmatprep.subr.bf16.mxu0 %v5418_v12  ;;  %v6061_v12 = vld [vmem:[#allocation9 + $0x138] sm:$0xff] }
 0x14b   :  { %4707 = vmatpush3.bf16.msra.mxu1 %v5423_v15  ;;  %v6071_v15 = vld [vmem:[#allocation9 + $0x120] sm:$0xff] }
 0x14c   :  { %4708 = vmatprep.subr.bf16.mxu1 %v7662_v0 }
 0x14f   :  { %4709 = vmatpush3.bf16.msra.mxu1 %v5427_v18  ;;  %v6081_v18 = vld [vmem:[#allocation9 + $0x108] sm:$0xff] }
 0x150   :  { %4710 = vmatprep.subr.bf16.mxu1 %v7662_v0 }
 0x153   :  { %4711 = vmatpush3.bf16.msra.mxu1 %v5431_v22  ;;  %v6095_v22 = vld [vmem:[#allocation9 + $0xe0] sm:$0xff] }
 0x154   :  { %4712 = vmatprep.subr.bf16.mxu1 %v7662_v0 }
 0x157   :  { %4713 = vmatpush3.bf16.msra.mxu1 %v5435_v25  ;;  %v6105_v25 = vld [vmem:[#allocation9 + $0xc8] sm:$0xff] }
 0x158   :  { %4714 = vmatprep.subr.bf16.mxu1 %v7662_v0 }
 0x15b   :  { %4715 = vmatpush3.bf16.msra.mxu1 %v5439_v28  ;;  %v6115_v28 = vld [vmem:[#allocation9 + $0xb0] sm:$0xff] }
 0x15c   :  { %4716 = vmatprep.subr.bf16.mxu1 %v7662_v0 }
 0x15f   :  { %4717 = vmatpush3.bf16.msra.mxu1 %v5443_v31  ;;  %v6125_v31 = vld [vmem:[#allocation9 + $0x98] sm:$0xff] }
 0x160   :  { %4718 = vmatprep.subr.bf16.mxu1 %v7662_v0 }
 0x163   :  { %4719 = vmatpush3.bf16.msra.mxu1 %v5447_v34  ;;  %v6135_v34 = vld [vmem:[#allocation9 + $0x80] sm:$0xff] }
 0x164   :  { %4724 = vmatprep.subr.bf16.mxu1 %v7662_v0 }
 0x1e6   :  { %v428_v36 = vpop.f32.mrf.mxu1 }
 0x1e8   :  { %v4662_v37 = vpop.f32.mrf.mxu1 }
 0x1e9   :  { %v517_v38 = vpop.f32.mrf.mxu0  ;;  %v6145_v37 = vld [vmem:[#allocation9 + $0x68] sm:$0xff] }
 0x1ea   :  { %v431_v39 = vpop.f32.mrf.mxu1  ;;  %v518_v44 = vadd.f32 %v517_v38, %v428_v36  ;;  %v6141_v36 = vld [vmem:[#allocation9 + $0x78] sm:$0xff]  ;;  %v6148_v38 = vld [vmem:[#allocation9 + $0x88] sm:$0xff] }
 0x1eb   :  { %v4682_v40 = vpop.f32.mrf.mxu0 }
 0x1ec   :  { %v4663_v41 = vpop.f32.mrf.mxu1  ;;  %v6155_v40 = vld [vmem:[#allocation9 + $0x50] sm:$0xff] }
 0x1ed   :  { %v520_v42 = vpop.f32.mrf.mxu0  ;;  %v6158_v41 = vld [vmem:[#allocation9 + $0x70] sm:$0xff] }
 0x1ee   :  { %v521_v49 = vadd.f32 %v520_v42, %v431_v39  ;;  %v6151_v39 = vld [vmem:[#allocation9 + $0x60] sm:$0xff]  ;;  %v6161_v42 = vld [vmem:[#allocation9 + $0x48] sm:$0xff] }
 0x1ef   :  { %v4683_v43 = vpop.f32.mrf.mxu0 }
 0x1f0   :  { %v6165_v43 = vld [vmem:[#allocation9 + $0x38] sm:$0xff] }
 0x206   :  { %v623_v45 = vpop.f32.mrf.mxu1 }
 0x207   :  { %v630_v46 = vadd.f32 %v623_v45, %v518_v44  ;;  %v6168_v44 = vld [vmem:[#allocation9 + $0x58] sm:$0xff]  ;;  %v6171_v45 = vld [vmem:[#allocation9 + $0x30] sm:$0xff] }
 0x208   :  { %v4702_v48 = vpop.f32.mrf.mxu1 }
 0x209   :  { %v639_v51 = vadd.f32 %v4211_v47, %v630_v46  ;;  %v6175_v46 = vld [vmem:[#allocation9 + $0x20] sm:$0xff]  ;;  %v6181_v48 = vld [vmem:[#allocation9 + $0x18] sm:$0xff] }
 0x20a   :  { %v626_v50 = vpop.f32.mrf.mxu1  ;;  %7720 = vst [vmem:[#allocation19_spill] sm:$0xff] %v6175_v46  ;;  %7722 = vst [vmem:[#allocation21_spill] sm:$0xff] %v6181_v48 }
 0x20b   :  { %v631_v52 = vadd.f32 %v626_v50, %v521_v49  ;;  %v641_v55 = vmax.f32 %v639_v51, 0.0  ;;  %v6185_v49 = vld [vmem:[#allocation9 + $0x8] sm:$0xff]  ;;  %v6191_v51 = vld [vmem:[#allocation9] sm:$0xff] }
 0x20c   :  { %v4703_v53 = vpop.f32.mrf.mxu1  ;;  %7723 = vst [vmem:[#allocation22_spill] sm:$0xff] %v6185_v49  ;;  %v6188_v50 = vld [vmem:[#allocation9 + $0x28] sm:$0xff]  ;;  %7725 = vst [vmem:[#allocation24_spill] sm:$0xff] %v6191_v51 }
 0x20d   :  { %v640_v54 = vadd.f32 %v4211_v47, %v631_v52  ;;  %v6178_v47 = vld [vmem:[#allocation9 + $0x40] sm:$0xff]  ;;  %7724 = vst [vmem:[#allocation23_spill] sm:$0xff] %v6188_v50  ;;  %v6196_v52 = vld [vmem:[#allocation9 + $0x10] sm:$0xff] }
 0x20e   :  { %7721 = vst [vmem:[#allocation20_spill] sm:$0xff] %v6178_v47  ;;  %7726 = vst [vmem:[#allocation25_spill] sm:$0xff] %v6196_v52 }
 0x20f   :  { %v642_v56 = vmax.f32 %v640_v54, 0.0 }
 0x211   :  { %v4267_v57 = vpack.c.bf16 %v642_v56, %v641_v55 }
 0x213   :  { %4268 = vst [vmem:[#allocation3] sm:$0xff] %v4267_v57  }
 0x21a   :  { %v653_v59 = vld [vmem:[#allocation3] sm:$0xf]  ;;  %v922_v7 = vld [vmem:[#allocation3 + $0x4] sm:$0xf] }
 0x21b   :  { %864 = vmatmul.mubr.bf16.vlgmr.msra.gmra.mxu0 %v653_v59  ;;  %4721 = vmatmul.mubr.bf16.vlgmr.msra.gmra.mxu1 %v653_v59 }
 0x21c   :  { %1101 = vmatpush1.bf16.msra.mxu0 %v5962_v11  ;;  %4725 = vmatpush3.bf16.msra.mxu1 %v5448_v58  ;;  %v6057_v11 = vld [vmem:[#allocation9 + $0x140] sm:$0xff] }
 0x21d   :  { %1102 = vmatprep.subr.bf16.mxu0 %v5964_v14  ;;  %4726 = vmatprep.subr.bf16.mxu1 %v7662_v0  ;;  %v6067_v14 = vld [vmem:[#allocation9 + $0x128] sm:$0xff] }
 0x21e   :  { %1132 = vmatprep.mubr.bf16.mxu0 %v5793_v35  ;;  %4740 = vmatprep.mubr.msk.bf16.mxu1 %vm5791_vm0, %v7662_v0  ;;  %v6138_v35 = vld [vmem:[#allocation9 + $0xa0] sm:$0xff] }
 0x220   :  { %1103 = vmatpush1.bf16.msra.mxu0 %v5967_v16  ;;  %4727 = vmatpush3.bf16.msra.mxu1 %v5449_v60  ;;  %v6074_v16 = vld [vmem:[#allocation9 + $0x130] sm:$0xff] }
 0x221   :  { %1104 = vmatprep.subr.bf16.mxu0 %v5971_v17  ;;  %4728 = vmatprep.subr.bf16.mxu1 %v7662_v0  ;;  %v6077_v17 = vld [vmem:[#allocation9 + $0x110] sm:$0xff] }
 0x224   :  { %1105 = vmatpush1.bf16.msra.mxu0 %v5974_v19  ;;  %4729 = vmatpush3.bf16.msra.mxu1 %v5450_v61  ;;  %v6084_v19 = vld [vmem:[#allocation9 + $0x118] sm:$0xff]  ;;  %v688_v61 = vlaneseq }
 0x225   :  { %1106 = vmatprep.subr.bf16.mxu0 %v5980_v20  ;;  %4730 = vmatprep.subr.bf16.mxu1 %v7662_v0  ;;  %v6087_v20 = vld [vmem:[#allocation9 + $0xf8] sm:$0xff] }
 0x228   :  { %1107 = vmatpush1.bf16.msra.mxu0 %v5982_v21  ;;  %4731 = vmatpush3.bf16.msra.mxu1 %v5451_v62  ;;  %v6091_v21 = vld [vmem:[#allocation9 + $0xf0] sm:$0xff]  ;;  %v689_v62 = vshrl.u32 %v688_v61, 7 }
 0x229   :  { %1108 = vmatprep.subr.bf16.mxu0 %v5986_v23  ;;  %4732 = vmatprep.subr.bf16.mxu1 %v7662_v0  ;;  %v6098_v23 = vld [vmem:[#allocation9 + $0x100] sm:$0xff] }
 0x22c   :  { %1109 = vmatpush1.bf16.msra.mxu0 %v5989_v24  ;;  %4733 = vmatpush3.bf16.msra.mxu1 %v5452_v63  ;;  %v6101_v24 = vld [vmem:[#allocation9 + $0xd8] sm:$0xff] }
 0x22d   :  { %1110 = vmatprep.subr.bf16.mxu0 %v5993_v26  ;;  %4734 = vmatprep.subr.bf16.mxu1 %v7662_v0  ;;  %v6108_v26 = vld [vmem:[#allocation9 + $0xe8] sm:$0xff]  ;;  %v955_v63 = vld [vmem:[%s7652_s6] sm:$0x7] }
 0x230   :  { %1111 = vmatpush1.bf16.msra.mxu0 %v5996_v27  ;;  %4735 = vmatpush3.bf16.msra.mxu1 %v5453_v1  ;;  %v6111_v27 = vld [vmem:[#allocation9 + $0xc0] sm:$0xff]  ;;  %v698_v1 = vsub.s32 2, %v689_v62 }
 0x231   :  { %1112 = vmatprep.subr.bf16.mxu0 %v6000_v29  ;;  %4736 = vmatprep.subr.bf16.mxu1 %v7662_v0  ;;  %v6118_v29 = vld [vmem:[#allocation9 + $0xd0] sm:$0xff] }
 0x234   :  { %1113 = vmatpush1.bf16.msra.mxu0 %v6003_v30  ;;  %4737 = vmatpush3.bf16.msra.mxu1 %v5454_v2  ;;  %v6121_v30 = vld [vmem:[#allocation9 + $0xa8] sm:$0xff]  ;;  %v694_v2 = vsub.s32 1, %v689_v62 }
 0x235   :  { %1114 = vmatprep.subr.bf16.mxu0 %v6009_v33  ;;  %4738 = vmatprep.subr.bf16.mxu1 %v7662_v0  ;;  %v6131_v33 = vld [vmem:[#allocation9 + $0x90] sm:$0xff] }
 0x238   :  { %1115 = vmatpush1.bf16.msra.mxu0 %v6007_v32  ;;  %4739 = vmatpush3.bf16.msra.mxu1 %v5455_v3  ;;  %v6128_v32 = vld [vmem:[#allocation9 + $0xb8] sm:$0xff]  ;;  %v968_v3 = vrot.slane %v955_v63, %v698_v1 }
 0x239   :  { %1252 = vmatprep.subr.mxu0 %v6041_v4  ;;  %4744 = vmatprep.subr.mxu1 %v7662_v0 }
 0x23b   :  { %1133 = vmatmul.mubr.bf16.vlgmr.msra.gmra.mxu0 %v922_v7  ;;  %4741 = vmatmul.mubr.bf16.vlgmr.msra.gmra.mxu1 %v922_v7  ;;  %v964_v7 = vrot.slane %v955_v63, %v694_v2  ;;  %v1235_v63 = vld [vmem:[%s7654_s8] sm:$0x7] }
 0x23c   :  { %1253 = vmatpush1.msra.mxu0 %v6045_v5  ;;  %4745 = vmatpush3.msra.mxu1 %v6048_v6 }
 0x23d   :  { %1254 = vmatprep.subr.mxu0 %v6050_v8  ;;  %4746 = vmatprep.subr.mxu1 %v7662_v0 }
 0x23e   :  { %1255 = vmatpush1.msra.mxu0 %v6052_v9  ;;  %4747 = vmatpush3.msra.mxu1 %v6054_v10 }
 0x23f   :  { %1256 = vmatprep.subr.mxu0 %v6057_v11  ;;  %4748 = vmatprep.subr.mxu1 %v7662_v0 }
 0x240   :  { %1257 = vmatpush1.msra.mxu0 %v6061_v12  ;;  %4749 = vmatpush3.msra.mxu1 %v6064_v13 }
 0x241   :  { %1258 = vmatprep.subr.mxu0 %v6067_v14  ;;  %4750 = vmatprep.subr.mxu1 %v7662_v0 }
 0x242   :  { %1259 = vmatpush1.msra.mxu0 %v6071_v15  ;;  %4751 = vmatpush3.msra.mxu1 %v6074_v16 }
 0x243   :  { %1260 = vmatprep.subr.mxu0 %v6077_v17  ;;  %4752 = vmatprep.subr.mxu1 %v7662_v0 }
 0x244   :  { %1261 = vmatpush1.msra.mxu0 %v6081_v18  ;;  %4753 = vmatpush3.msra.mxu1 %v6084_v19 }
 0x245   :  { %1262 = vmatprep.subr.mxu0 %v6087_v20  ;;  %1316 = vmatprep.mubr.f32.mxu0 %v7662_v0 }
 0x246   :  { %1263 = vmatpush1.msra.mxu0 %v6091_v21  ;;  %4754 = vmatprep.subr.mxu1 %v7662_v0 }
 0x247   :  { %1264 = vmatprep.subr.mxu0 %v6095_v22  ;;  %4755 = vmatpush3.msra.mxu1 %v6098_v23 }
 0x248   :  { %1265 = vmatpush1.msra.mxu0 %v6101_v24  ;;  %4756 = vmatprep.subr.mxu1 %v7662_v0 }
 0x249   :  { %1266 = vmatprep.subr.mxu0 %v6105_v25  ;;  %4757 = vmatpush3.msra.mxu1 %v6108_v26 }
 0x24a   :  { %1267 = vmatpush1.msra.mxu0 %v6111_v27  ;;  %4758 = vmatprep.subr.mxu1 %v7662_v0 }
 0x24b   :  { %1268 = vmatprep.subr.mxu0 %v6115_v28  ;;  %4759 = vmatpush3.msra.mxu1 %v6118_v29 }
 0x24c   :  { %1269 = vmatpush1.msra.mxu0 %v6121_v30  ;;  %4760 = vmatprep.subr.mxu1 %v7662_v0 }
 0x24d   :  { %1270 = vmatprep.subr.mxu0 %v6125_v31  ;;  %4761 = vmatpush3.msra.mxu1 %v6128_v32 }
 0x24e   :  { %1271 = vmatpush1.msra.mxu0 %v6131_v33  ;;  %4762 = vmatprep.subr.mxu1 %v7662_v0 }
 0x24f   :  { %1272 = vmatprep.subr.mxu0 %v6135_v34  ;;  %4763 = vmatpush3.msra.mxu1 %v6138_v35 }
 0x250   :  { %1273 = vmatpush1.msra.mxu0 %v6141_v36  ;;  %4764 = vmatprep.subr.mxu1 %v7662_v0 }
 0x251   :  { %1274 = vmatprep.subr.mxu0 %v6145_v37  ;;  %4765 = vmatpush3.msra.mxu1 %v6148_v38 }
 0x252   :  { %1275 = vmatpush1.msra.mxu0 %v6151_v39  ;;  %4766 = vmatprep.subr.mxu1 %v7662_v0 }
 0x253   :  { %1276 = vmatprep.subr.mxu0 %v6155_v40  ;;  %4767 = vmatpush3.msra.mxu1 %v6158_v41 }
 0x254   :  { %1277 = vmatpush1.msra.mxu0 %v6161_v42  ;;  %4768 = vmatprep.subr.mxu1 %v7662_v0 }
 0x255   :  { %1278 = vmatprep.subr.mxu0 %v6165_v43  ;;  %4769 = vmatpush3.msra.mxu1 %v6168_v44 }
 0x256   :  { %1279 = vmatpush1.msra.mxu0 %v6171_v45  ;;  %4770 = vmatprep.subr.mxu1 %v7662_v0 }
 0x257   :  { %1280 = vmatprep.subr.mxu0 %v6175_v46  ;;  %4771 = vmatpush3.msra.mxu1 %v6178_v47 }
 0x258   :  { %1281 = vmatpush1.msra.mxu0 %v6181_v48  ;;  %4772 = vmatprep.subr.mxu1 %v7662_v0 }
 0x259   :  { %1282 = vmatprep.subr.mxu0 %v6185_v49  ;;  %4773 = vmatpush3.msra.mxu1 %v6188_v50 }
 0x25a   :  { %1283 = vmatpush1.msra.mxu0 %v6191_v51  ;;  %4774 = vmatprep.subr.mxu1 %v7662_v0 }
 0x25b   :  { %1317 = vmatmul.mubr.f32.vlgmr.msra.gmra.mxu0 %v7662_v0  ;;  %4775 = vmatpush3.msra.mxu1 %v6196_v52 }
 0x25c   :  { %4776 = vmatprep.mubr.msk.f32.mxu1 %vm5791_vm0, %v7662_v0  ;;  %1410 = vmatprep.subr.mxu0 %v6041_v4 }
 0x25d   :  { %4777 = vmatmul.mubr.f32.vlgmr.msra.gmra.mxu1 %v7662_v0  ;;  %4779 = vmatprep.subr.mxu1 %v7662_v0 }
 0x25e   :  { %1411 = vmatpush1.msra.mxu0 %v6045_v5  ;;  %4780 = vmatpush3.msra.mxu1 %v6048_v6 }
 0x25f   :  { %1412 = vmatprep.subr.mxu0 %v6050_v8  ;;  %4781 = vmatprep.subr.mxu1 %v7662_v0 }
 0x260   :  { %1413 = vmatpush1.msra.mxu0 %v6052_v9  ;;  %4782 = vmatpush3.msra.mxu1 %v6054_v10 }
 0x261   :  { %1414 = vmatprep.subr.mxu0 %v6057_v11  ;;  %4783 = vmatprep.subr.mxu1 %v7662_v0 }
 0x262   :  { %1415 = vmatpush1.msra.mxu0 %v6061_v12  ;;  %4784 = vmatpush3.msra.mxu1 %v6064_v13 }
 0x263   :  { %1416 = vmatprep.subr.mxu0 %v6067_v14  ;;  %4785 = vmatprep.subr.mxu1 %v7662_v0 }
 0x264   :  { %1417 = vmatpush1.msra.mxu0 %v6071_v15  ;;  %4786 = vmatpush3.msra.mxu1 %v6074_v16 }
 0x265   :  { %1418 = vmatprep.subr.mxu0 %v6077_v17  ;;  %4787 = vmatprep.subr.mxu1 %v7662_v0 }
 0x266   :  { %1419 = vmatpush1.msra.mxu0 %v6081_v18  ;;  %4788 = vmatpush3.msra.mxu1 %v6084_v19 }
 0x267   :  { %1420 = vmatprep.subr.mxu0 %v6087_v20  ;;  %4789 = vmatprep.subr.mxu1 %v7662_v0 }
 0x268   :  { %1421 = vmatpush1.msra.mxu0 %v6091_v21  ;;  %4790 = vmatpush3.msra.mxu1 %v6098_v23 }
 0x269   :  { %1422 = vmatprep.subr.mxu0 %v6095_v22  ;;  %4791 = vmatprep.subr.mxu1 %v7662_v0 }
 0x26a   :  { %1423 = vmatpush1.msra.mxu0 %v6101_v24  ;;  %4792 = vmatpush3.msra.mxu1 %v6108_v26 }
 0x26b   :  { %1424 = vmatprep.subr.mxu0 %v6105_v25  ;;  %4793 = vmatprep.subr.mxu1 %v7662_v0 }
 0x26c   :  { %1425 = vmatpush1.msra.mxu0 %v6111_v27  ;;  %4794 = vmatpush3.msra.mxu1 %v6118_v29 }
 0x26d   :  { %1426 = vmatprep.subr.mxu0 %v6115_v28  ;;  %4795 = vmatprep.subr.mxu1 %v7662_v0 }
 0x26e   :  { %1427 = vmatpush1.msra.mxu0 %v6121_v30  ;;  %4796 = vmatpush3.msra.mxu1 %v6128_v32 }
 0x26f   :  { %1428 = vmatprep.subr.mxu0 %v6125_v31  ;;  %4797 = vmatprep.subr.mxu1 %v7662_v0 }
 0x270   :  { %1429 = vmatpush1.msra.mxu0 %v6131_v33  ;;  %4798 = vmatpush3.msra.mxu1 %v6138_v35 }
 0x271   :  { %1430 = vmatprep.subr.mxu0 %v6135_v34  ;;  %4799 = vmatprep.subr.mxu1 %v7662_v0 }
 0x272   :  { %1431 = vmatpush1.msra.mxu0 %v6141_v36  ;;  %4800 = vmatpush3.msra.mxu1 %v6148_v38 }
 0x273   :  { %1432 = vmatprep.subr.mxu0 %v6145_v37  ;;  %4801 = vmatprep.subr.mxu1 %v7662_v0 }
 0x274   :  { %1433 = vmatpush1.msra.mxu0 %v6151_v39  ;;  %4802 = vmatpush3.msra.mxu1 %v6158_v41 }
 0x275   :  { %1434 = vmatprep.subr.mxu0 %v6155_v40  ;;  %4803 = vmatprep.subr.mxu1 %v7662_v0 }
 0x276   :  { %1435 = vmatpush1.msra.mxu0 %v6161_v42  ;;  %4804 = vmatpush3.msra.mxu1 %v6168_v44 }
 0x277   :  { %1436 = vmatprep.subr.mxu0 %v6165_v43  ;;  %4805 = vmatprep.subr.mxu1 %v7662_v0 }
 0x278   :  { %1437 = vmatpush1.msra.mxu0 %v6171_v45  ;;  %4806 = vmatpush3.msra.mxu1 %v6178_v47 }
 0x279   :  { %1438 = vmatprep.subr.mxu0 %v6175_v46  ;;  %4807 = vmatprep.subr.mxu1 %v7662_v0 }
 0x27a   :  { %1439 = vmatpush1.msra.mxu0 %v6181_v48  ;;  %4808 = vmatpush3.msra.mxu1 %v6188_v50  ;;  %v686_v50 = vld [vmem:[%s7652_s6] sm:$0x7] }
 0x27b   :  { %1440 = vmatprep.subr.mxu0 %v6185_v49  ;;  %4809 = vmatprep.subr.mxu1 %v7662_v0  ;;  %v6285_v49 = vsub.s32 0, %v689_v62 }
 0x27c   :  { %1441 = vmatpush1.msra.mxu0 %v6191_v51  ;;  %1474 = vmatprep.mubr.f32.mxu0 %v7662_v0 }
 0x27d   :  { %4810 = vmatpush3.msra.mxu1 %v6196_v52  ;;  %4811 = vmatprep.mubr.msk.f32.mxu1 %vm5791_vm0, %v7662_v0  ;;  %7730 = vst [vmem:[#allocation29_spill] sm:$0xff] %v6285_v49 }
 0x27e   :  { %1583 = vmatprep.subr.mxu0 %v6041_v4  ;;  %4814 = vmatprep.subr.mxu1 %v7662_v0 }
 0x2db   :  { %v865_v53 = vpop.f32.mrf.mxu0  ;;  %v906_v54 = vpop.f32.mrf.mxu1 }
 0x2dd   :  { %v867_v55 = vpop.f32.mrf.mxu0  ;;  %v4722_v56 = vpop.f32.mrf.mxu1 }
 0x2df   :  { %v869_v57 = vpop.f32.mrf.mxu0  ;;  %v909_v58 = vpop.f32.mrf.mxu1 }
 0x2e1   :  { %v870_v59 = vpop.f32.mrf.mxu0  ;;  %v4723_v60 = vpop.f32.mrf.mxu1 }
 0x2fb   :  { %v6279_v4 = vpop.f32.mrf.mxu0  ;;  %v1175_v0 = vpop.f32.mrf.mxu1 }
 0x2fc   :  { %7727 = vst [vmem:[#allocation26_spill] sm:$0xff] %v6279_v4  ;;  %v6281_v52 = vadd.f32 %v1175_v0, %v968_v3  ;;  %v691_v0 = vrot.slane %v686_v50, %v6285_v49  ;;  %v6295_v3 = vrot.slane %v1235_v63, %v6285_v49 }
 0x2fd   :  { %v1136_v56 = vpop.f32.mrf.mxu0  ;;  %v4742_v57 = vpop.f32.mrf.mxu1 }
 0x2fe   :  { %7728 = vst [vmem:[#allocation27_spill] sm:$0xff] %v6281_v52  ;;  %v6283_v58 = vadd.f32 %v1136_v56, %v964_v7  ;;  %7731 = vst [vmem:[#allocation30_spill] sm:$0xff] %v6295_v3  ;;  %v6297_v56 = vadd.f32 %v865_v53, %v691_v0  ;;  %v6299_v57 = vrot.slane %v1235_v63, %v694_v2 }
 0x2ff   :  { %v1138_v59 = vpop.f32.mrf.mxu0  ;;  %v1178_v60 = vpop.f32.mrf.mxu1  ;;  %v6307_v0 = vrot.slane %v1235_v63, %v698_v1 }
 0x300   :  { %7729 = vst [vmem:[#allocation28_spill] sm:$0xff] %v6283_v58  ;;  %v695_v60 = vrot.slane %v686_v50, %v694_v2 }
 0x301   :  { %v1139_v61 = vpop.f32.mrf.mxu0  ;;  %v4743_v51 = vpop.f32.mrf.mxu1 }
 0x302   :  { %v6304_v48 = vadd.f32 %v867_v55, %v695_v60 }
 0x31b   :  { %v1318_v7 = vpop.f32.mrf.mxu0 }
 0x31c   :  { %v1319_v51 = vadd.f32 %v1318_v7, %v6295_v3  ;;  %v699_v7 = vrot.slane %v686_v50, %v698_v1  ;;  %v7734_v50 = vld [vmem:[#allocation19_spill] sm:$0xff] }
 0x31d   :  { %v1320_v62 = vpop.f32.mrf.mxu0  ;;  %v1389_v59 = vpop.f32.mrf.mxu1  ;;  %v7736_v1 = vld [vmem:[#allocation23_spill] sm:$0xff] }
 0x31e   :  { %v1393_v61 = vadd.f32 %v1319_v51, %v6297_v56  ;;  %v1321_v4 = vadd.f32 %v1320_v62, %v6299_v57  ;;  %v1390_v3 = vadd.f32 %v1389_v59, %v6307_v0  ;;  %v6310_v51 = vadd.f32 %v906_v54, %v699_v7  ;;  %v7735_v54 = vld [vmem:[#allocation21_spill] sm:$0xff]  ;;  %v7738_v59 = vld [vmem:[#allocation24_spill] sm:$0xff] }
 0x31f   :  { %v4778_v52 = vpop.f32.mrf.mxu1  ;;  %v7739_v7 = vld [vmem:[#allocation25_spill] sm:$0xff] }
 0x320   :  { %v1395_v58 = vmul.f32 0.5, %v1393_v61  ;;  %v1394_v49 = vadd.f32 %v1321_v4, %v6304_v48 }
 0x322   :  { %5456 = vtanh.f32 %v1395_v58  ;;  %v1396_v53 = vmul.f32 0.5, %v1394_v49 }
 0x324   :  { %5458 = vtanh.f32 %v1396_v53 }
 0x32f   :  { %v5457_v46 = vpop.eup %5456 }
 0x330   :  { %v1399_v2 = vadd.f32 1.0, %v5457_v46  ;;  %v7732_v46 = vmov 0.0  }
 0x331   :  { %v5459_v55 = vpop.eup %5458 }
 0x332   :  { %v1401_v47 = vmul.f32 0.5, %v1399_v2  ;;  %v1400_v58 = vadd.f32 1.0, %v5459_v55  ;;  %v7740_v2 = vld [vmem:[#allocation18_spill] sm:$0xff] }
 0x333   :  { %v7741_v55 = vld [vmem:[#allocation30_spill] sm:$0xff] }
 0x334   :  { %v1403_v52 = vmul.f32 %v1401_v47, %v1390_v3  ;;  %v1402_v60 = vmul.f32 0.5, %v1400_v58  ;;  %v7733_v47 = vld [vmem:[#allocation20_spill] sm:$0xff]  ;;  %v7737_v3 = vld [vmem:[#allocation22_spill] sm:$0xff] }
 0x336   :  { %v1404_v62 = vadd.f32 %v1403_v52, %v6310_v51  ;;  %v1406_v4 = vsub.f32 1.0, %v1402_v60  ;;  %v1408_v61 = vmul.f32 0.0, %v1402_v60 }
 0x338   :  { %5460 = vtanh.f32 %v1404_v62 }
 0x345   :  { %v5461_v49 = vpop.eup %5460 }
 0x346   :  { %v1407_v63 = vmul.f32 %v5461_v49, %v1406_v4 }
 0x348   :  { %v6313_v53 = vadd.f32 %v1408_v61, %v1407_v63 }
 0x34a   :  { %1475 = vmatmul.mubr.f32.vlgmr.msra.gmra.mxu0 %v6313_v53  ;;  %4812 = vmatmul.mubr.f32.vlgmr.msra.gmra.mxu1 %v6313_v53 }
 0x34b   :  { %1584 = vmatpush1.msra.mxu0 %v6045_v5  ;;  %4815 = vmatpush3.msra.mxu1 %v6048_v6 }
 0x34c   :  { %1585 = vmatprep.subr.mxu0 %v6050_v8  ;;  %4816 = vmatprep.subr.mxu1 %v7732_v46 }
 0x34d   :  { %1586 = vmatpush1.msra.mxu0 %v6052_v9  ;;  %4817 = vmatpush3.msra.mxu1 %v6054_v10 }
 0x34e   :  { %1587 = vmatprep.subr.mxu0 %v6057_v11  ;;  %4818 = vmatprep.subr.mxu1 %v7732_v46 }
 0x34f   :  { %1588 = vmatpush1.msra.mxu0 %v6061_v12  ;;  %4819 = vmatpush3.msra.mxu1 %v6064_v13 }
 0x350   :  { %1589 = vmatprep.subr.mxu0 %v6067_v14  ;;  %4820 = vmatprep.subr.mxu1 %v7732_v46 }
 0x351   :  { %1590 = vmatpush1.msra.mxu0 %v6071_v15  ;;  %4821 = vmatpush3.msra.mxu1 %v6074_v16 }
 0x352   :  { %1591 = vmatprep.subr.mxu0 %v6077_v17  ;;  %4822 = vmatprep.subr.mxu1 %v7732_v46 }
 0x353   :  { %1592 = vmatpush1.msra.mxu0 %v6081_v18  ;;  %4823 = vmatpush3.msra.mxu1 %v6084_v19 }
 0x354   :  { %1593 = vmatprep.subr.mxu0 %v6087_v20  ;;  %4824 = vmatprep.subr.mxu1 %v7732_v46 }
 0x355   :  { %1594 = vmatpush1.msra.mxu0 %v6091_v21  ;;  %4825 = vmatpush3.msra.mxu1 %v6098_v23 }
 0x356   :  { %1595 = vmatprep.subr.mxu0 %v6095_v22  ;;  %4826 = vmatprep.subr.mxu1 %v7732_v46 }
 0x357   :  { %1596 = vmatpush1.msra.mxu0 %v6101_v24  ;;  %4827 = vmatpush3.msra.mxu1 %v6108_v26 }
 0x358   :  { %1597 = vmatprep.subr.mxu0 %v6105_v25  ;;  %4828 = vmatprep.subr.mxu1 %v7732_v46 }
 0x359   :  { %1598 = vmatpush1.msra.mxu0 %v6111_v27  ;;  %4829 = vmatpush3.msra.mxu1 %v6118_v29 }
 0x35a   :  { %1599 = vmatprep.subr.mxu0 %v6115_v28  ;;  %4830 = vmatprep.subr.mxu1 %v7732_v46 }
 0x35b   :  { %1600 = vmatpush1.msra.mxu0 %v6121_v30  ;;  %4831 = vmatpush3.msra.mxu1 %v6128_v32 }
 0x35c   :  { %1601 = vmatprep.subr.mxu0 %v6125_v31  ;;  %4832 = vmatprep.subr.mxu1 %v7732_v46 }
 0x35d   :  { %1602 = vmatpush1.msra.mxu0 %v6131_v33  ;;  %4833 = vmatpush3.msra.mxu1 %v6138_v35 }
 0x35e   :  { %1603 = vmatprep.subr.mxu0 %v6135_v34  ;;  %4834 = vmatprep.subr.mxu1 %v7732_v46 }
 0x35f   :  { %1604 = vmatpush1.msra.mxu0 %v6141_v36  ;;  %4835 = vmatpush3.msra.mxu1 %v6148_v38 }
 0x360   :  { %1605 = vmatprep.subr.mxu0 %v6145_v37  ;;  %4836 = vmatprep.subr.mxu1 %v7732_v46 }
 0x361   :  { %1606 = vmatpush1.msra.mxu0 %v6151_v39  ;;  %4837 = vmatpush3.msra.mxu1 %v6158_v41 }
 0x362   :  { %1607 = vmatprep.subr.mxu0 %v6155_v40  ;;  %4838 = vmatprep.subr.mxu1 %v7732_v46 }
 0x363   :  { %1608 = vmatpush1.msra.mxu0 %v6161_v42  ;;  %4839 = vmatpush3.msra.mxu1 %v6168_v44 }
 0x364   :  { %1609 = vmatprep.subr.mxu0 %v6165_v43  ;;  %4840 = vmatprep.subr.mxu1 %v7732_v46 }
 0x365   :  { %1610 = vmatpush1.msra.mxu0 %v6171_v45  ;;  %4841 = vmatpush3.msra.mxu1 %v7733_v47 }
 0x366   :  { %1611 = vmatprep.subr.mxu0 %v7734_v50  ;;  %4842 = vmatprep.subr.mxu1 %v7732_v46 }
 0x367   :  { %1612 = vmatpush1.msra.mxu0 %v7735_v54  ;;  %4843 = vmatpush3.msra.mxu1 %v7736_v1 }
 0x368   :  { %1613 = vmatprep.subr.mxu0 %v7737_v3  ;;  %4844 = vmatprep.subr.mxu1 %v7732_v46 }
 0x369   :  { %1614 = vmatpush1.msra.mxu0 %v7738_v59  ;;  %1647 = vmatprep.mubr.f32.mxu0 %v7732_v46 }
 0x36a   :  { %4845 = vmatpush3.msra.mxu1 %v7739_v7  ;;  %4846 = vmatprep.mubr.msk.f32.mxu1 %vm5791_vm0, %v7732_v46 }
 0x36b   :  { %1755 = vmatprep.subr.mxu0 %v7740_v2  ;;  %4849 = vmatprep.subr.mxu1 %v7732_v46 }
 0x40a   :  { %v1476_v52 = vpop.f32.mrf.mxu0  ;;  %v1547_v62 = vpop.f32.mrf.mxu1 }
 0x40b   :  { %v1477_v58 = vadd.f32 %v1476_v52, %v7741_v55  ;;  %v1548_v2 = vadd.f32 %v1547_v62, %v6307_v0 }
 0x40c   :  { %v1478_v60 = vpop.f32.mrf.mxu0  ;;  %v4813_v4 = vpop.f32.mrf.mxu1 }
 0x40d   :  { %v1553_v49 = vrot.slane %v1477_v58, 7  ;;  %v1479_v63 = vadd.f32 %v1478_v60, %v6299_v57  ;;  %v1568_v52 = vrot.slane %v1548_v2, 7  ;;  %v7746_v2 = vld [vmem:[#allocation22_spill] sm:$0xff] }
 0x40f   :  { %v1557_v61 = vadd.f32 %v1553_v49, %v6297_v56  ;;  %v1554_v7 = vrot.slane %v1479_v63, 7 }
 0x411   :  { %v1559_v59 = vmul.f32 0.5, %v1557_v61  ;;  %v1558_v3 = vadd.f32 %v1554_v7, %v6304_v48 }
 0x413   :  { %5462 = vtanh.f32 %v1559_v59  ;;  %v1560_v1 = vmul.f32 0.5, %v1558_v3  ;;  %v1576_v59 = vrot.slane %v6313_v53, 7  ;;  %v7742_v53 = vld [vmem:[#allocation20_spill] sm:$0xff] }
 0x415   :  { %5464 = vtanh.f32 %v1560_v1 }
 0x420   :  { %v5463_v54 = vpop.eup %5462 }
 0x421   :  { %v1563_v50 = vadd.f32 1.0, %v5463_v54  ;;  %v7745_v54 = vld [vmem:[#allocation23_spill] sm:$0xff] }
 0x422   :  { %v5465_v60 = vpop.eup %5464 }
 0x423   :  { %v1565_v47 = vmul.f32 0.5, %v1563_v50  ;;  %v1564_v4 = vadd.f32 1.0, %v5465_v60  ;;  %v7744_v50 = vld [vmem:[#allocation21_spill] sm:$0xff] }
 0x425   :  { %v1570_v55 = vmul.f32 %v1568_v52, %v1565_v47  ;;  %v1566_v49 = vmul.f32 0.5, %v1564_v4  ;;  %v7743_v47 = vld [vmem:[#allocation19_spill] sm:$0xff]  ;;  %v7748_v52 = vld [vmem:[#allocation25_spill] sm:$0xff] }
 0x427   :  { %v1571_v58 = vadd.f32 %v1570_v55, %v6310_v51  ;;  %v1573_v61 = vsub.f32 1.0, %v1566_v49  ;;  %v1578_v7 = vmul.f32 %v1576_v59, %v1566_v49  ;;  %v7747_v55 = vld [vmem:[#allocation24_spill] sm:$0xff]  ;;  %v7750_v49 = vld [vmem:[#allocation30_spill] sm:$0xff] }
 0x429   :  { %5466 = vtanh.f32 %v1571_v58  ;;  %v7749_v58 = vld [vmem:[#allocation18_spill] sm:$0xff] }
 0x436   :  { %v5467_v63 = vpop.eup %5466 }
 0x437   :  { %v1574_v3 = vmul.f32 %v5467_v63, %v1573_v61 }
 0x439   :  { %v6391_v1 = vadd.f32 %v1578_v7, %v1574_v3 }
 0x43b   :  { %v1581_v62 = vrot.slane %v6391_v1, 1 }
 0x43d   :  { %1648 = vmatmul.mubr.f32.vlgmr.msra.gmra.mxu0 %v1581_v62  ;;  %4847 = vmatmul.mubr.f32.vlgmr.msra.gmra.mxu1 %v1581_v62 }
 0x43e   :  { %1756 = vmatpush1.msra.mxu0 %v6045_v5  ;;  %4850 = vmatpush3.msra.mxu1 %v6048_v6 }
 0x43f   :  { %1757 = vmatprep.subr.mxu0 %v6050_v8  ;;  %4851 = vmatprep.subr.mxu1 %v7732_v46 }
 0x440   :  { %1758 = vmatpush1.msra.mxu0 %v6052_v9  ;;  %4852 = vmatpush3.msra.mxu1 %v6054_v10 }
 0x441   :  { %1759 = vmatprep.subr.mxu0 %v6057_v11  ;;  %4853 = vmatprep.subr.mxu1 %v7732_v46 }
 0x442   :  { %1760 = vmatpush1.msra.mxu0 %v6061_v12  ;;  %4854 = vmatpush3.msra.mxu1 %v6064_v13 }
 0x443   :  { %1761 = vmatprep.subr.mxu0 %v6067_v14  ;;  %4855 = vmatprep.subr.mxu1 %v7732_v46 }
 0x444   :  { %1762 = vmatpush1.msra.mxu0 %v6071_v15  ;;  %4856 = vmatpush3.msra.mxu1 %v6074_v16 }
 0x445   :  { %1763 = vmatprep.subr.mxu0 %v6077_v17  ;;  %4857 = vmatprep.subr.mxu1 %v7732_v46 }
 0x446   :  { %1764 = vmatpush1.msra.mxu0 %v6081_v18  ;;  %4858 = vmatpush3.msra.mxu1 %v6084_v19 }
 0x447   :  { %1765 = vmatprep.subr.mxu0 %v6087_v20  ;;  %4859 = vmatprep.subr.mxu1 %v7732_v46 }
 0x448   :  { %1766 = vmatpush1.msra.mxu0 %v6091_v21  ;;  %4860 = vmatpush3.msra.mxu1 %v6098_v23 }
 0x449   :  { %1767 = vmatprep.subr.mxu0 %v6095_v22  ;;  %4861 = vmatprep.subr.mxu1 %v7732_v46 }
 0x44a   :  { %1768 = vmatpush1.msra.mxu0 %v6101_v24  ;;  %4862 = vmatpush3.msra.mxu1 %v6108_v26 }
 0x44b   :  { %1769 = vmatprep.subr.mxu0 %v6105_v25  ;;  %4863 = vmatprep.subr.mxu1 %v7732_v46 }
 0x44c   :  { %1770 = vmatpush1.msra.mxu0 %v6111_v27  ;;  %4864 = vmatpush3.msra.mxu1 %v6118_v29 }
 0x44d   :  { %1771 = vmatprep.subr.mxu0 %v6115_v28  ;;  %4865 = vmatprep.subr.mxu1 %v7732_v46 }
 0x44e   :  { %1772 = vmatpush1.msra.mxu0 %v6121_v30  ;;  %4866 = vmatpush3.msra.mxu1 %v6128_v32 }
 0x44f   :  { %1773 = vmatprep.subr.mxu0 %v6125_v31  ;;  %4867 = vmatprep.subr.mxu1 %v7732_v46 }
 0x450   :  { %1774 = vmatpush1.msra.mxu0 %v6131_v33  ;;  %4868 = vmatpush3.msra.mxu1 %v6138_v35 }
 0x451   :  { %1775 = vmatprep.subr.mxu0 %v6135_v34  ;;  %4869 = vmatprep.subr.mxu1 %v7732_v46 }
 0x452   :  { %1776 = vmatpush1.msra.mxu0 %v6141_v36  ;;  %4870 = vmatpush3.msra.mxu1 %v6148_v38 }
 0x453   :  { %1777 = vmatprep.subr.mxu0 %v6145_v37  ;;  %4871 = vmatprep.subr.mxu1 %v7732_v46 }
 0x454   :  { %1778 = vmatpush1.msra.mxu0 %v6151_v39  ;;  %4872 = vmatpush3.msra.mxu1 %v6158_v41 }
 0x455   :  { %1779 = vmatprep.subr.mxu0 %v6155_v40  ;;  %4873 = vmatprep.subr.mxu1 %v7732_v46 }
 0x456   :  { %1780 = vmatpush1.msra.mxu0 %v6161_v42  ;;  %4874 = vmatpush3.msra.mxu1 %v6168_v44 }
 0x457   :  { %1781 = vmatprep.subr.mxu0 %v6165_v43  ;;  %4875 = vmatprep.subr.mxu1 %v7732_v46 }
 0x458   :  { %1782 = vmatpush1.msra.mxu0 %v6171_v45  ;;  %4876 = vmatpush3.msra.mxu1 %v7742_v53 }
 0x459   :  { %1783 = vmatprep.subr.mxu0 %v7743_v47  ;;  %4877 = vmatprep.subr.mxu1 %v7732_v46 }
 0x45a   :  { %1784 = vmatpush1.msra.mxu0 %v7744_v50  ;;  %4878 = vmatpush3.msra.mxu1 %v7745_v54 }
 0x45b   :  { %1785 = vmatprep.subr.mxu0 %v7746_v2  ;;  %4879 = vmatprep.subr.mxu1 %v7732_v46 }
 0x45c   :  { %1786 = vmatpush1.msra.mxu0 %v7747_v55  ;;  %1819 = vmatprep.mubr.f32.mxu0 %v7732_v46 }
 0x45d   :  { %4880 = vmatpush3.msra.mxu1 %v7748_v52  ;;  %4881 = vmatprep.mubr.msk.f32.mxu1 %vm5791_vm0, %v7732_v46 }
 0x45e   :  { %1927 = vmatprep.subr.mxu0 %v7749_v58  ;;  %4884 = vmatprep.subr.mxu1 %v7732_v46 }
 0x4fd   :  { %v1649_v60 = vpop.f32.mrf.mxu0  ;;  %v1720_v4 = vpop.f32.mrf.mxu1 }
 0x4fe   :  { %v1650_v61 = vadd.f32 %v1649_v60, %v7750_v49  ;;  %v1721_v58 = vadd.f32 %v1720_v4, %v6307_v0 }
 0x4ff   :  { %v1651_v59 = vpop.f32.mrf.mxu0  ;;  %v4848_v63 = vpop.f32.mrf.mxu1 }
 0x500   :  { %v1726_v7 = vrot.slane %v1650_v61, 6  ;;  %v1652_v3 = vadd.f32 %v1651_v59, %v6299_v57  ;;  %v1741_v60 = vrot.slane %v1721_v58, 6  ;;  %v6573_v58 = vld [vmem:[#allocation9 + $0x148] sm:$0xff] }
 0x502   :  { %v1730_v62 = vadd.f32 %v1726_v7, %v6297_v56  ;;  %v1727_v52 = vrot.slane %v1652_v3, 6  ;;  %v1748_v3 = vrot.slane %v6391_v1, 7  ;;  %v6556_v1 = vld [vmem:[#allocation9 + $0x158] sm:$0xff] }
 0x504   :  { %v1732_v55 = vmul.f32 0.5, %v1730_v62  ;;  %v1731_v2 = vadd.f32 %v1727_v52, %v6304_v48 }
 0x506   :  { %5468 = vtanh.f32 %v1732_v55  ;;  %v1733_v54 = vmul.f32 0.5, %v1731_v2 }
 0x508   :  { %5470 = vtanh.f32 %v1733_v54 }
 0x513   :  { %v5469_v50 = vpop.eup %5468 }
 0x514   :  { %v1736_v47 = vadd.f32 1.0, %v5469_v50  ;;  %v6566_v50 = vld [vmem:[#allocation9 + $0x140] sm:$0xff] }
 0x515   :  { %v5471_v59 = vpop.eup %5470 }
 0x516   :  { %v1738_v53 = vmul.f32 0.5, %v1736_v47  ;;  %v1737_v63 = vadd.f32 1.0, %v5471_v59  ;;  %v6563_v47 = vld [vmem:[#allocation9 + $0x160] sm:$0xff]  ;;  %v6583_v59 = vld [vmem:[#allocation9 + $0x130] sm:$0xff] }
 0x518   :  { %v1743_v49 = vmul.f32 %v1741_v60, %v1738_v53  ;;  %v1739_v7 = vmul.f32 0.5, %v1737_v63  ;;  %v6560_v53 = vld [vmem:[#allocation9 + $0x150] sm:$0xff]  ;;  %v6576_v60 = vld [vmem:[#allocation9 + $0x128] sm:$0xff] }
 0x519   :  { %v6586_v63 = vld [vmem:[#allocation9 + $0x110] sm:$0xff] }
 0x51a   :  { %v1744_v61 = vadd.f32 %v1743_v49, %v6310_v51  ;;  %v1746_v55 = vsub.f32 1.0, %v1739_v7  ;;  %v1750_v52 = vmul.f32 %v1748_v3, %v1739_v7  ;;  %v6570_v49 = vld [vmem:[#allocation9 + $0x138] sm:$0xff]  ;;  %v6590_v7 = vld [vmem:[#allocation9 + $0x108] sm:$0xff] }
 0x51b   :  { %v6593_v3 = vld [vmem:[#allocation9 + $0x118] sm:$0xff] }
 0x51c   :  { %5472 = vtanh.f32 %v1744_v61  ;;  %v6580_v61 = vld [vmem:[#allocation9 + $0x120] sm:$0xff] }
 0x529   :  { %v5473_v62 = vpop.eup %5472 }
 0x52a   :  { %v1747_v2 = vmul.f32 %v5473_v62, %v1746_v55  ;;  %v6596_v55 = vld [vmem:[#allocation9 + $0xf8] sm:$0xff]  ;;  %v6600_v62 = vld [vmem:[#allocation9 + $0xf0] sm:$0xff] }
 0x52c   :  { %v6468_v54 = vadd.f32 %v1750_v52, %v1747_v2  ;;  %v6603_v52 = vld [vmem:[#allocation9 + $0x100] sm:$0xff] }
 0x52d   :  { %v6606_v2 = vld [vmem:[#allocation9 + $0xe0] sm:$0xff] }
 0x52e   :  { %v1753_v4 = vrot.slane %v6468_v54, 2 }
 0x530   :  { %1820 = vmatmul.mubr.f32.vlgmr.msra.gmra.mxu0 %v1753_v4  ;;  %4882 = vmatmul.mubr.f32.vlgmr.msra.gmra.mxu1 %v1753_v4  ;;  %v6613_v4 = vld [vmem:[#allocation9 + $0xe8] sm:$0xff] }
 0x531   :  { %1928 = vmatpush1.msra.mxu0 %v6045_v5  ;;  %4885 = vmatpush3.msra.mxu1 %v6048_v6  ;;  %v7751_v5 = vld [vmem:[#allocation20_spill] sm:$0xff]  ;;  %v7752_v6 = vld [vmem:[#allocation19_spill] sm:$0xff] }
 0x532   :  { %1929 = vmatprep.subr.mxu0 %v6050_v8  ;;  %4886 = vmatprep.subr.mxu1 %v7732_v46  ;;  %v7753_v8 = vld [vmem:[#allocation21_spill] sm:$0xff] }
 0x533   :  { %1930 = vmatpush1.msra.mxu0 %v6052_v9  ;;  %4887 = vmatpush3.msra.mxu1 %v6054_v10  ;;  %v7754_v9 = vld [vmem:[#allocation23_spill] sm:$0xff]  ;;  %v7755_v10 = vld [vmem:[#allocation22_spill] sm:$0xff] }
 0x534   :  { %1931 = vmatprep.subr.mxu0 %v6057_v11  ;;  %4888 = vmatprep.subr.mxu1 %v7732_v46  ;;  %v7756_v11 = vld [vmem:[#allocation24_spill] sm:$0xff] }
 0x535   :  { %1932 = vmatpush1.msra.mxu0 %v6061_v12  ;;  %4889 = vmatpush3.msra.mxu1 %v6064_v13  ;;  %v7757_v12 = vld [vmem:[#allocation25_spill] sm:$0xff]  ;;  %v6536_v13 = vld [vmem:[#allocation9 + $0x170] sm:$0xff] }
 0x536   :  { %1933 = vmatprep.subr.mxu0 %v6067_v14  ;;  %4890 = vmatprep.subr.mxu1 %v7732_v46  ;;  %7758 = vst [vmem:[#allocation18_spill] sm:$0xff] %v6536_v13 }
 0x537   :  { %1934 = vmatpush1.msra.mxu0 %v6071_v15  ;;  %4891 = vmatpush3.msra.mxu1 %v6074_v16  ;;  %v7759_v16 = vld [vmem:[#allocation30_spill] sm:$0xff] }
 0x538   :  { %1935 = vmatprep.subr.mxu0 %v6077_v17  ;;  %4892 = vmatprep.subr.mxu1 %v7732_v46 }
 0x539   :  { %1936 = vmatpush1.msra.mxu0 %v6081_v18  ;;  %4893 = vmatpush3.msra.mxu1 %v6084_v19 }
 0x53a   :  { %1937 = vmatprep.subr.mxu0 %v6087_v20  ;;  %4894 = vmatprep.subr.mxu1 %v7732_v46 }
 0x53b   :  { %1938 = vmatpush1.msra.mxu0 %v6091_v21  ;;  %4895 = vmatpush3.msra.mxu1 %v6098_v23 }
 0x53c   :  { %1939 = vmatprep.subr.mxu0 %v6095_v22  ;;  %4896 = vmatprep.subr.mxu1 %v7732_v46 }
 0x53d   :  { %1940 = vmatpush1.msra.mxu0 %v6101_v24  ;;  %4897 = vmatpush3.msra.mxu1 %v6108_v26 }
 0x53e   :  { %1941 = vmatprep.subr.mxu0 %v6105_v25  ;;  %4898 = vmatprep.subr.mxu1 %v7732_v46 }
 0x53f   :  { %1942 = vmatpush1.msra.mxu0 %v6111_v27  ;;  %4899 = vmatpush3.msra.mxu1 %v6118_v29 }
 0x540   :  { %1943 = vmatprep.subr.mxu0 %v6115_v28  ;;  %4900 = vmatprep.subr.mxu1 %v7732_v46 }
 0x541   :  { %1944 = vmatpush1.msra.mxu0 %v6121_v30  ;;  %4901 = vmatpush3.msra.mxu1 %v6128_v32 }
 0x542   :  { %1945 = vmatprep.subr.mxu0 %v6125_v31  ;;  %4902 = vmatprep.subr.mxu1 %v7732_v46 }
 0x543   :  { %1946 = vmatpush1.msra.mxu0 %v6131_v33  ;;  %4903 = vmatpush3.msra.mxu1 %v6138_v35 }
 0x544   :  { %1947 = vmatprep.subr.mxu0 %v6135_v34  ;;  %4904 = vmatprep.subr.mxu1 %v7732_v46 }
 0x545   :  { %1948 = vmatpush1.msra.mxu0 %v6141_v36  ;;  %4905 = vmatpush3.msra.mxu1 %v6148_v38 }
 0x546   :  { %1949 = vmatprep.subr.mxu0 %v6145_v37  ;;  %4906 = vmatprep.subr.mxu1 %v7732_v46  ;;  %v1920_v37 = vrot.slane %v6468_v54, 7  ;;  %v6610_v54 = vld [vmem:[#allocation9 + $0xd8] sm:$0xff] }
 0x547   :  { %1950 = vmatpush1.msra.mxu0 %v6151_v39  ;;  %4907 = vmatpush3.msra.mxu1 %v6158_v41 }
 0x548   :  { %1951 = vmatprep.subr.mxu0 %v6155_v40  ;;  %4908 = vmatprep.subr.mxu1 %v7732_v46 }
 0x549   :  { %1952 = vmatpush1.msra.mxu0 %v6161_v42  ;;  %4909 = vmatpush3.msra.mxu1 %v6168_v44  ;;  %v6550_v44 = vld [vmem:[#allocation9 + $0x168] sm:$0xff] }
 0x54a   :  { %1953 = vmatprep.subr.mxu0 %v6165_v43  ;;  %4910 = vmatprep.subr.mxu1 %v7732_v46 }
 0x54b   :  { %1954 = vmatpush1.msra.mxu0 %v6171_v45  ;;  %4911 = vmatpush3.msra.mxu1 %v7751_v5  ;;  %v6553_v45 = vld [vmem:[#allocation9 + $0x178] sm:$0xff] }
 0x54c   :  { %1955 = vmatprep.subr.mxu0 %v7752_v6  ;;  %4912 = vmatprep.subr.mxu1 %v7732_v46  ;;  %v6616_v6 = vld [vmem:[#allocation9 + $0xc8] sm:$0xff] }
 0x54d   :  { %1956 = vmatpush1.msra.mxu0 %v7753_v8  ;;  %4913 = vmatpush3.msra.mxu1 %v7754_v9 }
 0x54e   :  { %1957 = vmatprep.subr.mxu0 %v7755_v10  ;;  %4914 = vmatprep.subr.mxu1 %v7732_v46 }
 0x54f   :  { %1958 = vmatpush1.msra.mxu0 %v7756_v11  ;;  %1991 = vmatprep.mubr.f32.mxu0 %v7732_v46 }
 0x550   :  { %4915 = vmatpush3.msra.mxu1 %v7757_v12  ;;  %4916 = vmatprep.mubr.msk.f32.mxu1 %vm5791_vm0, %v7732_v46 }
 0x551   :  { %2099 = vmatprep.subr.mxu0 %v6536_v13  ;;  %4919 = vmatprep.subr.mxu1 %v7732_v46 }
 0x5f0   :  { %v1821_v14 = vpop.f32.mrf.mxu0  ;;  %v1892_v15 = vpop.f32.mrf.mxu1 }
 0x5f1   :  { %v1822_v17 = vadd.f32 %v1821_v14, %v7759_v16  ;;  %v1893_v27 = vadd.f32 %v1892_v15, %v6307_v0  ;;  %v6620_v14 = vld [vmem:[#allocation9 + $0xc0] sm:$0xff]  ;;  %v6623_v15 = vld [vmem:[#allocation9 + $0xd0] sm:$0xff] }
 0x5f2   :  { %v1823_v18 = vpop.f32.mrf.mxu0  ;;  %v4883_v19 = vpop.f32.mrf.mxu1 }
 0x5f3   :  { %v1898_v20 = vrot.slane %v1822_v17, 5  ;;  %v1824_v21 = vadd.f32 %v1823_v18, %v6299_v57  ;;  %v1913_v31 = vrot.slane %v1893_v27, 5  ;;  %v6626_v17 = vld [vmem:[#allocation9 + $0xb0] sm:$0xff]  ;;  %v6630_v18 = vld [vmem:[#allocation9 + $0xa8] sm:$0xff]  ;;  %v6633_v19 = vld [vmem:[#allocation9 + $0xb8] sm:$0xff] }
 0x5f4   :  { %v6660_v27 = vld [vmem:[#allocation9 + $0x60] sm:$0xff] }
 0x5f5   :  { %v1902_v22 = vadd.f32 %v1898_v20, %v6297_v56  ;;  %v1899_v24 = vrot.slane %v1824_v21, 5  ;;  %v6636_v20 = vld [vmem:[#allocation9 + $0x98] sm:$0xff]  ;;  %v6640_v21 = vld [vmem:[#allocation9 + $0x90] sm:$0xff] }
 0x5f7   :  { %v1904_v23 = vmul.f32 0.5, %v1902_v22  ;;  %v1903_v25 = vadd.f32 %v1899_v24, %v6304_v48  ;;  %v6643_v22 = vld [vmem:[#allocation9 + $0xa0] sm:$0xff]  ;;  %v6650_v24 = vld [vmem:[#allocation9 + $0x78] sm:$0xff] }
 0x5f9   :  { %5474 = vtanh.f32 %v1904_v23  ;;  %v1905_v26 = vmul.f32 0.5, %v1903_v25  ;;  %v6646_v23 = vld [vmem:[#allocation9 + $0x80] sm:$0xff]  ;;  %v6653_v25 = vld [vmem:[#allocation9 + $0x88] sm:$0xff] }
 0x5fb   :  { %5476 = vtanh.f32 %v1905_v26  ;;  %v6656_v26 = vld [vmem:[#allocation9 + $0x68] sm:$0xff] }
 0x606   :  { %v5475_v28 = vpop.eup %5474 }
 0x607   :  { %v1908_v29 = vadd.f32 1.0, %v5475_v28  ;;  %v6663_v28 = vld [vmem:[#allocation9 + $0x70] sm:$0xff] }
 0x608   :  { %v5477_v34 = vpop.eup %5476 }
 0x609   :  { %v1910_v30 = vmul.f32 0.5, %v1908_v29  ;;  %v1909_v35 = vadd.f32 1.0, %v5477_v34  ;;  %v6666_v29 = vld [vmem:[#allocation9 + $0x50] sm:$0xff]  ;;  %v6684_v34 = vld [vmem:[#allocation9 + $0x20] sm:$0xff] }
 0x60a   :  { %7760 = vst [vmem:[#allocation20_spill] sm:$0xff] %v6684_v34 }
 0x60b   :  { %v1915_v32 = vmul.f32 %v1913_v31, %v1910_v30  ;;  %v1911_v36 = vmul.f32 0.5, %v1909_v35  ;;  %v6670_v30 = vld [vmem:[#allocation9 + $0x48] sm:$0xff]  ;;  %v6673_v31 = vld [vmem:[#allocation9 + $0x58] sm:$0xff] }
 0x60d   :  { %v1916_v33 = vadd.f32 %v1915_v32, %v6310_v51  ;;  %v1918_v38 = vsub.f32 1.0, %v1911_v36  ;;  %v1922_v40 = vmul.f32 %v1920_v37, %v1911_v36  ;;  %v6676_v32 = vld [vmem:[#allocation9 + $0x38] sm:$0xff] }
 0x60f   :  { %5478 = vtanh.f32 %v1916_v33  ;;  %v6680_v33 = vld [vmem:[#allocation9 + $0x30] sm:$0xff] }
 0x61c   :  { %v5479_v39 = vpop.eup %5478 }
 0x61d   :  { %v1919_v41 = vmul.f32 %v5479_v39, %v1918_v38 }
 0x61f   :  { %v6547_v42 = vadd.f32 %v1922_v40, %v1919_v41 }
 0x621   :  { %v1925_v43 = vrot.slane %v6547_v42, 3 }
 0x623   :  { %1992 = vmatmul.mubr.f32.vlgmr.msra.gmra.mxu0 %v1925_v43  ;;  %4917 = vmatmul.mubr.f32.vlgmr.msra.gmra.mxu1 %v1925_v43 }
 0x624   :  { %2100 = vmatpush1.msra.mxu0 %v6550_v44  ;;  %4920 = vmatpush3.msra.mxu1 %v6553_v45 }
 0x625   :  { %2101 = vmatprep.subr.mxu0 %v6556_v1  ;;  %4921 = vmatprep.subr.mxu1 %v7732_v46 }
 0x626   :  { %2102 = vmatpush1.msra.mxu0 %v6560_v53  ;;  %4922 = vmatpush3.msra.mxu1 %v6563_v47 }
 0x627   :  { %2103 = vmatprep.subr.mxu0 %v6566_v50  ;;  %4923 = vmatprep.subr.mxu1 %v7732_v46 }
 0x628   :  { %2104 = vmatpush1.msra.mxu0 %v6570_v49  ;;  %4924 = vmatpush3.msra.mxu1 %v6573_v58 }
 0x629   :  { %2105 = vmatprep.subr.mxu0 %v6576_v60  ;;  %4925 = vmatprep.subr.mxu1 %v7732_v46 }
 0x62a   :  { %2106 = vmatpush1.msra.mxu0 %v6580_v61  ;;  %4926 = vmatpush3.msra.mxu1 %v6583_v59 }
 0x62b   :  { %2107 = vmatprep.subr.mxu0 %v6586_v63  ;;  %4927 = vmatprep.subr.mxu1 %v7732_v46 }
 0x62c   :  { %2108 = vmatpush1.msra.mxu0 %v6590_v7  ;;  %4928 = vmatpush3.msra.mxu1 %v6593_v3 }
 0x62d   :  { %2109 = vmatprep.subr.mxu0 %v6596_v55  ;;  %4929 = vmatprep.subr.mxu1 %v7732_v46 }
 0x62e   :  { %2110 = vmatpush1.msra.mxu0 %v6600_v62  ;;  %4930 = vmatpush3.msra.mxu1 %v6603_v52 }
 0x62f   :  { %2111 = vmatprep.subr.mxu0 %v6606_v2  ;;  %4931 = vmatprep.subr.mxu1 %v7732_v46 }
 0x630   :  { %2112 = vmatpush1.msra.mxu0 %v6610_v54  ;;  %4932 = vmatpush3.msra.mxu1 %v6613_v4 }
 0x631   :  { %2113 = vmatprep.subr.mxu0 %v6616_v6  ;;  %4933 = vmatprep.subr.mxu1 %v7732_v46 }
 0x632   :  { %2114 = vmatpush1.msra.mxu0 %v6620_v14  ;;  %4934 = vmatpush3.msra.mxu1 %v6623_v15 }
 0x633   :  { %2115 = vmatprep.subr.mxu0 %v6626_v17  ;;  %4935 = vmatprep.subr.mxu1 %v7732_v46 }
 0x634   :  { %2116 = vmatpush1.msra.mxu0 %v6630_v18  ;;  %4936 = vmatpush3.msra.mxu1 %v6633_v19 }
 0x635   :  { %2117 = vmatprep.subr.mxu0 %v6636_v20  ;;  %4937 = vmatprep.subr.mxu1 %v7732_v46 }
 0x636   :  { %2118 = vmatpush1.msra.mxu0 %v6640_v21  ;;  %4938 = vmatpush3.msra.mxu1 %v6643_v22 }
 0x637   :  { %2119 = vmatprep.subr.mxu0 %v6646_v23  ;;  %4939 = vmatprep.subr.mxu1 %v7732_v46 }
 0x638   :  { %2120 = vmatpush1.msra.mxu0 %v6650_v24  ;;  %4940 = vmatpush3.msra.mxu1 %v6653_v25 }
 0x639   :  { %2121 = vmatprep.subr.mxu0 %v6656_v26  ;;  %4941 = vmatprep.subr.mxu1 %v7732_v46 }
 0x63a   :  { %2122 = vmatpush1.msra.mxu0 %v6660_v27  ;;  %4942 = vmatpush3.msra.mxu1 %v6663_v28 }
 0x63b   :  { %2123 = vmatprep.subr.mxu0 %v6666_v29  ;;  %4943 = vmatprep.subr.mxu1 %v7732_v46 }
 0x63c   :  { %2124 = vmatpush1.msra.mxu0 %v6670_v30  ;;  %4944 = vmatpush3.msra.mxu1 %v6673_v31 }
 0x63d   :  { %2125 = vmatprep.subr.mxu0 %v6676_v32  ;;  %4945 = vmatprep.subr.mxu1 %v7732_v46 }
 0x63e   :  { %2126 = vmatpush1.msra.mxu0 %v6680_v33  ;;  %4946 = vmatpush3.msra.mxu1 %v7751_v5 }
 0x63f   :  { %2127 = vmatprep.subr.mxu0 %v6684_v34  ;;  %4947 = vmatprep.subr.mxu1 %v7732_v46 }
 0x640   :  { %2128 = vmatpush1.msra.mxu0 %v7753_v8  ;;  %4948 = vmatpush3.msra.mxu1 %v7754_v9 }
 0x641   :  { %2129 = vmatprep.subr.mxu0 %v7755_v10  ;;  %4949 = vmatprep.subr.mxu1 %v7732_v46 }
 0x642   :  { %2130 = vmatpush1.msra.mxu0 %v7756_v11  ;;  %2163 = vmatprep.mubr.f32.mxu0 %v7732_v46 }
 0x643   :  { %4950 = vmatpush3.msra.mxu1 %v7757_v12  ;;  %4951 = vmatprep.mubr.msk.f32.mxu1 %vm5791_vm0, %v7732_v46 }
 0x644   :  { %2271 = vmatprep.subr.mxu0 %v6536_v13  ;;  %4954 = vmatprep.subr.mxu1 %v7732_v46 }
 0x6e3   :  { %v1993_v5 = vpop.f32.mrf.mxu0  ;;  %v2064_v8 = vpop.f32.mrf.mxu1 }
 0x6e4   :  { %v1994_v9 = vadd.f32 %v1993_v5, %v7759_v16  ;;  %v2065_v41 = vadd.f32 %v2064_v8, %v6307_v0 }
 0x6e5   :  { %v1995_v10 = vpop.f32.mrf.mxu0  ;;  %v4918_v35 = vpop.f32.mrf.mxu1 }
 0x6e6   :  { %v2070_v36 = vrot.slane %v1994_v9, 4  ;;  %v1996_v11 = vadd.f32 %v1995_v10, %v6299_v57  ;;  %v2085_v5 = vrot.slane %v2065_v41, 4  ;;  %v6773_v41 = vld [vmem:[#allocation9 + $0x8] sm:$0xff] }
 0x6e7   :  { %7765 = vst [vmem:[#allocation22_spill] sm:$0xff] %v6773_v41 }
 0x6e8   :  { %v2074_v37 = vadd.f32 %v2070_v36, %v6297_v56  ;;  %v2071_v12 = vrot.slane %v1996_v11, 4  ;;  %v2092_v11 = vrot.slane %v6547_v42, 7  ;;  %v6767_v42 = vld [vmem:[#allocation9 + $0x18] sm:$0xff] }
 0x6e9   :  { %7763 = vst [vmem:[#allocation21_spill] sm:$0xff] %v6767_v42 }
 0x6ea   :  { %v2076_v38 = vmul.f32 0.5, %v2074_v37  ;;  %v2075_v39 = vadd.f32 %v2071_v12, %v6304_v48 }
 0x6ec   :  { %5480 = vtanh.f32 %v2076_v38  ;;  %v2077_v40 = vmul.f32 0.5, %v2075_v39 }
 0x6ee   :  { %5482 = vtanh.f32 %v2077_v40 }
 0x6f9   :  { %v5481_v43 = vpop.eup %5480 }
 0x6fa   :  { %v2080_v13 = vadd.f32 1.0, %v5481_v43  ;;  %v6777_v43 = vld [vmem:[#allocation9] sm:$0xff] }
 0x6fb   :  { %v5483_v10 = vpop.eup %5482  ;;  %7766 = vst [vmem:[#allocation24_spill] sm:$0xff] %v6777_v43 }
 0x6fc   :  { %v2082_v34 = vmul.f32 0.5, %v2080_v13  ;;  %v2081_v35 = vadd.f32 1.0, %v5483_v10  ;;  %v6762_v13 = vld [vmem:[#allocation9 + $0x40] sm:$0xff] }
 0x6fd   :  { %7761 = vst [vmem:[#allocation19_spill] sm:$0xff] %v6762_v13 }
 0x6fe   :  { %v2087_v16 = vmul.f32 %v2085_v5, %v2082_v34  ;;  %v2083_v36 = vmul.f32 0.5, %v2081_v35  ;;  %v6770_v34 = vld [vmem:[#allocation9 + $0x28] sm:$0xff]  ;;  %v6781_v5 = vld [vmem:[#allocation9 + $0x10] sm:$0xff] }
 0x6ff   :  { %7764 = vst [vmem:[#allocation23_spill] sm:$0xff] %v6770_v34  ;;  %7767 = vst [vmem:[#allocation25_spill] sm:$0xff] %v6781_v5 }
 0x700   :  { %v2088_v9 = vadd.f32 %v2087_v16, %v6310_v51  ;;  %v2090_v37 = vsub.f32 1.0, %v2083_v36  ;;  %v2094_v12 = vmul.f32 %v2092_v11, %v2083_v36  ;;  %v7762_v16 = vld [vmem:[#allocation20_spill] sm:$0xff]  ;;  %v7769_v36 = vld [vmem:[#allocation30_spill] sm:$0xff] }
 0x702   :  { %5484 = vtanh.f32 %v2088_v9  ;;  %v7768_v9 = vld [vmem:[#allocation18_spill] sm:$0xff] }
 0x70f   :  { %v5485_v38 = vpop.eup %5484 }
 0x710   :  { %v2091_v39 = vmul.f32 %v5485_v38, %v2090_v37 }
 0x712   :  { %v6706_v40 = vadd.f32 %v2094_v12, %v2091_v39 }
 0x714   :  { %v2097_v8 = vrot.slane %v6706_v40, 4 }
 0x716   :  { %2164 = vmatmul.mubr.f32.vlgmr.msra.gmra.mxu0 %v2097_v8  ;;  %4952 = vmatmul.mubr.f32.vlgmr.msra.gmra.mxu1 %v2097_v8 }
 0x717   :  { %2272 = vmatpush1.msra.mxu0 %v6550_v44  ;;  %4955 = vmatpush3.msra.mxu1 %v6553_v45 }
 0x718   :  { %2273 = vmatprep.subr.mxu0 %v6556_v1  ;;  %4956 = vmatprep.subr.mxu1 %v7732_v46 }
 0x719   :  { %2274 = vmatpush1.msra.mxu0 %v6560_v53  ;;  %4957 = vmatpush3.msra.mxu1 %v6563_v47 }
 0x71a   :  { %2275 = vmatprep.subr.mxu0 %v6566_v50  ;;  %4958 = vmatprep.subr.mxu1 %v7732_v46 }
 0x71b   :  { %2276 = vmatpush1.msra.mxu0 %v6570_v49  ;;  %4959 = vmatpush3.msra.mxu1 %v6573_v58 }
 0x71c   :  { %2277 = vmatprep.subr.mxu0 %v6576_v60  ;;  %4960 = vmatprep.subr.mxu1 %v7732_v46 }
 0x71d   :  { %2278 = vmatpush1.msra.mxu0 %v6580_v61  ;;  %4961 = vmatpush3.msra.mxu1 %v6583_v59 }
 0x71e   :  { %2279 = vmatprep.subr.mxu0 %v6586_v63  ;;  %4962 = vmatprep.subr.mxu1 %v7732_v46 }
 0x71f   :  { %2280 = vmatpush1.msra.mxu0 %v6590_v7  ;;  %4963 = vmatpush3.msra.mxu1 %v6593_v3 }
 0x720   :  { %2281 = vmatprep.subr.mxu0 %v6596_v55  ;;  %4964 = vmatprep.subr.mxu1 %v7732_v46 }
 0x721   :  { %2282 = vmatpush1.msra.mxu0 %v6600_v62  ;;  %4965 = vmatpush3.msra.mxu1 %v6603_v52 }
 0x722   :  { %2283 = vmatprep.subr.mxu0 %v6606_v2  ;;  %4966 = vmatprep.subr.mxu1 %v7732_v46 }
 0x723   :  { %2284 = vmatpush1.msra.mxu0 %v6610_v54  ;;  %4967 = vmatpush3.msra.mxu1 %v6613_v4 }
 0x724   :  { %2285 = vmatprep.subr.mxu0 %v6616_v6  ;;  %4968 = vmatprep.subr.mxu1 %v7732_v46 }
 0x725   :  { %2286 = vmatpush1.msra.mxu0 %v6620_v14  ;;  %4969 = vmatpush3.msra.mxu1 %v6623_v15 }
 0x726   :  { %2287 = vmatprep.subr.mxu0 %v6626_v17  ;;  %4970 = vmatprep.subr.mxu1 %v7732_v46 }
 0x727   :  { %2288 = vmatpush1.msra.mxu0 %v6630_v18  ;;  %4971 = vmatpush3.msra.mxu1 %v6633_v19 }
 0x728   :  { %2289 = vmatprep.subr.mxu0 %v6636_v20  ;;  %4972 = vmatprep.subr.mxu1 %v7732_v46 }
 0x729   :  { %2290 = vmatpush1.msra.mxu0 %v6640_v21  ;;  %4973 = vmatpush3.msra.mxu1 %v6643_v22 }
 0x72a   :  { %2291 = vmatprep.subr.mxu0 %v6646_v23  ;;  %4974 = vmatprep.subr.mxu1 %v7732_v46 }
 0x72b   :  { %2292 = vmatpush1.msra.mxu0 %v6650_v24  ;;  %4975 = vmatpush3.msra.mxu1 %v6653_v25 }
 0x72c   :  { %2293 = vmatprep.subr.mxu0 %v6656_v26  ;;  %4976 = vmatprep.subr.mxu1 %v7732_v46 }
 0x72d   :  { %2294 = vmatpush1.msra.mxu0 %v6660_v27  ;;  %4977 = vmatpush3.msra.mxu1 %v6663_v28 }
 0x72e   :  { %2295 = vmatprep.subr.mxu0 %v6666_v29  ;;  %4978 = vmatprep.subr.mxu1 %v7732_v46 }
 0x72f   :  { %2296 = vmatpush1.msra.mxu0 %v6670_v30  ;;  %4979 = vmatpush3.msra.mxu1 %v6673_v31 }
 0x730   :  { %2297 = vmatprep.subr.mxu0 %v6676_v32  ;;  %4980 = vmatprep.subr.mxu1 %v7732_v46 }
 0x731   :  { %2298 = vmatpush1.msra.mxu0 %v6680_v33  ;;  %4981 = vmatpush3.msra.mxu1 %v6762_v13 }
 0x732   :  { %2299 = vmatprep.subr.mxu0 %v7762_v16  ;;  %4982 = vmatprep.subr.mxu1 %v7732_v46 }
 0x733   :  { %2300 = vmatpush1.msra.mxu0 %v6767_v42  ;;  %4983 = vmatpush3.msra.mxu1 %v6770_v34 }
 0x734   :  { %2301 = vmatprep.subr.mxu0 %v6773_v41  ;;  %4984 = vmatprep.subr.mxu1 %v7732_v46 }
 0x735   :  { %2302 = vmatpush1.msra.mxu0 %v6777_v43  ;;  %2335 = vmatprep.mubr.f32.mxu0 %v7732_v46 }
 0x736   :  { %4985 = vmatpush3.msra.mxu1 %v6781_v5  ;;  %4986 = vmatprep.mubr.msk.f32.mxu1 %vm5791_vm0, %v7732_v46 }
 0x737   :  { %2443 = vmatprep.subr.mxu0 %v7768_v9  ;;  %4989 = vmatprep.subr.mxu1 %v7732_v46 }
 0x7d6   :  { %v2165_v10 = vpop.f32.mrf.mxu0  ;;  %v2236_v35 = vpop.f32.mrf.mxu1 }
 0x7d7   :  { %v2166_v11 = vadd.f32 %v2165_v10, %v7769_v36  ;;  %v2237_v9 = vadd.f32 %v2236_v35, %v6307_v0 }
 0x7d8   :  { %v2167_v37 = vpop.f32.mrf.mxu0  ;;  %v4953_v38 = vpop.f32.mrf.mxu1 }
 0x7d9   :  { %v2242_v12 = vrot.slane %v2166_v11, 3  ;;  %v2168_v39 = vadd.f32 %v2167_v37, %v6299_v57  ;;  %v2257_v10 = vrot.slane %v2237_v9, 3  ;;  %v7774_v9 = vld [vmem:[#allocation22_spill] sm:$0xff] }
 0x7db   :  { %v2246_v8 = vadd.f32 %v2242_v12, %v6297_v56  ;;  %v2243_v5 = vrot.slane %v2168_v39, 3  ;;  %v2264_v39 = vrot.slane %v6706_v40, 7  ;;  %v7770_v40 = vld [vmem:[#allocation19_spill] sm:$0xff] }
 0x7dd   :  { %v2248_v43 = vmul.f32 0.5, %v2246_v8  ;;  %v2247_v41 = vadd.f32 %v2243_v5, %v6304_v48 }
 0x7df   :  { %5486 = vtanh.f32 %v2248_v43  ;;  %v2249_v34 = vmul.f32 0.5, %v2247_v41 }
 0x7e1   :  { %5488 = vtanh.f32 %v2249_v34 }
 0x7ec   :  { %v5487_v42 = vpop.eup %5486 }
 0x7ed   :  { %v2252_v16 = vadd.f32 1.0, %v5487_v42  ;;  %v7773_v42 = vld [vmem:[#allocation23_spill] sm:$0xff] }
 0x7ee   :  { %v5489_v37 = vpop.eup %5488 }
 0x7ef   :  { %v2254_v13 = vmul.f32 0.5, %v2252_v16  ;;  %v2253_v38 = vadd.f32 1.0, %v5489_v37  ;;  %v7772_v16 = vld [vmem:[#allocation21_spill] sm:$0xff] }
 0x7f1   :  { %v2259_v36 = vmul.f32 %v2257_v10, %v2254_v13  ;;  %v2255_v12 = vmul.f32 0.5, %v2253_v38  ;;  %v7771_v13 = vld [vmem:[#allocation20_spill] sm:$0xff]  ;;  %v7776_v10 = vld [vmem:[#allocation25_spill] sm:$0xff] }
 0x7f3   :  { %v2260_v11 = vadd.f32 %v2259_v36, %v6310_v51  ;;  %v2262_v43 = vsub.f32 1.0, %v2255_v12  ;;  %v2266_v5 = vmul.f32 %v2264_v39, %v2255_v12  ;;  %v7775_v36 = vld [vmem:[#allocation24_spill] sm:$0xff]  ;;  %v7778_v12 = vld [vmem:[#allocation30_spill] sm:$0xff] }
 0x7f5   :  { %5490 = vtanh.f32 %v2260_v11  ;;  %v7777_v11 = vld [vmem:[#allocation18_spill] sm:$0xff] }
 0x802   :  { %v5491_v8 = vpop.eup %5490 }
 0x803   :  { %v2263_v41 = vmul.f32 %v5491_v8, %v2262_v43 }
 0x805   :  { %v6795_v34 = vadd.f32 %v2266_v5, %v2263_v41 }
 0x807   :  { %v2269_v35 = vrot.slane %v6795_v34, 5 }
 0x809   :  { %2336 = vmatmul.mubr.f32.vlgmr.msra.gmra.mxu0 %v2269_v35  ;;  %4987 = vmatmul.mubr.f32.vlgmr.msra.gmra.mxu1 %v2269_v35 }
 0x80a   :  { %2444 = vmatpush1.msra.mxu0 %v6550_v44  ;;  %4990 = vmatpush3.msra.mxu1 %v6553_v45 }
 0x80b   :  { %2445 = vmatprep.subr.mxu0 %v6556_v1  ;;  %4991 = vmatprep.subr.mxu1 %v7732_v46 }
 0x80c   :  { %2446 = vmatpush1.msra.mxu0 %v6560_v53  ;;  %4992 = vmatpush3.msra.mxu1 %v6563_v47 }
 0x80d   :  { %2447 = vmatprep.subr.mxu0 %v6566_v50  ;;  %4993 = vmatprep.subr.mxu1 %v7732_v46 }
 0x80e   :  { %2448 = vmatpush1.msra.mxu0 %v6570_v49  ;;  %4994 = vmatpush3.msra.mxu1 %v6573_v58 }
 0x80f   :  { %2449 = vmatprep.subr.mxu0 %v6576_v60  ;;  %4995 = vmatprep.subr.mxu1 %v7732_v46 }
 0x810   :  { %2450 = vmatpush1.msra.mxu0 %v6580_v61  ;;  %4996 = vmatpush3.msra.mxu1 %v6583_v59 }
 0x811   :  { %2451 = vmatprep.subr.mxu0 %v6586_v63  ;;  %4997 = vmatprep.subr.mxu1 %v7732_v46 }
 0x812   :  { %2452 = vmatpush1.msra.mxu0 %v6590_v7  ;;  %4998 = vmatpush3.msra.mxu1 %v6593_v3 }
 0x813   :  { %2453 = vmatprep.subr.mxu0 %v6596_v55  ;;  %4999 = vmatprep.subr.mxu1 %v7732_v46 }
 0x814   :  { %2454 = vmatpush1.msra.mxu0 %v6600_v62  ;;  %5000 = vmatpush3.msra.mxu1 %v6603_v52 }
 0x815   :  { %2455 = vmatprep.subr.mxu0 %v6606_v2  ;;  %5001 = vmatprep.subr.mxu1 %v7732_v46 }
 0x816   :  { %2456 = vmatpush1.msra.mxu0 %v6610_v54  ;;  %5002 = vmatpush3.msra.mxu1 %v6613_v4 }
 0x817   :  { %2457 = vmatprep.subr.mxu0 %v6616_v6  ;;  %5003 = vmatprep.subr.mxu1 %v7732_v46 }
 0x818   :  { %2458 = vmatpush1.msra.mxu0 %v6620_v14  ;;  %5004 = vmatpush3.msra.mxu1 %v6623_v15 }
 0x819   :  { %2459 = vmatprep.subr.mxu0 %v6626_v17  ;;  %5005 = vmatprep.subr.mxu1 %v7732_v46 }
 0x81a   :  { %2460 = vmatpush1.msra.mxu0 %v6630_v18  ;;  %5006 = vmatpush3.msra.mxu1 %v6633_v19 }
 0x81b   :  { %2461 = vmatprep.subr.mxu0 %v6636_v20  ;;  %5007 = vmatprep.subr.mxu1 %v7732_v46 }
 0x81c   :  { %2462 = vmatpush1.msra.mxu0 %v6640_v21  ;;  %5008 = vmatpush3.msra.mxu1 %v6643_v22 }
 0x81d   :  { %2463 = vmatprep.subr.mxu0 %v6646_v23  ;;  %5009 = vmatprep.subr.mxu1 %v7732_v46 }
 0x81e   :  { %2464 = vmatpush1.msra.mxu0 %v6650_v24  ;;  %5010 = vmatpush3.msra.mxu1 %v6653_v25 }
 0x81f   :  { %2465 = vmatprep.subr.mxu0 %v6656_v26  ;;  %5011 = vmatprep.subr.mxu1 %v7732_v46 }
 0x820   :  { %2466 = vmatpush1.msra.mxu0 %v6660_v27  ;;  %5012 = vmatpush3.msra.mxu1 %v6663_v28 }
 0x821   :  { %2467 = vmatprep.subr.mxu0 %v6666_v29  ;;  %5013 = vmatprep.subr.mxu1 %v7732_v46 }
 0x822   :  { %2468 = vmatpush1.msra.mxu0 %v6670_v30  ;;  %5014 = vmatpush3.msra.mxu1 %v6673_v31 }
 0x823   :  { %2469 = vmatprep.subr.mxu0 %v6676_v32  ;;  %5015 = vmatprep.subr.mxu1 %v7732_v46 }
 0x824   :  { %2470 = vmatpush1.msra.mxu0 %v6680_v33  ;;  %5016 = vmatpush3.msra.mxu1 %v7770_v40 }
 0x825   :  { %2471 = vmatprep.subr.mxu0 %v7771_v13  ;;  %5017 = vmatprep.subr.mxu1 %v7732_v46 }
 0x826   :  { %2472 = vmatpush1.msra.mxu0 %v7772_v16  ;;  %5018 = vmatpush3.msra.mxu1 %v7773_v42 }
 0x827   :  { %2473 = vmatprep.subr.mxu0 %v7774_v9  ;;  %5019 = vmatprep.subr.mxu1 %v7732_v46 }
 0x828   :  { %2474 = vmatpush1.msra.mxu0 %v7775_v36  ;;  %2507 = vmatprep.mubr.f32.mxu0 %v7732_v46 }
 0x829   :  { %5020 = vmatpush3.msra.mxu1 %v7776_v10  ;;  %5021 = vmatprep.mubr.msk.f32.mxu1 %vm5791_vm0, %v7732_v46 }
 0x82a   :  { %2618 = vmatprep.subr.mxu0 %v7777_v11  ;;  %5024 = vmatprep.subr.mxu1 %v7732_v46 }
 0x8c9   :  { %v2337_v37 = vpop.f32.mrf.mxu0  ;;  %v2408_v38 = vpop.f32.mrf.mxu1 }
 0x8ca   :  { %v2338_v39 = vadd.f32 %v2337_v37, %v7778_v12  ;;  %v2409_v11 = vadd.f32 %v2408_v38, %v6307_v0 }
 0x8cb   :  { %v2339_v43 = vpop.f32.mrf.mxu0  ;;  %v4988_v8 = vpop.f32.mrf.mxu1 }
 0x8cc   :  { %v2414_v5 = vrot.slane %v2338_v39, 2  ;;  %v2340_v41 = vadd.f32 %v2339_v43, %v6299_v57  ;;  %v2429_v37 = vrot.slane %v2409_v11, 2  ;;  %v7783_v11 = vld [vmem:[#allocation22_spill] sm:$0xff] }
 0x8ce   :  { %v2418_v35 = vadd.f32 %v2414_v5, %v6297_v56  ;;  %v2415_v10 = vrot.slane %v2340_v41, 2  ;;  %v2436_v41 = vrot.slane %v6795_v34, 7  ;;  %v7779_v34 = vld [vmem:[#allocation19_spill] sm:$0xff] }
 0x8d0   :  { %v2420_v36 = vmul.f32 0.5, %v2418_v35  ;;  %v2419_v9 = vadd.f32 %v2415_v10, %v6304_v48 }
 0x8d2   :  { %5492 = vtanh.f32 %v2420_v36  ;;  %v2421_v42 = vmul.f32 0.5, %v2419_v9 }
 0x8d4   :  { %5494 = vtanh.f32 %v2421_v42 }
 0x8df   :  { %v5493_v16 = vpop.eup %5492 }
 0x8e0   :  { %v2424_v13 = vadd.f32 1.0, %v5493_v16  ;;  %v7782_v16 = vld [vmem:[#allocation23_spill] sm:$0xff] }
 0x8e1   :  { %v5495_v43 = vpop.eup %5494 }
 0x8e2   :  { %v2426_v40 = vmul.f32 0.5, %v2424_v13  ;;  %v2425_v8 = vadd.f32 1.0, %v5495_v43  ;;  %v7781_v13 = vld [vmem:[#allocation21_spill] sm:$0xff] }
 0x8e4   :  { %v2431_v12 = vmul.f32 %v2429_v37, %v2426_v40  ;;  %v2427_v5 = vmul.f32 0.5, %v2425_v8  ;;  %v7780_v40 = vld [vmem:[#allocation20_spill] sm:$0xff]  ;;  %v7785_v37 = vld [vmem:[#allocation25_spill] sm:$0xff] }
 0x8e6   :  { %v2432_v39 = vadd.f32 %v2431_v12, %v6310_v51  ;;  %v2434_v36 = vsub.f32 1.0, %v2427_v5  ;;  %v2438_v10 = vmul.f32 %v2436_v41, %v2427_v5  ;;  %v7784_v12 = vld [vmem:[#allocation24_spill] sm:$0xff]  ;;  %v7787_v5 = vld [vmem:[#allocation30_spill] sm:$0xff] }
 0x8e8   :  { %5496 = vtanh.f32 %v2432_v39  ;;  %v7786_v39 = vld [vmem:[#allocation18_spill] sm:$0xff] }
 0x8f5   :  { %v5497_v35 = vpop.eup %5496 }
 0x8f6   :  { %v2435_v9 = vmul.f32 %v5497_v35, %v2434_v36 }
 0x8f8   :  { %v6872_v42 = vadd.f32 %v2438_v10, %v2435_v9 }
 0x8fa   :  { %v2441_v38 = vrot.slane %v6872_v42, 6 }
 0x8fc   :  { %2508 = vmatmul.mubr.f32.vlgmr.msra.gmra.mxu0 %v2441_v38  ;;  %5022 = vmatmul.mubr.f32.vlgmr.msra.gmra.mxu1 %v2441_v38 }
 0x8fd   :  { %2619 = vmatpush1.msra.mxu0 %v6550_v44  ;;  %5025 = vmatpush3.msra.mxu1 %v6553_v45 }
 0x8fe   :  { %2620 = vmatprep.subr.mxu0 %v6556_v1  ;;  %5026 = vmatprep.subr.mxu1 %v7732_v46 }
 0x8ff   :  { %2621 = vmatpush1.msra.mxu0 %v6560_v53  ;;  %5027 = vmatpush3.msra.mxu1 %v6563_v47 }
 0x900   :  { %2622 = vmatprep.subr.mxu0 %v6566_v50  ;;  %5028 = vmatprep.subr.mxu1 %v7732_v46 }
 0x901   :  { %2623 = vmatpush1.msra.mxu0 %v6570_v49  ;;  %5029 = vmatpush3.msra.mxu1 %v6573_v58 }
 0x902   :  { %2624 = vmatprep.subr.mxu0 %v6576_v60  ;;  %5030 = vmatprep.subr.mxu1 %v7732_v46 }
 0x903   :  { %2625 = vmatpush1.msra.mxu0 %v6580_v61  ;;  %5031 = vmatpush3.msra.mxu1 %v6583_v59 }
 0x904   :  { %2626 = vmatprep.subr.mxu0 %v6586_v63  ;;  %5032 = vmatprep.subr.mxu1 %v7732_v46 }
 0x905   :  { %2627 = vmatpush1.msra.mxu0 %v6590_v7  ;;  %5033 = vmatpush3.msra.mxu1 %v6593_v3 }
 0x906   :  { %2628 = vmatprep.subr.mxu0 %v6596_v55  ;;  %5034 = vmatprep.subr.mxu1 %v7732_v46 }
 0x907   :  { %2629 = vmatpush1.msra.mxu0 %v6600_v62  ;;  %5035 = vmatpush3.msra.mxu1 %v6603_v52 }
 0x908   :  { %2630 = vmatprep.subr.mxu0 %v6606_v2  ;;  %5036 = vmatprep.subr.mxu1 %v7732_v46 }
 0x909   :  { %2631 = vmatpush1.msra.mxu0 %v6610_v54  ;;  %5037 = vmatpush3.msra.mxu1 %v6613_v4 }
 0x90a   :  { %2632 = vmatprep.subr.mxu0 %v6616_v6  ;;  %5038 = vmatprep.subr.mxu1 %v7732_v46 }
 0x90b   :  { %2633 = vmatpush1.msra.mxu0 %v6620_v14  ;;  %5039 = vmatpush3.msra.mxu1 %v6623_v15 }
 0x90c   :  { %2634 = vmatprep.subr.mxu0 %v6626_v17  ;;  %5040 = vmatprep.subr.mxu1 %v7732_v46 }
 0x90d   :  { %2635 = vmatpush1.msra.mxu0 %v6630_v18  ;;  %5041 = vmatpush3.msra.mxu1 %v6633_v19 }
 0x90e   :  { %2636 = vmatprep.subr.mxu0 %v6636_v20  ;;  %5042 = vmatprep.subr.mxu1 %v7732_v46 }
 0x90f   :  { %2637 = vmatpush1.msra.mxu0 %v6640_v21  ;;  %5043 = vmatpush3.msra.mxu1 %v6643_v22 }
 0x910   :  { %2638 = vmatprep.subr.mxu0 %v6646_v23  ;;  %5044 = vmatprep.subr.mxu1 %v7732_v46 }
 0x911   :  { %2639 = vmatpush1.msra.mxu0 %v6650_v24  ;;  %5045 = vmatpush3.msra.mxu1 %v6653_v25 }
 0x912   :  { %2640 = vmatprep.subr.mxu0 %v6656_v26  ;;  %5046 = vmatprep.subr.mxu1 %v7732_v46 }
 0x913   :  { %2641 = vmatpush1.msra.mxu0 %v6660_v27  ;;  %5047 = vmatpush3.msra.mxu1 %v6663_v28 }
 0x914   :  { %2642 = vmatprep.subr.mxu0 %v6666_v29  ;;  %5048 = vmatprep.subr.mxu1 %v7732_v46 }
 0x915   :  { %2643 = vmatpush1.msra.mxu0 %v6670_v30  ;;  %5049 = vmatpush3.msra.mxu1 %v6673_v31 }
 0x916   :  { %2644 = vmatprep.subr.mxu0 %v6676_v32  ;;  %5050 = vmatprep.subr.mxu1 %v7732_v46 }
 0x917   :  { %2645 = vmatpush1.msra.mxu0 %v6680_v33  ;;  %5051 = vmatpush3.msra.mxu1 %v7779_v34 }
 0x918   :  { %2646 = vmatprep.subr.mxu0 %v7780_v40  ;;  %5052 = vmatprep.subr.mxu1 %v7732_v46 }
 0x919   :  { %2647 = vmatpush1.msra.mxu0 %v7781_v13  ;;  %5053 = vmatpush3.msra.mxu1 %v7782_v16 }
 0x91a   :  { %2648 = vmatprep.subr.mxu0 %v7783_v11  ;;  %5054 = vmatprep.subr.mxu1 %v7732_v46 }
 0x91b   :  { %2649 = vmatpush1.msra.mxu0 %v7784_v12  ;;  %2682 = vmatprep.mubr.f32.mxu0 %v7732_v46 }
 0x91c   :  { %5055 = vmatpush3.msra.mxu1 %v7785_v37  ;;  %5056 = vmatprep.mubr.msk.f32.mxu1 %vm5791_vm0, %v7732_v46 }
 0x91d   :  { %2776 = vmatprep.subr.mxu0 %v7786_v39  ;;  %5059 = vmatprep.subr.mxu1 %v7732_v46 }
 0x9bc   :  { %v2509_v43 = vpop.f32.mrf.mxu0  ;;  %v2580_v8 = vpop.f32.mrf.mxu1 }
 0x9bd   :  { %v2510_v41 = vadd.f32 %v2509_v43, %v7787_v5  ;;  %v2581_v39 = vadd.f32 %v2580_v8, %v6307_v0  ;;  %v7794_v8 = vld [vmem:[#allocation25_spill] sm:$0xff] }
 0x9be   :  { %v2511_v36 = vpop.f32.mrf.mxu0  ;;  %v5023_v35 = vpop.f32.mrf.mxu1 }
 0x9bf   :  { %v2586_v10 = vrot.slane %v2510_v41, 1  ;;  %v2512_v9 = vadd.f32 %v2511_v36, %v6299_v57  ;;  %v2601_v43 = vrot.slane %v2581_v39, 1  ;;  %v7793_v39 = vld [vmem:[#allocation24_spill] sm:$0xff] }
 0x9c1   :  { %v2590_v38 = vadd.f32 %v2586_v10, %v6297_v56  ;;  %v2587_v37 = vrot.slane %v2512_v9, 1  ;;  %v2608_v10 = vrot.slane %v6872_v42, 7  ;;  %v7789_v42 = vld [vmem:[#allocation20_spill] sm:$0xff] }
 0x9c3   :  { %v2592_v12 = vmul.f32 0.5, %v2590_v38  ;;  %v2591_v11 = vadd.f32 %v2587_v37, %v6304_v48  ;;  %v5600_v38 = vld [vmem:[%s7652_s6] sm:$0x7] }
 0x9c5   :  { %5498 = vtanh.f32 %v2592_v12  ;;  %v2593_v16 = vmul.f32 0.5, %v2591_v11 }
 0x9c7   :  { %5500 = vtanh.f32 %v2593_v16 }
 0x9d2   :  { %v5499_v13 = vpop.eup %5498 }
 0x9d3   :  { %v2596_v40 = vadd.f32 1.0, %v5499_v13  ;;  %v7792_v13 = vld [vmem:[#allocation22_spill] sm:$0xff] }
 0x9d4   :  { %v5501_v36 = vpop.eup %5500 }
 0x9d5   :  { %v2598_v34 = vmul.f32 0.5, %v2596_v40  ;;  %v2597_v35 = vadd.f32 1.0, %v5501_v36  ;;  %v7791_v40 = vld [vmem:[#allocation23_spill] sm:$0xff] }
 0x9d7   :  { %v2603_v5 = vmul.f32 %v2601_v43, %v2598_v34  ;;  %v2599_v56 = vmul.f32 0.5, %v2597_v35  ;;  %v7790_v34 = vld [vmem:[#allocation21_spill] sm:$0xff] }
 0x9d8   :  { %v7796_v43 = vld [vmem:[#allocation29_spill] sm:$0xff] }
 0x9d9   :  { %v2604_v41 = vadd.f32 %v2603_v5, %v6310_v51  ;;  %v2606_v12 = vsub.f32 1.0, %v2599_v56  ;;  %v2610_v11 = vmul.f32 %v2608_v10, %v2599_v56  ;;  %v7788_v51 = vld [vmem:[#allocation19_spill] sm:$0xff]  ;;  %v7795_v5 = vld [vmem:[#allocation18_spill] sm:$0xff] }
 0x9da   :  { %v7797_v56 = vld [vmem:[#allocation26_spill] sm:$0xff] }
 0x9db   :  { %5502 = vtanh.f32 %v2604_v41  ;;  %v960_v41 = vrot.slane %v5600_v38, %v7796_v43 }
 0x9dd   :  { %v7025_v10 = vadd.f32 %v7797_v56, %v960_v41 }
 0x9df   :  { %7798 = vst [vmem:[#allocation19_spill] sm:$0xff] %v7025_v10 }
 0x9e8   :  { %v5503_v9 = vpop.eup %5502 }
 0x9e9   :  { %v2607_v48 = vmul.f32 %v5503_v9, %v2606_v12  ;;  %v7799_v12 = vld [vmem:[#allocation30_spill] sm:$0xff] }
 0x9eb   :  { %v2611_v16 = vadd.f32 %v2610_v11, %v2607_v48 }
 0x9ed   :  { %v6949_v37 = vrot.slane %v2611_v16, 7 }
 0x9ef   :  { %2683 = vmatmul.mubr.f32.vlgmr.msra.gmra.mxu0 %v6949_v37  ;;  %5057 = vmatmul.mubr.f32.vlgmr.msra.gmra.mxu1 %v6949_v37 }
 0x9f0   :  { %2777 = vmatpush1.msra.mxu0 %v6550_v44  ;;  %5060 = vmatpush3.msra.mxu1 %v6553_v45 }
 0x9f1   :  { %2778 = vmatprep.subr.mxu0 %v6556_v1  ;;  %5061 = vmatprep.subr.mxu1 %v7732_v46 }
 0x9f2   :  { %2779 = vmatpush1.msra.mxu0 %v6560_v53  ;;  %5062 = vmatpush3.msra.mxu1 %v6563_v47 }
 0x9f3   :  { %2780 = vmatprep.subr.mxu0 %v6566_v50  ;;  %5063 = vmatprep.subr.mxu1 %v7732_v46 }
 0x9f4   :  { %2781 = vmatpush1.msra.mxu0 %v6570_v49  ;;  %5064 = vmatpush3.msra.mxu1 %v6573_v58 }
 0x9f5   :  { %2782 = vmatprep.subr.mxu0 %v6576_v60  ;;  %5065 = vmatprep.subr.mxu1 %v7732_v46 }
 0x9f6   :  { %2783 = vmatpush1.msra.mxu0 %v6580_v61  ;;  %5066 = vmatpush3.msra.mxu1 %v6583_v59 }
 0x9f7   :  { %2784 = vmatprep.subr.mxu0 %v6586_v63  ;;  %5067 = vmatprep.subr.mxu1 %v7732_v46 }
 0x9f8   :  { %2785 = vmatpush1.msra.mxu0 %v6590_v7  ;;  %5068 = vmatpush3.msra.mxu1 %v6593_v3 }
 0x9f9   :  { %2786 = vmatprep.subr.mxu0 %v6596_v55  ;;  %5069 = vmatprep.subr.mxu1 %v7732_v46 }
 0x9fa   :  { %2787 = vmatpush1.msra.mxu0 %v6600_v62  ;;  %5070 = vmatpush3.msra.mxu1 %v6603_v52 }
 0x9fb   :  { %2788 = vmatprep.subr.mxu0 %v6606_v2  ;;  %5071 = vmatprep.subr.mxu1 %v7732_v46 }
 0x9fc   :  { %2789 = vmatpush1.msra.mxu0 %v6610_v54  ;;  %5072 = vmatpush3.msra.mxu1 %v6613_v4 }
 0x9fd   :  { %2790 = vmatprep.subr.mxu0 %v6616_v6  ;;  %5073 = vmatprep.subr.mxu1 %v7732_v46 }
 0x9fe   :  { %2791 = vmatpush1.msra.mxu0 %v6620_v14  ;;  %5074 = vmatpush3.msra.mxu1 %v6623_v15 }
 0x9ff   :  { %2792 = vmatprep.subr.mxu0 %v6626_v17  ;;  %5075 = vmatprep.subr.mxu1 %v7732_v46 }
 0xa00   :  { %2793 = vmatpush1.msra.mxu0 %v6630_v18  ;;  %5076 = vmatpush3.msra.mxu1 %v6633_v19 }
 0xa01   :  { %2794 = vmatprep.subr.mxu0 %v6636_v20  ;;  %5077 = vmatprep.subr.mxu1 %v7732_v46 }
 0xa02   :  { %2795 = vmatpush1.msra.mxu0 %v6640_v21  ;;  %5078 = vmatpush3.msra.mxu1 %v6643_v22 }
 0xa03   :  { %2796 = vmatprep.subr.mxu0 %v6646_v23  ;;  %5079 = vmatprep.subr.mxu1 %v7732_v46 }
 0xa04   :  { %2797 = vmatpush1.msra.mxu0 %v6650_v24  ;;  %5080 = vmatpush3.msra.mxu1 %v6653_v25 }
 0xa05   :  { %2798 = vmatprep.subr.mxu0 %v6656_v26  ;;  %5081 = vmatprep.subr.mxu1 %v7732_v46 }
 0xa06   :  { %2799 = vmatpush1.msra.mxu0 %v6660_v27  ;;  %5082 = vmatpush3.msra.mxu1 %v6663_v28 }
 0xa07   :  { %2800 = vmatprep.subr.mxu0 %v6666_v29  ;;  %5083 = vmatprep.subr.mxu1 %v7732_v46 }
 0xa08   :  { %2801 = vmatpush1.msra.mxu0 %v6670_v30  ;;  %5084 = vmatpush3.msra.mxu1 %v6673_v31 }
 0xa09   :  { %2802 = vmatprep.subr.mxu0 %v6676_v32  ;;  %5085 = vmatprep.subr.mxu1 %v7732_v46 }
 0xa0a   :  { %2803 = vmatpush1.msra.mxu0 %v6680_v33  ;;  %5086 = vmatpush3.msra.mxu1 %v7788_v51 }
 0xa0b   :  { %2804 = vmatprep.subr.mxu0 %v7789_v42  ;;  %5087 = vmatprep.subr.mxu1 %v7732_v46  ;;  %v7801_v42 = vld [vmem:[#allocation27_spill] sm:$0xff] }
 0xa0c   :  { %2805 = vmatpush1.msra.mxu0 %v7790_v34  ;;  %5088 = vmatpush3.msra.mxu1 %v7791_v40 }
 0xa0d   :  { %2806 = vmatprep.subr.mxu0 %v7792_v13  ;;  %5089 = vmatprep.subr.mxu1 %v7732_v46 }
 0xa0e   :  { %2807 = vmatpush1.msra.mxu0 %v7793_v39  ;;  %2840 = vmatprep.mubr.f32.mxu0 %v7732_v46  ;;  %v7800_v39 = vld [vmem:[#allocation28_spill] sm:$0xff] }
 0xa0f   :  { %5090 = vmatpush3.msra.mxu1 %v7794_v8  ;;  %5091 = vmatprep.mubr.msk.f32.mxu1 %vm5791_vm0, %v7732_v46 }
 0xa10   :  { %2949 = vmatprep.subr.mxu0 %v7795_v5  ;;  %5094 = vmatprep.subr.mxu1 %v7732_v46 }
 0xaaf   :  { %v2684_v36 = vpop.f32.mrf.mxu0  ;;  %v2755_v35 = vpop.f32.mrf.mxu1 }
 0xab0   :  { %v2685_v9 = vadd.f32 %v2684_v36, %v7799_v12  ;;  %v2756_v34 = vadd.f32 %v2755_v35, %v6307_v0  ;;  %v7137_v35 = vld [vmem:[#allocation9 + $0x138] sm:$0xff] }
 0xab1   :  { %v2686_v48 = vpop.f32.mrf.mxu0  ;;  %v5058_v11 = vpop.f32.mrf.mxu1 }
 0xab2   :  { %v2759_v16 = vadd.f32 %v2685_v9, %v7025_v10  ;;  %v2687_v8 = vadd.f32 %v2686_v48, %v6299_v57 }
 0xab4   :  { %v2761_v5 = vmul.f32 0.5, %v2759_v16  ;;  %v2760_v13 = vadd.f32 %v2687_v8, %v7800_v39 }
 0xab6   :  { %5504 = vtanh.f32 %v2761_v5  ;;  %v2762_v40 = vmul.f32 0.5, %v2760_v13  ;;  %v7133_v13 = vld [vmem:[#allocation9 + $0x140] sm:$0xff] }
 0xab8   :  { %5506 = vtanh.f32 %v2762_v40  ;;  %v7130_v40 = vld [vmem:[#allocation9 + $0x160] sm:$0xff] }
 0xac3   :  { %v5505_v38 = vpop.eup %5504 }
 0xac4   :  { %v2765_v43 = vadd.f32 1.0, %v5505_v38  ;;  %v7147_v38 = vld [vmem:[#allocation9 + $0x120] sm:$0xff] }
 0xac5   :  { %v5507_v11 = vpop.eup %5506 }
 0xac6   :  { %v2767_v41 = vmul.f32 0.5, %v2765_v43  ;;  %v2766_v12 = vadd.f32 1.0, %v5507_v11  ;;  %v7150_v43 = vld [vmem:[#allocation9 + $0x130] sm:$0xff]  ;;  %v7163_v11 = vld [vmem:[#allocation9 + $0xf8] sm:$0xff] }
 0xac8   :  { %v2769_v56 = vmul.f32 %v2767_v41, %v2756_v34  ;;  %v2768_v9 = vmul.f32 0.5, %v2766_v12  ;;  %v7127_v34 = vld [vmem:[#allocation9 + $0x150] sm:$0xff]  ;;  %v7143_v12 = vld [vmem:[#allocation9 + $0x128] sm:$0xff] }
 0xac9   :  { %v7153_v41 = vld [vmem:[#allocation9 + $0x110] sm:$0xff] }
 0xaca   :  { %v2770_v36 = vadd.f32 %v2769_v56, %v7801_v42  ;;  %v2772_v16 = vsub.f32 1.0, %v2768_v9  ;;  %v2774_v5 = vmul.f32 %v2768_v9, %v6949_v37  ;;  %v7123_v37 = vld [vmem:[#allocation9 + $0x158] sm:$0xff]  ;;  %v7157_v56 = vld [vmem:[#allocation9 + $0x108] sm:$0xff]  ;;  %v7167_v9 = vld [vmem:[#allocation9 + $0xf0] sm:$0xff] }
 0xacc   :  { %5508 = vtanh.f32 %v2770_v36  ;;  %v7160_v36 = vld [vmem:[#allocation9 + $0x118] sm:$0xff] }
 0xad9   :  { %v5509_v10 = vpop.eup %5508 }
 0xada   :  { %v2773_v48 = vmul.f32 %v5509_v10, %v2772_v16  ;;  %v7140_v10 = vld [vmem:[#allocation9 + $0x148] sm:$0xff]  ;;  %v7170_v16 = vld [vmem:[#allocation9 + $0x100] sm:$0xff] }
 0xadc   :  { %v7034_v8 = vadd.f32 %v2774_v5, %v2773_v48  ;;  %v7173_v48 = vld [vmem:[#allocation9 + $0xe0] sm:$0xff]  ;;  %v7177_v5 = vld [vmem:[#allocation9 + $0xd8] sm:$0xff] }
 0xade   :  { %2841 = vmatmul.mubr.f32.vlgmr.msra.gmra.mxu0 %v7034_v8  ;;  %5092 = vmatmul.mubr.f32.vlgmr.msra.gmra.mxu1 %v7034_v8 }
 0xadf   :  { %2950 = vmatpush1.msra.mxu0 %v6550_v44  ;;  %5095 = vmatpush3.msra.mxu1 %v6553_v45  ;;  %v7802_v44 = vld [vmem:[#allocation20_spill] sm:$0xff]  ;;  %v7803_v45 = vld [vmem:[#allocation21_spill] sm:$0xff] }
 0xae0   :  { %2951 = vmatprep.subr.mxu0 %v6556_v1  ;;  %5096 = vmatprep.subr.mxu1 %v7732_v46  ;;  %v7804_v1 = vld [vmem:[#allocation23_spill] sm:$0xff] }
 0xae1   :  { %2952 = vmatpush1.msra.mxu0 %v6560_v53  ;;  %5097 = vmatpush3.msra.mxu1 %v6563_v47  ;;  %v7805_v53 = vld [vmem:[#allocation22_spill] sm:$0xff]  ;;  %v7806_v47 = vld [vmem:[#allocation24_spill] sm:$0xff] }
 0xae2   :  { %2953 = vmatprep.subr.mxu0 %v6566_v50  ;;  %5098 = vmatprep.subr.mxu1 %v7732_v46  ;;  %v7807_v50 = vld [vmem:[#allocation25_spill] sm:$0xff] }
 0xae3   :  { %2954 = vmatpush1.msra.mxu0 %v6570_v49  ;;  %5099 = vmatpush3.msra.mxu1 %v6573_v58  ;;  %v7103_v49 = vld [vmem:[#allocation9 + $0x170] sm:$0xff] }
 0xae4   :  { %2955 = vmatprep.subr.mxu0 %v6576_v60  ;;  %5100 = vmatprep.subr.mxu1 %v7732_v46  ;;  %7808 = vst [vmem:[#allocation18_spill] sm:$0xff] %v7103_v49 }
 0xae5   :  { %2956 = vmatpush1.msra.mxu0 %v6580_v61  ;;  %5101 = vmatpush3.msra.mxu1 %v6583_v59  ;;  %v7809_v61 = vld [vmem:[#allocation30_spill] sm:$0xff] }
 0xae6   :  { %2957 = vmatprep.subr.mxu0 %v6586_v63  ;;  %5102 = vmatprep.subr.mxu1 %v7732_v46 }
 0xae7   :  { %2958 = vmatpush1.msra.mxu0 %v6590_v7  ;;  %5103 = vmatpush3.msra.mxu1 %v6593_v3 }
 0xae8   :  { %2959 = vmatprep.subr.mxu0 %v6596_v55  ;;  %5104 = vmatprep.subr.mxu1 %v7732_v46 }
 0xae9   :  { %2960 = vmatpush1.msra.mxu0 %v6600_v62  ;;  %5105 = vmatpush3.msra.mxu1 %v6603_v52  ;;  %v7810_v62 = vld [vmem:[#allocation19_spill] sm:$0xff] }
 0xaea   :  { %2961 = vmatprep.subr.mxu0 %v6606_v2  ;;  %5106 = vmatprep.subr.mxu1 %v7732_v46 }
 0xaeb   :  { %2962 = vmatpush1.msra.mxu0 %v6610_v54  ;;  %5107 = vmatpush3.msra.mxu1 %v6613_v4 }
 0xaec   :  { %2963 = vmatprep.subr.mxu0 %v6616_v6  ;;  %5108 = vmatprep.subr.mxu1 %v7732_v46 }
 0xaed   :  { %2964 = vmatpush1.msra.mxu0 %v6620_v14  ;;  %5109 = vmatpush3.msra.mxu1 %v6623_v15 }
 0xaee   :  { %2965 = vmatprep.subr.mxu0 %v6626_v17  ;;  %5110 = vmatprep.subr.mxu1 %v7732_v46 }
 0xaef   :  { %2966 = vmatpush1.msra.mxu0 %v6630_v18  ;;  %5111 = vmatpush3.msra.mxu1 %v6633_v19 }
 0xaf0   :  { %2967 = vmatprep.subr.mxu0 %v6636_v20  ;;  %5112 = vmatprep.subr.mxu1 %v7732_v46 }
 0xaf1   :  { %2968 = vmatpush1.msra.mxu0 %v6640_v21  ;;  %5113 = vmatpush3.msra.mxu1 %v6643_v22 }
 0xaf2   :  { %2969 = vmatprep.subr.mxu0 %v6646_v23  ;;  %5114 = vmatprep.subr.mxu1 %v7732_v46 }
 0xaf3   :  { %2970 = vmatpush1.msra.mxu0 %v6650_v24  ;;  %5115 = vmatpush3.msra.mxu1 %v6653_v25 }
 0xaf4   :  { %2971 = vmatprep.subr.mxu0 %v6656_v26  ;;  %5116 = vmatprep.subr.mxu1 %v7732_v46  ;;  %v2942_v26 = vrot.slane %v7034_v8, 7  ;;  %v7180_v8 = vld [vmem:[#allocation9 + $0xe8] sm:$0xff] }
 0xaf5   :  { %2972 = vmatpush1.msra.mxu0 %v6660_v27  ;;  %5117 = vmatpush3.msra.mxu1 %v6663_v28 }
 0xaf6   :  { %2973 = vmatprep.subr.mxu0 %v6666_v29  ;;  %5118 = vmatprep.subr.mxu1 %v7732_v46 }
 0xaf7   :  { %2974 = vmatpush1.msra.mxu0 %v6670_v30  ;;  %5119 = vmatpush3.msra.mxu1 %v6673_v31 }
 0xaf8   :  { %2975 = vmatprep.subr.mxu0 %v6676_v32  ;;  %5120 = vmatprep.subr.mxu1 %v7732_v46  ;;  %v7117_v32 = vld [vmem:[#allocation9 + $0x168] sm:$0xff] }
 0xaf9   :  { %2976 = vmatpush1.msra.mxu0 %v6680_v33  ;;  %5121 = vmatpush3.msra.mxu1 %v7788_v51  ;;  %v7120_v33 = vld [vmem:[#allocation9 + $0x178] sm:$0xff] }
 0xafa   :  { %2977 = vmatprep.subr.mxu0 %v7802_v44  ;;  %5122 = vmatprep.subr.mxu1 %v7732_v46  ;;  %v7183_v44 = vld [vmem:[#allocation9 + $0xc8] sm:$0xff] }
 0xafb   :  { %2978 = vmatpush1.msra.mxu0 %v7803_v45  ;;  %5123 = vmatpush3.msra.mxu1 %v7804_v1 }
 0xafc   :  { %2979 = vmatprep.subr.mxu0 %v7805_v53  ;;  %5124 = vmatprep.subr.mxu1 %v7732_v46 }
 0xafd   :  { %2980 = vmatpush1.msra.mxu0 %v7806_v47  ;;  %3013 = vmatprep.mubr.f32.mxu0 %v7732_v46 }
 0xafe   :  { %5125 = vmatpush3.msra.mxu1 %v7807_v50  ;;  %5126 = vmatprep.mubr.msk.f32.mxu1 %vm5791_vm0, %v7732_v46 }
 0xaff   :  { %3121 = vmatprep.subr.mxu0 %v7103_v49  ;;  %5129 = vmatprep.subr.mxu1 %v7732_v46 }
 0xb9e   :  { %v2842_v58 = vpop.f32.mrf.mxu0  ;;  %v2913_v60 = vpop.f32.mrf.mxu1 }
 0xb9f   :  { %v2843_v59 = vadd.f32 %v2842_v58, %v7809_v61  ;;  %v2914_v14 = vadd.f32 %v2913_v60, %v6307_v0  ;;  %v7187_v58 = vld [vmem:[#allocation9 + $0xc0] sm:$0xff]  ;;  %v7190_v60 = vld [vmem:[#allocation9 + $0xd0] sm:$0xff] }
 0xba0   :  { %v2844_v63 = vpop.f32.mrf.mxu0  ;;  %v5093_v7 = vpop.f32.mrf.mxu1 }
 0xba1   :  { %v2919_v3 = vrot.slane %v2843_v59, 7  ;;  %v2845_v55 = vadd.f32 %v2844_v63, %v6299_v57  ;;  %v2934_v19 = vrot.slane %v2914_v14, 7  ;;  %v7193_v59 = vld [vmem:[#allocation9 + $0xb0] sm:$0xff]  ;;  %v7197_v63 = vld [vmem:[#allocation9 + $0xa8] sm:$0xff]  ;;  %v7200_v7 = vld [vmem:[#allocation9 + $0xb8] sm:$0xff] }
 0xba2   :  { %v7227_v14 = vld [vmem:[#allocation9 + $0x60] sm:$0xff] }
 0xba3   :  { %v2923_v52 = vadd.f32 %v2919_v3, %v7810_v62  ;;  %v2920_v54 = vrot.slane %v2845_v55, 7  ;;  %v7203_v3 = vld [vmem:[#allocation9 + $0x98] sm:$0xff]  ;;  %v7207_v55 = vld [vmem:[#allocation9 + $0x90] sm:$0xff] }
 0xba5   :  { %v2925_v2 = vmul.f32 0.5, %v2923_v52  ;;  %v2924_v4 = vadd.f32 %v2920_v54, %v7800_v39  ;;  %v7210_v52 = vld [vmem:[#allocation9 + $0xa0] sm:$0xff]  ;;  %v7217_v54 = vld [vmem:[#allocation9 + $0x78] sm:$0xff] }
 0xba7   :  { %5510 = vtanh.f32 %v2925_v2  ;;  %v2926_v6 = vmul.f32 0.5, %v2924_v4  ;;  %v7213_v2 = vld [vmem:[#allocation9 + $0x80] sm:$0xff]  ;;  %v7220_v4 = vld [vmem:[#allocation9 + $0x88] sm:$0xff] }
 0xba9   :  { %5512 = vtanh.f32 %v2926_v6  ;;  %v7223_v6 = vld [vmem:[#allocation9 + $0x68] sm:$0xff] }
 0xbb4   :  { %v5511_v15 = vpop.eup %5510 }
 0xbb5   :  { %v2929_v17 = vadd.f32 1.0, %v5511_v15  ;;  %v7230_v15 = vld [vmem:[#allocation9 + $0x70] sm:$0xff] }
 0xbb6   :  { %v5513_v22 = vpop.eup %5512 }
 0xbb7   :  { %v2931_v18 = vmul.f32 0.5, %v2929_v17  ;;  %v2930_v23 = vadd.f32 1.0, %v5513_v22  ;;  %v7233_v17 = vld [vmem:[#allocation9 + $0x50] sm:$0xff]  ;;  %v7251_v22 = vld [vmem:[#allocation9 + $0x20] sm:$0xff] }
 0xbb8   :  { %7811 = vst [vmem:[#allocation29_spill] sm:$0xff] %v7251_v22 }
 0xbb9   :  { %v2936_v20 = vmul.f32 %v2934_v19, %v2931_v18  ;;  %v2932_v24 = vmul.f32 0.5, %v2930_v23  ;;  %v7237_v18 = vld [vmem:[#allocation9 + $0x48] sm:$0xff]  ;;  %v7240_v19 = vld [vmem:[#allocation9 + $0x58] sm:$0xff] }
 0xbbb   :  { %v2937_v21 = vadd.f32 %v2936_v20, %v7801_v42  ;;  %v2939_v25 = vsub.f32 1.0, %v2932_v24  ;;  %v2944_v28 = vmul.f32 %v2942_v26, %v2932_v24  ;;  %v7243_v20 = vld [vmem:[#allocation9 + $0x38] sm:$0xff] }
 0xbbd   :  { %5514 = vtanh.f32 %v2937_v21  ;;  %v7247_v21 = vld [vmem:[#allocation9 + $0x30] sm:$0xff] }
 0xbca   :  { %v5515_v27 = vpop.eup %5514 }
 0xbcb   :  { %v2940_v29 = vmul.f32 %v5515_v27, %v2939_v25 }
 0xbcd   :  { %v7114_v30 = vadd.f32 %v2944_v28, %v2940_v29 }
 0xbcf   :  { %v2947_v31 = vrot.slane %v7114_v30, 1 }
 0xbd1   :  { %3014 = vmatmul.mubr.f32.vlgmr.msra.gmra.mxu0 %v2947_v31  ;;  %5127 = vmatmul.mubr.f32.vlgmr.msra.gmra.mxu1 %v2947_v31 }
 0xbd2   :  { %3122 = vmatpush1.msra.mxu0 %v7117_v32  ;;  %5130 = vmatpush3.msra.mxu1 %v7120_v33 }
 0xbd3   :  { %3123 = vmatprep.subr.mxu0 %v7123_v37  ;;  %5131 = vmatprep.subr.mxu1 %v7732_v46 }
 0xbd4   :  { %3124 = vmatpush1.msra.mxu0 %v7127_v34  ;;  %5132 = vmatpush3.msra.mxu1 %v7130_v40 }
 0xbd5   :  { %3125 = vmatprep.subr.mxu0 %v7133_v13  ;;  %5133 = vmatprep.subr.mxu1 %v7732_v46 }
 0xbd6   :  { %3126 = vmatpush1.msra.mxu0 %v7137_v35  ;;  %5134 = vmatpush3.msra.mxu1 %v7140_v10 }
 0xbd7   :  { %3127 = vmatprep.subr.mxu0 %v7143_v12  ;;  %5135 = vmatprep.subr.mxu1 %v7732_v46 }
 0xbd8   :  { %3128 = vmatpush1.msra.mxu0 %v7147_v38  ;;  %5136 = vmatpush3.msra.mxu1 %v7150_v43 }
 0xbd9   :  { %3129 = vmatprep.subr.mxu0 %v7153_v41  ;;  %5137 = vmatprep.subr.mxu1 %v7732_v46 }
 0xbda   :  { %3130 = vmatpush1.msra.mxu0 %v7157_v56  ;;  %5138 = vmatpush3.msra.mxu1 %v7160_v36 }
 0xbdb   :  { %3131 = vmatprep.subr.mxu0 %v7163_v11  ;;  %5139 = vmatprep.subr.mxu1 %v7732_v46 }
 0xbdc   :  { %3132 = vmatpush1.msra.mxu0 %v7167_v9  ;;  %5140 = vmatpush3.msra.mxu1 %v7170_v16 }
 0xbdd   :  { %3133 = vmatprep.subr.mxu0 %v7173_v48  ;;  %5141 = vmatprep.subr.mxu1 %v7732_v46 }
 0xbde   :  { %3134 = vmatpush1.msra.mxu0 %v7177_v5  ;;  %5142 = vmatpush3.msra.mxu1 %v7180_v8 }
 0xbdf   :  { %3135 = vmatprep.subr.mxu0 %v7183_v44  ;;  %5143 = vmatprep.subr.mxu1 %v7732_v46 }
 0xbe0   :  { %3136 = vmatpush1.msra.mxu0 %v7187_v58  ;;  %5144 = vmatpush3.msra.mxu1 %v7190_v60 }
 0xbe1   :  { %3137 = vmatprep.subr.mxu0 %v7193_v59  ;;  %5145 = vmatprep.subr.mxu1 %v7732_v46 }
 0xbe2   :  { %3138 = vmatpush1.msra.mxu0 %v7197_v63  ;;  %5146 = vmatpush3.msra.mxu1 %v7200_v7 }
 0xbe3   :  { %3139 = vmatprep.subr.mxu0 %v7203_v3  ;;  %5147 = vmatprep.subr.mxu1 %v7732_v46 }
 0xbe4   :  { %3140 = vmatpush1.msra.mxu0 %v7207_v55  ;;  %5148 = vmatpush3.msra.mxu1 %v7210_v52 }
 0xbe5   :  { %3141 = vmatprep.subr.mxu0 %v7213_v2  ;;  %5149 = vmatprep.subr.mxu1 %v7732_v46 }
 0xbe6   :  { %3142 = vmatpush1.msra.mxu0 %v7217_v54  ;;  %5150 = vmatpush3.msra.mxu1 %v7220_v4 }
 0xbe7   :  { %3143 = vmatprep.subr.mxu0 %v7223_v6  ;;  %5151 = vmatprep.subr.mxu1 %v7732_v46 }
 0xbe8   :  { %3144 = vmatpush1.msra.mxu0 %v7227_v14  ;;  %5152 = vmatpush3.msra.mxu1 %v7230_v15 }
 0xbe9   :  { %3145 = vmatprep.subr.mxu0 %v7233_v17  ;;  %5153 = vmatprep.subr.mxu1 %v7732_v46 }
 0xbea   :  { %3146 = vmatpush1.msra.mxu0 %v7237_v18  ;;  %5154 = vmatpush3.msra.mxu1 %v7240_v19 }
 0xbeb   :  { %3147 = vmatprep.subr.mxu0 %v7243_v20  ;;  %5155 = vmatprep.subr.mxu1 %v7732_v46 }
 0xbec   :  { %3148 = vmatpush1.msra.mxu0 %v7247_v21  ;;  %5156 = vmatpush3.msra.mxu1 %v7788_v51 }
 0xbed   :  { %3149 = vmatprep.subr.mxu0 %v7251_v22  ;;  %5157 = vmatprep.subr.mxu1 %v7732_v46 }
 0xbee   :  { %3150 = vmatpush1.msra.mxu0 %v7803_v45  ;;  %5158 = vmatpush3.msra.mxu1 %v7804_v1 }
 0xbef   :  { %3151 = vmatprep.subr.mxu0 %v7805_v53  ;;  %5159 = vmatprep.subr.mxu1 %v7732_v46 }
 0xbf0   :  { %3152 = vmatpush1.msra.mxu0 %v7806_v47  ;;  %3185 = vmatprep.mubr.f32.mxu0 %v7732_v46 }
 0xbf1   :  { %5160 = vmatpush3.msra.mxu1 %v7807_v50  ;;  %5161 = vmatprep.mubr.msk.f32.mxu1 %vm5791_vm0, %v7732_v46 }
 0xbf2   :  { %3293 = vmatprep.subr.mxu0 %v7103_v49  ;;  %5164 = vmatprep.subr.mxu1 %v7732_v46 }
 0xc91   :  { %v3015_v51 = vpop.f32.mrf.mxu0  ;;  %v3086_v45 = vpop.f32.mrf.mxu1 }
 0xc92   :  { %v3016_v1 = vadd.f32 %v3015_v51, %v7809_v61  ;;  %v3087_v29 = vadd.f32 %v3086_v45, %v6307_v0 }
 0xc93   :  { %v3017_v53 = vpop.f32.mrf.mxu0  ;;  %v5128_v23 = vpop.f32.mrf.mxu1 }
 0xc94   :  { %v3092_v24 = vrot.slane %v3016_v1, 6  ;;  %v3018_v47 = vadd.f32 %v3017_v53, %v6299_v57  ;;  %v3107_v51 = vrot.slane %v3087_v29, 6  ;;  %v7340_v29 = vld [vmem:[#allocation9 + $0x8] sm:$0xff] }
 0xc95   :  { %7816 = vst [vmem:[#allocation20_spill] sm:$0xff] %v7340_v29 }
 0xc96   :  { %v3096_v25 = vadd.f32 %v3092_v24, %v7810_v62  ;;  %v3093_v50 = vrot.slane %v3018_v47, 6  ;;  %v3114_v47 = vrot.slane %v7114_v30, 7  ;;  %v7334_v30 = vld [vmem:[#allocation9 + $0x18] sm:$0xff] }
 0xc97   :  { %7814 = vst [vmem:[#allocation28_spill] sm:$0xff] %v7334_v30 }
 0xc98   :  { %v3098_v26 = vmul.f32 0.5, %v3096_v25  ;;  %v3097_v27 = vadd.f32 %v3093_v50, %v7800_v39 }
 0xc9a   :  { %5516 = vtanh.f32 %v3098_v26  ;;  %v3099_v28 = vmul.f32 0.5, %v3097_v27 }
 0xc9c   :  { %5518 = vtanh.f32 %v3099_v28 }
 0xca7   :  { %v5517_v31 = vpop.eup %5516 }
 0xca8   :  { %v3102_v49 = vadd.f32 1.0, %v5517_v31  ;;  %v7344_v31 = vld [vmem:[#allocation9] sm:$0xff] }
 0xca9   :  { %v5519_v53 = vpop.eup %5518  ;;  %7817 = vst [vmem:[#allocation21_spill] sm:$0xff] %v7344_v31 }
 0xcaa   :  { %v3104_v22 = vmul.f32 0.5, %v3102_v49  ;;  %v3103_v23 = vadd.f32 1.0, %v5519_v53  ;;  %v7329_v49 = vld [vmem:[#allocation9 + $0x40] sm:$0xff] }
 0xcab   :  { %7812 = vst [vmem:[#allocation26_spill] sm:$0xff] %v7329_v49 }
 0xcac   :  { %v3109_v61 = vmul.f32 %v3107_v51, %v3104_v22  ;;  %v3105_v24 = vmul.f32 0.5, %v3103_v23  ;;  %v7337_v22 = vld [vmem:[#allocation9 + $0x28] sm:$0xff]  ;;  %v7348_v51 = vld [vmem:[#allocation9 + $0x10] sm:$0xff] }
 0xcad   :  { %7815 = vst [vmem:[#allocation27_spill] sm:$0xff] %v7337_v22  ;;  %7818 = vst [vmem:[#allocation23_spill] sm:$0xff] %v7348_v51 }
 0xcae   :  { %v3110_v1 = vadd.f32 %v3109_v61, %v7801_v42  ;;  %v3112_v25 = vsub.f32 1.0, %v3105_v24  ;;  %v3116_v50 = vmul.f32 %v3114_v47, %v3105_v24  ;;  %v7813_v61 = vld [vmem:[#allocation29_spill] sm:$0xff]  ;;  %v7820_v24 = vld [vmem:[#allocation30_spill] sm:$0xff] }
 0xcb0   :  { %5520 = vtanh.f32 %v3110_v1  ;;  %v7819_v1 = vld [vmem:[#allocation18_spill] sm:$0xff] }
 0xcbd   :  { %v5521_v26 = vpop.eup %5520 }
 0xcbe   :  { %v3113_v27 = vmul.f32 %v5521_v26, %v3112_v25 }
 0xcc0   :  { %v7273_v28 = vadd.f32 %v3116_v50, %v3113_v27 }
 0xcc2   :  { %v3119_v45 = vrot.slane %v7273_v28, 2 }
 0xcc4   :  { %3186 = vmatmul.mubr.f32.vlgmr.msra.gmra.mxu0 %v3119_v45  ;;  %5162 = vmatmul.mubr.f32.vlgmr.msra.gmra.mxu1 %v3119_v45 }
 0xcc5   :  { %3294 = vmatpush1.msra.mxu0 %v7117_v32  ;;  %5165 = vmatpush3.msra.mxu1 %v7120_v33 }
 0xcc6   :  { %3295 = vmatprep.subr.mxu0 %v7123_v37  ;;  %5166 = vmatprep.subr.mxu1 %v7732_v46 }
 0xcc7   :  { %3296 = vmatpush1.msra.mxu0 %v7127_v34  ;;  %5167 = vmatpush3.msra.mxu1 %v7130_v40 }
 0xcc8   :  { %3297 = vmatprep.subr.mxu0 %v7133_v13  ;;  %5168 = vmatprep.subr.mxu1 %v7732_v46 }
 0xcc9   :  { %3298 = vmatpush1.msra.mxu0 %v7137_v35  ;;  %5169 = vmatpush3.msra.mxu1 %v7140_v10 }
 0xcca   :  { %3299 = vmatprep.subr.mxu0 %v7143_v12  ;;  %5170 = vmatprep.subr.mxu1 %v7732_v46 }
 0xccb   :  { %3300 = vmatpush1.msra.mxu0 %v7147_v38  ;;  %5171 = vmatpush3.msra.mxu1 %v7150_v43 }
 0xccc   :  { %3301 = vmatprep.subr.mxu0 %v7153_v41  ;;  %5172 = vmatprep.subr.mxu1 %v7732_v46 }
 0xccd   :  { %3302 = vmatpush1.msra.mxu0 %v7157_v56  ;;  %5173 = vmatpush3.msra.mxu1 %v7160_v36 }
 0xcce   :  { %3303 = vmatprep.subr.mxu0 %v7163_v11  ;;  %5174 = vmatprep.subr.mxu1 %v7732_v46 }
 0xccf   :  { %3304 = vmatpush1.msra.mxu0 %v7167_v9  ;;  %5175 = vmatpush3.msra.mxu1 %v7170_v16 }
 0xcd0   :  { %3305 = vmatprep.subr.mxu0 %v7173_v48  ;;  %5176 = vmatprep.subr.mxu1 %v7732_v46 }
 0xcd1   :  { %3306 = vmatpush1.msra.mxu0 %v7177_v5  ;;  %5177 = vmatpush3.msra.mxu1 %v7180_v8 }
 0xcd2   :  { %3307 = vmatprep.subr.mxu0 %v7183_v44  ;;  %5178 = vmatprep.subr.mxu1 %v7732_v46 }
 0xcd3   :  { %3308 = vmatpush1.msra.mxu0 %v7187_v58  ;;  %5179 = vmatpush3.msra.mxu1 %v7190_v60 }
 0xcd4   :  { %3309 = vmatprep.subr.mxu0 %v7193_v59  ;;  %5180 = vmatprep.subr.mxu1 %v7732_v46 }
 0xcd5   :  { %3310 = vmatpush1.msra.mxu0 %v7197_v63  ;;  %5181 = vmatpush3.msra.mxu1 %v7200_v7 }
 0xcd6   :  { %3311 = vmatprep.subr.mxu0 %v7203_v3  ;;  %5182 = vmatprep.subr.mxu1 %v7732_v46 }
 0xcd7   :  { %3312 = vmatpush1.msra.mxu0 %v7207_v55  ;;  %5183 = vmatpush3.msra.mxu1 %v7210_v52 }
 0xcd8   :  { %3313 = vmatprep.subr.mxu0 %v7213_v2  ;;  %5184 = vmatprep.subr.mxu1 %v7732_v46 }
 0xcd9   :  { %3314 = vmatpush1.msra.mxu0 %v7217_v54  ;;  %5185 = vmatpush3.msra.mxu1 %v7220_v4 }
 0xcda   :  { %3315 = vmatprep.subr.mxu0 %v7223_v6  ;;  %5186 = vmatprep.subr.mxu1 %v7732_v46 }
 0xcdb   :  { %3316 = vmatpush1.msra.mxu0 %v7227_v14  ;;  %5187 = vmatpush3.msra.mxu1 %v7230_v15 }
 0xcdc   :  { %3317 = vmatprep.subr.mxu0 %v7233_v17  ;;  %5188 = vmatprep.subr.mxu1 %v7732_v46 }
 0xcdd   :  { %3318 = vmatpush1.msra.mxu0 %v7237_v18  ;;  %5189 = vmatpush3.msra.mxu1 %v7240_v19 }
 0xcde   :  { %3319 = vmatprep.subr.mxu0 %v7243_v20  ;;  %5190 = vmatprep.subr.mxu1 %v7732_v46 }
 0xcdf   :  { %3320 = vmatpush1.msra.mxu0 %v7247_v21  ;;  %5191 = vmatpush3.msra.mxu1 %v7329_v49 }
 0xce0   :  { %3321 = vmatprep.subr.mxu0 %v7813_v61  ;;  %5192 = vmatprep.subr.mxu1 %v7732_v46 }
 0xce1   :  { %3322 = vmatpush1.msra.mxu0 %v7334_v30  ;;  %5193 = vmatpush3.msra.mxu1 %v7337_v22 }
 0xce2   :  { %3323 = vmatprep.subr.mxu0 %v7340_v29  ;;  %5194 = vmatprep.subr.mxu1 %v7732_v46 }
 0xce3   :  { %3324 = vmatpush1.msra.mxu0 %v7344_v31  ;;  %3357 = vmatprep.mubr.f32.mxu0 %v7732_v46 }
 0xce4   :  { %5195 = vmatpush3.msra.mxu1 %v7348_v51  ;;  %5196 = vmatprep.mubr.msk.f32.mxu1 %vm5791_vm0, %v7732_v46 }
 0xce5   :  { %3465 = vmatprep.subr.mxu0 %v7819_v1  ;;  %5199 = vmatprep.subr.mxu1 %v7732_v46 }
 0xd84   :  { %v3187_v53 = vpop.f32.mrf.mxu0  ;;  %v3258_v23 = vpop.f32.mrf.mxu1 }
 0xd85   :  { %v3188_v47 = vadd.f32 %v3187_v53, %v7820_v24  ;;  %v3259_v1 = vadd.f32 %v3258_v23, %v6307_v0 }
 0xd86   :  { %v3189_v25 = vpop.f32.mrf.mxu0  ;;  %v5163_v26 = vpop.f32.mrf.mxu1 }
 0xd87   :  { %v3264_v50 = vrot.slane %v3188_v47, 5  ;;  %v3190_v27 = vadd.f32 %v3189_v25, %v6299_v57  ;;  %v3279_v53 = vrot.slane %v3259_v1, 5  ;;  %v7825_v1 = vld [vmem:[#allocation20_spill] sm:$0xff] }
 0xd89   :  { %v3268_v45 = vadd.f32 %v3264_v50, %v7810_v62  ;;  %v3265_v51 = vrot.slane %v3190_v27, 5  ;;  %v3286_v27 = vrot.slane %v7273_v28, 7  ;;  %v7821_v28 = vld [vmem:[#allocation26_spill] sm:$0xff] }
 0xd8b   :  { %v3270_v31 = vmul.f32 0.5, %v3268_v45  ;;  %v3269_v29 = vadd.f32 %v3265_v51, %v7800_v39 }
 0xd8d   :  { %5522 = vtanh.f32 %v3270_v31  ;;  %v3271_v22 = vmul.f32 0.5, %v3269_v29 }
 0xd8f   :  { %5524 = vtanh.f32 %v3271_v22 }
 0xd9a   :  { %v5523_v30 = vpop.eup %5522 }
 0xd9b   :  { %v3274_v61 = vadd.f32 1.0, %v5523_v30  ;;  %v7824_v30 = vld [vmem:[#allocation27_spill] sm:$0xff] }
 0xd9c   :  { %v5525_v25 = vpop.eup %5524 }
 0xd9d   :  { %v3276_v49 = vmul.f32 0.5, %v3274_v61  ;;  %v3275_v26 = vadd.f32 1.0, %v5525_v25  ;;  %v7823_v61 = vld [vmem:[#allocation28_spill] sm:$0xff] }
 0xd9f   :  { %v3281_v24 = vmul.f32 %v3279_v53, %v3276_v49  ;;  %v3277_v50 = vmul.f32 0.5, %v3275_v26  ;;  %v7822_v49 = vld [vmem:[#allocation29_spill] sm:$0xff]  ;;  %v7827_v53 = vld [vmem:[#allocation23_spill] sm:$0xff] }
 0xda1   :  { %v3282_v47 = vadd.f32 %v3281_v24, %v7801_v42  ;;  %v3284_v31 = vsub.f32 1.0, %v3277_v50  ;;  %v3288_v51 = vmul.f32 %v3286_v27, %v3277_v50  ;;  %v7826_v24 = vld [vmem:[#allocation21_spill] sm:$0xff]  ;;  %v7829_v50 = vld [vmem:[#allocation30_spill] sm:$0xff] }
 0xda3   :  { %5526 = vtanh.f32 %v3282_v47  ;;  %v7828_v47 = vld [vmem:[#allocation18_spill] sm:$0xff] }
 0xdb0   :  { %v5527_v45 = vpop.eup %5526 }
 0xdb1   :  { %v3285_v29 = vmul.f32 %v5527_v45, %v3284_v31 }
 0xdb3   :  { %v7362_v22 = vadd.f32 %v3288_v51, %v3285_v29 }
 0xdb5   :  { %v3291_v23 = vrot.slane %v7362_v22, 3 }
 0xdb7   :  { %3358 = vmatmul.mubr.f32.vlgmr.msra.gmra.mxu0 %v3291_v23  ;;  %5197 = vmatmul.mubr.f32.vlgmr.msra.gmra.mxu1 %v3291_v23 }
 0xdb8   :  { %3466 = vmatpush1.msra.mxu0 %v7117_v32  ;;  %5200 = vmatpush3.msra.mxu1 %v7120_v33 }
 0xdb9   :  { %3467 = vmatprep.subr.mxu0 %v7123_v37  ;;  %5201 = vmatprep.subr.mxu1 %v7732_v46 }
 0xdba   :  { %3468 = vmatpush1.msra.mxu0 %v7127_v34  ;;  %5202 = vmatpush3.msra.mxu1 %v7130_v40 }
 0xdbb   :  { %3469 = vmatprep.subr.mxu0 %v7133_v13  ;;  %5203 = vmatprep.subr.mxu1 %v7732_v46 }
 0xdbc   :  { %3470 = vmatpush1.msra.mxu0 %v7137_v35  ;;  %5204 = vmatpush3.msra.mxu1 %v7140_v10 }
 0xdbd   :  { %3471 = vmatprep.subr.mxu0 %v7143_v12  ;;  %5205 = vmatprep.subr.mxu1 %v7732_v46 }
 0xdbe   :  { %3472 = vmatpush1.msra.mxu0 %v7147_v38  ;;  %5206 = vmatpush3.msra.mxu1 %v7150_v43 }
 0xdbf   :  { %3473 = vmatprep.subr.mxu0 %v7153_v41  ;;  %5207 = vmatprep.subr.mxu1 %v7732_v46 }
 0xdc0   :  { %3474 = vmatpush1.msra.mxu0 %v7157_v56  ;;  %5208 = vmatpush3.msra.mxu1 %v7160_v36 }
 0xdc1   :  { %3475 = vmatprep.subr.mxu0 %v7163_v11  ;;  %5209 = vmatprep.subr.mxu1 %v7732_v46 }
 0xdc2   :  { %3476 = vmatpush1.msra.mxu0 %v7167_v9  ;;  %5210 = vmatpush3.msra.mxu1 %v7170_v16 }
 0xdc3   :  { %3477 = vmatprep.subr.mxu0 %v7173_v48  ;;  %5211 = vmatprep.subr.mxu1 %v7732_v46 }
 0xdc4   :  { %3478 = vmatpush1.msra.mxu0 %v7177_v5  ;;  %5212 = vmatpush3.msra.mxu1 %v7180_v8 }
 0xdc5   :  { %3479 = vmatprep.subr.mxu0 %v7183_v44  ;;  %5213 = vmatprep.subr.mxu1 %v7732_v46 }
 0xdc6   :  { %3480 = vmatpush1.msra.mxu0 %v7187_v58  ;;  %5214 = vmatpush3.msra.mxu1 %v7190_v60 }
 0xdc7   :  { %3481 = vmatprep.subr.mxu0 %v7193_v59  ;;  %5215 = vmatprep.subr.mxu1 %v7732_v46 }
 0xdc8   :  { %3482 = vmatpush1.msra.mxu0 %v7197_v63  ;;  %5216 = vmatpush3.msra.mxu1 %v7200_v7 }
 0xdc9   :  { %3483 = vmatprep.subr.mxu0 %v7203_v3  ;;  %5217 = vmatprep.subr.mxu1 %v7732_v46 }
 0xdca   :  { %3484 = vmatpush1.msra.mxu0 %v7207_v55  ;;  %5218 = vmatpush3.msra.mxu1 %v7210_v52 }
 0xdcb   :  { %3485 = vmatprep.subr.mxu0 %v7213_v2  ;;  %5219 = vmatprep.subr.mxu1 %v7732_v46 }
 0xdcc   :  { %3486 = vmatpush1.msra.mxu0 %v7217_v54  ;;  %5220 = vmatpush3.msra.mxu1 %v7220_v4 }
 0xdcd   :  { %3487 = vmatprep.subr.mxu0 %v7223_v6  ;;  %5221 = vmatprep.subr.mxu1 %v7732_v46 }
 0xdce   :  { %3488 = vmatpush1.msra.mxu0 %v7227_v14  ;;  %5222 = vmatpush3.msra.mxu1 %v7230_v15 }
 0xdcf   :  { %3489 = vmatprep.subr.mxu0 %v7233_v17  ;;  %5223 = vmatprep.subr.mxu1 %v7732_v46 }
 0xdd0   :  { %3490 = vmatpush1.msra.mxu0 %v7237_v18  ;;  %5224 = vmatpush3.msra.mxu1 %v7240_v19 }
 0xdd1   :  { %3491 = vmatprep.subr.mxu0 %v7243_v20  ;;  %5225 = vmatprep.subr.mxu1 %v7732_v46 }
 0xdd2   :  { %3492 = vmatpush1.msra.mxu0 %v7247_v21  ;;  %5226 = vmatpush3.msra.mxu1 %v7821_v28 }
 0xdd3   :  { %3493 = vmatprep.subr.mxu0 %v7822_v49  ;;  %5227 = vmatprep.subr.mxu1 %v7732_v46 }
 0xdd4   :  { %3494 = vmatpush1.msra.mxu0 %v7823_v61  ;;  %5228 = vmatpush3.msra.mxu1 %v7824_v30 }
 0xdd5   :  { %3495 = vmatprep.subr.mxu0 %v7825_v1  ;;  %5229 = vmatprep.subr.mxu1 %v7732_v46 }
 0xdd6   :  { %3496 = vmatpush1.msra.mxu0 %v7826_v24  ;;  %3529 = vmatprep.mubr.f32.mxu0 %v7732_v46 }
 0xdd7   :  { %5230 = vmatpush3.msra.mxu1 %v7827_v53  ;;  %5231 = vmatprep.mubr.msk.f32.mxu1 %vm5791_vm0, %v7732_v46 }
 0xdd8   :  { %3637 = vmatprep.subr.mxu0 %v7828_v47  ;;  %5234 = vmatprep.subr.mxu1 %v7732_v46 }
 0xe77   :  { %v3359_v25 = vpop.f32.mrf.mxu0  ;;  %v3430_v26 = vpop.f32.mrf.mxu1 }
 0xe78   :  { %v3360_v27 = vadd.f32 %v3359_v25, %v7829_v50  ;;  %v3431_v47 = vadd.f32 %v3430_v26, %v6307_v0 }
 0xe79   :  { %v3361_v31 = vpop.f32.mrf.mxu0  ;;  %v5198_v45 = vpop.f32.mrf.mxu1 }
 0xe7a   :  { %v3436_v51 = vrot.slane %v3360_v27, 4  ;;  %v3362_v29 = vadd.f32 %v3361_v31, %v6299_v57  ;;  %v3451_v25 = vrot.slane %v3431_v47, 4  ;;  %v7834_v47 = vld [vmem:[#allocation20_spill] sm:$0xff] }
 0xe7c   :  { %v3440_v23 = vadd.f32 %v3436_v51, %v7810_v62  ;;  %v3437_v53 = vrot.slane %v3362_v29, 4  ;;  %v3458_v29 = vrot.slane %v7362_v22, 7  ;;  %v7830_v22 = vld [vmem:[#allocation26_spill] sm:$0xff] }
 0xe7e   :  { %v3442_v24 = vmul.f32 0.5, %v3440_v23  ;;  %v3441_v1 = vadd.f32 %v3437_v53, %v7800_v39 }
 0xe80   :  { %5528 = vtanh.f32 %v3442_v24  ;;  %v3443_v30 = vmul.f32 0.5, %v3441_v1 }
 0xe82   :  { %5530 = vtanh.f32 %v3443_v30 }
 0xe8d   :  { %v5529_v61 = vpop.eup %5528 }
 0xe8e   :  { %v3446_v49 = vadd.f32 1.0, %v5529_v61  ;;  %v7833_v61 = vld [vmem:[#allocation27_spill] sm:$0xff] }
 0xe8f   :  { %v5531_v31 = vpop.eup %5530 }
 0xe90   :  { %v3448_v28 = vmul.f32 0.5, %v3446_v49  ;;  %v3447_v45 = vadd.f32 1.0, %v5531_v31  ;;  %v7832_v49 = vld [vmem:[#allocation28_spill] sm:$0xff] }
 0xe92   :  { %v3453_v50 = vmul.f32 %v3451_v25, %v3448_v28  ;;  %v3449_v51 = vmul.f32 0.5, %v3447_v45  ;;  %v7831_v28 = vld [vmem:[#allocation29_spill] sm:$0xff]  ;;  %v7836_v25 = vld [vmem:[#allocation23_spill] sm:$0xff] }
 0xe94   :  { %v3454_v27 = vadd.f32 %v3453_v50, %v7801_v42  ;;  %v3456_v24 = vsub.f32 1.0, %v3449_v51  ;;  %v3460_v53 = vmul.f32 %v3458_v29, %v3449_v51  ;;  %v7835_v50 = vld [vmem:[#allocation21_spill] sm:$0xff]  ;;  %v7838_v51 = vld [vmem:[#allocation30_spill] sm:$0xff] }
 0xe96   :  { %5532 = vtanh.f32 %v3454_v27  ;;  %v7837_v27 = vld [vmem:[#allocation18_spill] sm:$0xff] }
 0xea3   :  { %v5533_v23 = vpop.eup %5532 }
 0xea4   :  { %v3457_v1 = vmul.f32 %v5533_v23, %v3456_v24 }
 0xea6   :  { %v7439_v30 = vadd.f32 %v3460_v53, %v3457_v1 }
 0xea8   :  { %v3463_v26 = vrot.slane %v7439_v30, 4 }
 0xeaa   :  { %3530 = vmatmul.mubr.f32.vlgmr.msra.gmra.mxu0 %v3463_v26  ;;  %5232 = vmatmul.mubr.f32.vlgmr.msra.gmra.mxu1 %v3463_v26 }
 0xeab   :  { %3638 = vmatpush1.msra.mxu0 %v7117_v32  ;;  %5235 = vmatpush3.msra.mxu1 %v7120_v33 }
 0xeac   :  { %3639 = vmatprep.subr.mxu0 %v7123_v37  ;;  %5236 = vmatprep.subr.mxu1 %v7732_v46 }
 0xead   :  { %3640 = vmatpush1.msra.mxu0 %v7127_v34  ;;  %5237 = vmatpush3.msra.mxu1 %v7130_v40 }
 0xeae   :  { %3641 = vmatprep.subr.mxu0 %v7133_v13  ;;  %5238 = vmatprep.subr.mxu1 %v7732_v46 }
 0xeaf   :  { %3642 = vmatpush1.msra.mxu0 %v7137_v35  ;;  %5239 = vmatpush3.msra.mxu1 %v7140_v10 }
 0xeb0   :  { %3643 = vmatprep.subr.mxu0 %v7143_v12  ;;  %5240 = vmatprep.subr.mxu1 %v7732_v46 }
 0xeb1   :  { %3644 = vmatpush1.msra.mxu0 %v7147_v38  ;;  %5241 = vmatpush3.msra.mxu1 %v7150_v43 }
 0xeb2   :  { %3645 = vmatprep.subr.mxu0 %v7153_v41  ;;  %5242 = vmatprep.subr.mxu1 %v7732_v46 }
 0xeb3   :  { %3646 = vmatpush1.msra.mxu0 %v7157_v56  ;;  %5243 = vmatpush3.msra.mxu1 %v7160_v36 }
 0xeb4   :  { %3647 = vmatprep.subr.mxu0 %v7163_v11  ;;  %5244 = vmatprep.subr.mxu1 %v7732_v46 }
 0xeb5   :  { %3648 = vmatpush1.msra.mxu0 %v7167_v9  ;;  %5245 = vmatpush3.msra.mxu1 %v7170_v16 }
 0xeb6   :  { %3649 = vmatprep.subr.mxu0 %v7173_v48  ;;  %5246 = vmatprep.subr.mxu1 %v7732_v46 }
 0xeb7   :  { %3650 = vmatpush1.msra.mxu0 %v7177_v5  ;;  %5247 = vmatpush3.msra.mxu1 %v7180_v8 }
 0xeb8   :  { %3651 = vmatprep.subr.mxu0 %v7183_v44  ;;  %5248 = vmatprep.subr.mxu1 %v7732_v46 }
 0xeb9   :  { %3652 = vmatpush1.msra.mxu0 %v7187_v58  ;;  %5249 = vmatpush3.msra.mxu1 %v7190_v60 }
 0xeba   :  { %3653 = vmatprep.subr.mxu0 %v7193_v59  ;;  %5250 = vmatprep.subr.mxu1 %v7732_v46 }
 0xebb   :  { %3654 = vmatpush1.msra.mxu0 %v7197_v63  ;;  %5251 = vmatpush3.msra.mxu1 %v7200_v7 }
 0xebc   :  { %3655 = vmatprep.subr.mxu0 %v7203_v3  ;;  %5252 = vmatprep.subr.mxu1 %v7732_v46 }
 0xebd   :  { %3656 = vmatpush1.msra.mxu0 %v7207_v55  ;;  %5253 = vmatpush3.msra.mxu1 %v7210_v52 }
 0xebe   :  { %3657 = vmatprep.subr.mxu0 %v7213_v2  ;;  %5254 = vmatprep.subr.mxu1 %v7732_v46 }
 0xebf   :  { %3658 = vmatpush1.msra.mxu0 %v7217_v54  ;;  %5255 = vmatpush3.msra.mxu1 %v7220_v4 }
 0xec0   :  { %3659 = vmatprep.subr.mxu0 %v7223_v6  ;;  %5256 = vmatprep.subr.mxu1 %v7732_v46 }
 0xec1   :  { %3660 = vmatpush1.msra.mxu0 %v7227_v14  ;;  %5257 = vmatpush3.msra.mxu1 %v7230_v15 }
 0xec2   :  { %3661 = vmatprep.subr.mxu0 %v7233_v17  ;;  %5258 = vmatprep.subr.mxu1 %v7732_v46 }
 0xec3   :  { %3662 = vmatpush1.msra.mxu0 %v7237_v18  ;;  %5259 = vmatpush3.msra.mxu1 %v7240_v19 }
 0xec4   :  { %3663 = vmatprep.subr.mxu0 %v7243_v20  ;;  %5260 = vmatprep.subr.mxu1 %v7732_v46 }
 0xec5   :  { %3664 = vmatpush1.msra.mxu0 %v7247_v21  ;;  %5261 = vmatpush3.msra.mxu1 %v7830_v22 }
 0xec6   :  { %3665 = vmatprep.subr.mxu0 %v7831_v28  ;;  %5262 = vmatprep.subr.mxu1 %v7732_v46 }
 0xec7   :  { %3666 = vmatpush1.msra.mxu0 %v7832_v49  ;;  %5263 = vmatpush3.msra.mxu1 %v7833_v61 }
 0xec8   :  { %3667 = vmatprep.subr.mxu0 %v7834_v47  ;;  %5264 = vmatprep.subr.mxu1 %v7732_v46 }
 0xec9   :  { %3668 = vmatpush1.msra.mxu0 %v7835_v50  ;;  %3701 = vmatprep.mubr.f32.mxu0 %v7732_v46 }
 0xeca   :  { %5265 = vmatpush3.msra.mxu1 %v7836_v25  ;;  %5266 = vmatprep.mubr.msk.f32.mxu1 %vm5791_vm0, %v7732_v46 }
 0xecb   :  { %3809 = vmatprep.subr.mxu0 %v7837_v27  ;;  %5269 = vmatprep.subr.mxu1 %v7732_v46 }
 0xf6a   :  { %v3531_v31 = vpop.f32.mrf.mxu0  ;;  %v3602_v45 = vpop.f32.mrf.mxu1 }
 0xf6b   :  { %v3532_v29 = vadd.f32 %v3531_v31, %v7838_v51  ;;  %v3603_v27 = vadd.f32 %v3602_v45, %v6307_v0 }
 0xf6c   :  { %v3533_v24 = vpop.f32.mrf.mxu0  ;;  %v5233_v23 = vpop.f32.mrf.mxu1 }
 0xf6d   :  { %v3608_v53 = vrot.slane %v3532_v29, 3  ;;  %v3534_v1 = vadd.f32 %v3533_v24, %v6299_v57  ;;  %v3623_v31 = vrot.slane %v3603_v27, 3  ;;  %v3985_v27 = vld [vmem:[#allocation10 + $0x38] sm:$0xff] }
 0xf6f   :  { %v3612_v26 = vadd.f32 %v3608_v53, %v7810_v62  ;;  %v3609_v25 = vrot.slane %v3534_v1, 3  ;;  %v3630_v1 = vrot.slane %v7439_v30, 7  ;;  %v3990_v30 = vld [vmem:[#allocation10 + $0x60] sm:$0xff] }
 0xf71   :  { %v3614_v50 = vmul.f32 0.5, %v3612_v26  ;;  %v3613_v47 = vadd.f32 %v3609_v25, %v7800_v39 }
 0xf73   :  { %5534 = vtanh.f32 %v3614_v50  ;;  %v3615_v61 = vmul.f32 0.5, %v3613_v47 }
 0xf75   :  { %5536 = vtanh.f32 %v3615_v61 }
 0xf80   :  { %v5535_v49 = vpop.eup %5534 }
 0xf81   :  { %v3618_v28 = vadd.f32 1.0, %v5535_v49  ;;  %v3987_v49 = vld [vmem:[#allocation10 + $0x48] sm:$0xff] }
 0xf82   :  { %v5537_v24 = vpop.eup %5536 }
 0xf83   :  { %v3620_v22 = vmul.f32 0.5, %v3618_v28  ;;  %v3619_v23 = vadd.f32 1.0, %v5537_v24  ;;  %v3988_v28 = vld [vmem:[#allocation10 + $0x50] sm:$0xff]  ;;  %v3982_v24 = vld [vmem:[#allocation10 + $0x20] sm:$0xff] }
 0xf85   :  { %v3625_v51 = vmul.f32 %v3623_v31, %v3620_v22  ;;  %v3621_v53 = vmul.f32 0.5, %v3619_v23  ;;  %v3989_v22 = vld [vmem:[#allocation10 + $0x58] sm:$0xff]  ;;  %v3984_v31 = vld [vmem:[#allocation10 + $0x30] sm:$0xff] }
 0xf86   :  { %v3981_v23 = vld [vmem:[#allocation10 + $0x18] sm:$0xff] }
 0xf87   :  { %v3626_v29 = vadd.f32 %v3625_v51, %v7801_v42  ;;  %v3628_v50 = vsub.f32 1.0, %v3621_v53  ;;  %v3632_v25 = vmul.f32 %v3630_v1, %v3621_v53  ;;  %v3986_v51 = vld [vmem:[#allocation10 + $0x40] sm:$0xff]  ;;  %v3980_v53 = vld [vmem:[#allocation10 + $0x10] sm:$0xff]  ;;  %v3979_v1 = vld [vmem:[#allocation10 + $0x8] sm:$0xff] }
 0xf89   :  { %5538 = vtanh.f32 %v3626_v29  ;;  %v3983_v29 = vld [vmem:[#allocation10 + $0x28] sm:$0xff] }
 0xf96   :  { %v5539_v26 = vpop.eup %5538 }
 0xf97   :  { %v3629_v47 = vmul.f32 %v5539_v26, %v3628_v50  ;;  %v3978_v50 = vld [vmem:[#allocation10] sm:$0xff]  ;;  %v4083_v26 = vld [vmem:[#allocation12 + $0x78] sm:$0xff] }
 0xf99   :  { %v7516_v61 = vadd.f32 %v3632_v25, %v3629_v47  ;;  %v4082_v25 = vld [vmem:[#allocation12 + $0x70] sm:$0xff]  ;;  %v4081_v47 = vld [vmem:[#allocation12 + $0x68] sm:$0xff] }
 0xf9b   :  { %v3635_v45 = vrot.slane %v7516_v61, 5 }
 0xf9d   :  { %3702 = vmatmul.mubr.f32.vlgmr.msra.gmra.mxu0 %v3635_v45  ;;  %5267 = vmatmul.mubr.f32.vlgmr.msra.gmra.mxu1 %v3635_v45  ;;  %v4079_v45 = vld [vmem:[#allocation12 + $0x58] sm:$0xff] }
 0xf9e   :  { %3810 = vmatpush1.msra.mxu0 %v7117_v32  ;;  %5270 = vmatpush3.msra.mxu1 %v7120_v33  ;;  %v7839_v32 = vld [vmem:[#allocation26_spill] sm:$0xff]  ;;  %v7840_v33 = vld [vmem:[#allocation29_spill] sm:$0xff] }
 0xf9f   :  { %3811 = vmatprep.subr.mxu0 %v7123_v37  ;;  %5271 = vmatprep.subr.mxu1 %v7732_v46  ;;  %v7841_v37 = vld [vmem:[#allocation28_spill] sm:$0xff] }
 0xfa0   :  { %3812 = vmatpush1.msra.mxu0 %v7127_v34  ;;  %5272 = vmatpush3.msra.mxu1 %v7130_v40  ;;  %v7842_v34 = vld [vmem:[#allocation27_spill] sm:$0xff]  ;;  %v7843_v40 = vld [vmem:[#allocation20_spill] sm:$0xff] }
 0xfa1   :  { %3813 = vmatprep.subr.mxu0 %v7133_v13  ;;  %5273 = vmatprep.subr.mxu1 %v7732_v46  ;;  %v7844_v13 = vld [vmem:[#allocation21_spill] sm:$0xff] }
 0xfa2   :  { %3814 = vmatpush1.msra.mxu0 %v7137_v35  ;;  %5274 = vmatpush3.msra.mxu1 %v7140_v10  ;;  %v7845_v35 = vld [vmem:[#allocation23_spill] sm:$0xff] }
 0xfa3   :  { %3815 = vmatprep.subr.mxu0 %v7143_v12  ;;  %5275 = vmatprep.subr.mxu1 %v7732_v46 }
 0xfa4   :  { %3816 = vmatpush1.msra.mxu0 %v7147_v38  ;;  %5276 = vmatpush3.msra.mxu1 %v7150_v43  ;;  %v7846_v38 = vld [vmem:[#allocation30_spill] sm:$0xff] }
 0xfa5   :  { %3817 = vmatprep.subr.mxu0 %v7153_v41  ;;  %5277 = vmatprep.subr.mxu1 %v7732_v46 }
 0xfa6   :  { %3818 = vmatpush1.msra.mxu0 %v7157_v56  ;;  %5278 = vmatpush3.msra.mxu1 %v7160_v36 }
 0xfa7   :  { %3819 = vmatprep.subr.mxu0 %v7163_v11  ;;  %5279 = vmatprep.subr.mxu1 %v7732_v46 }
 0xfa8   :  { %3820 = vmatpush1.msra.mxu0 %v7167_v9  ;;  %5280 = vmatpush3.msra.mxu1 %v7170_v16 }
 0xfa9   :  { %3821 = vmatprep.subr.mxu0 %v7173_v48  ;;  %5281 = vmatprep.subr.mxu1 %v7732_v46 }
 0xfaa   :  { %3822 = vmatpush1.msra.mxu0 %v7177_v5  ;;  %5282 = vmatpush3.msra.mxu1 %v7180_v8 }
 0xfab   :  { %3823 = vmatprep.subr.mxu0 %v7183_v44  ;;  %5283 = vmatprep.subr.mxu1 %v7732_v46 }
 0xfac   :  { %3824 = vmatpush1.msra.mxu0 %v7187_v58  ;;  %5284 = vmatpush3.msra.mxu1 %v7190_v60 }
 0xfad   :  { %3825 = vmatprep.subr.mxu0 %v7193_v59  ;;  %5285 = vmatprep.subr.mxu1 %v7732_v46 }
 0xfae   :  { %3826 = vmatpush1.msra.mxu0 %v7197_v63  ;;  %5286 = vmatpush3.msra.mxu1 %v7200_v7 }
 0xfaf   :  { %3827 = vmatprep.subr.mxu0 %v7203_v3  ;;  %5287 = vmatprep.subr.mxu1 %v7732_v46 }
 0xfb0   :  { %3828 = vmatpush1.msra.mxu0 %v7207_v55  ;;  %5288 = vmatpush3.msra.mxu1 %v7210_v52 }
 0xfb1   :  { %3829 = vmatprep.subr.mxu0 %v7213_v2  ;;  %5289 = vmatprep.subr.mxu1 %v7732_v46 }
 0xfb2   :  { %3830 = vmatpush1.msra.mxu0 %v7217_v54  ;;  %5290 = vmatpush3.msra.mxu1 %v7220_v4  ;;  %v3802_v54 = vrot.slane %v7516_v61, 7  ;;  %v4080_v61 = vld [vmem:[#allocation12 + $0x60] sm:$0xff] }
 0xfb3   :  { %3831 = vmatprep.subr.mxu0 %v7223_v6  ;;  %5291 = vmatprep.subr.mxu1 %v7732_v46 }
 0xfb4   :  { %3832 = vmatpush1.msra.mxu0 %v7227_v14  ;;  %5292 = vmatpush3.msra.mxu1 %v7230_v15 }
 0xfb5   :  { %3833 = vmatprep.subr.mxu0 %v7233_v17  ;;  %5293 = vmatprep.subr.mxu1 %v7732_v46 }
 0xfb6   :  { %3834 = vmatpush1.msra.mxu0 %v7237_v18  ;;  %5294 = vmatpush3.msra.mxu1 %v7240_v19  ;;  %v3993_v19 = vld [vmem:[#allocation10 + $0x78] sm:$0xff] }
 0xfb7   :  { %3835 = vmatprep.subr.mxu0 %v7243_v20  ;;  %5295 = vmatprep.subr.mxu1 %v7732_v46  ;;  %v3992_v20 = vld [vmem:[#allocation10 + $0x70] sm:$0xff] }
 0xfb8   :  { %3836 = vmatpush1.msra.mxu0 %v7247_v21  ;;  %5296 = vmatpush3.msra.mxu1 %v7839_v32  ;;  %v3991_v21 = vld [vmem:[#allocation10 + $0x68] sm:$0xff]  ;;  %v4078_v32 = vld [vmem:[#allocation12 + $0x50] sm:$0xff] }
 0xfb9   :  { %3837 = vmatprep.subr.mxu0 %v7840_v33  ;;  %5297 = vmatprep.subr.mxu1 %v7732_v46  ;;  %v4077_v33 = vld [vmem:[#allocation12 + $0x48] sm:$0xff] }
 0xfba   :  { %3838 = vmatpush1.msra.mxu0 %v7841_v37  ;;  %5298 = vmatpush3.msra.mxu1 %v7842_v34  ;;  %v4076_v37 = vld [vmem:[#allocation12 + $0x40] sm:$0xff]  ;;  %v4075_v34 = vld [vmem:[#allocation12 + $0x38] sm:$0xff] }
 0xfbb   :  { %3839 = vmatprep.subr.mxu0 %v7843_v40  ;;  %5299 = vmatprep.subr.mxu1 %v7732_v46  ;;  %v4074_v40 = vld [vmem:[#allocation12 + $0x30] sm:$0xff] }
 0xfbc   :  { %3840 = vmatpush1.msra.mxu0 %v7844_v13  ;;  %3873 = vmatprep.mubr.f32.mxu0 %v7732_v46  ;;  %v4073_v13 = vld [vmem:[#allocation12 + $0x28] sm:$0xff] }
 0xfbd   :  { %5300 = vmatpush3.msra.mxu1 %v7845_v35  ;;  %5301 = vmatprep.mubr.msk.f32.mxu1 %vm5791_vm0, %v7732_v46  ;;  %v4072_v35 = vld [vmem:[#allocation12 + $0x20] sm:$0xff] }
 0xfbe   :  { %5304 = vmatprep.subr.mxu0 %v7732_v46  ;;  %5339 = vmatprep.subr.mxu1 %v7732_v46 }
0x105d   :  { %v3703_v10 = vpop.f32.mrf.mxu0  ;;  %v3774_v12 = vpop.f32.mrf.mxu1 }
0x105e   :  { %v3704_v43 = vadd.f32 %v3703_v10, %v7846_v38  ;;  %v3775_v44 = vadd.f32 %v3774_v12, %v6307_v0  ;;  %v4071_v10 = vld [vmem:[#allocation12 + $0x18] sm:$0xff]  ;;  %v4070_v12 = vld [vmem:[#allocation12 + $0x10] sm:$0xff] }
0x105f   :  { %v3705_v41 = vpop.f32.mrf.mxu0  ;;  %v5268_v56 = vpop.f32.mrf.mxu1 }
0x1060   :  { %v3780_v36 = vrot.slane %v3704_v43, 2  ;;  %v3706_v11 = vadd.f32 %v3705_v41, %v6299_v57  ;;  %v3795_v63 = vrot.slane %v3775_v44, 2 }
0x1062   :  { %v3784_v9 = vadd.f32 %v3780_v36, %v7810_v62  ;;  %v3781_v48 = vrot.slane %v3706_v11, 2 }
0x1064   :  { %v3786_v16 = vmul.f32 0.5, %v3784_v9  ;;  %v3785_v5 = vadd.f32 %v3781_v48, %v7800_v39 }
0x1066   :  { %5540 = vtanh.f32 %v3786_v16  ;;  %v3787_v8 = vmul.f32 0.5, %v3785_v5 }
0x1068   :  { %5542 = vtanh.f32 %v3787_v8 }
0x1073   :  { %v5541_v58 = vpop.eup %5540 }
0x1074   :  { %v3790_v60 = vadd.f32 1.0, %v5541_v58 }
0x1075   :  { %v5543_v55 = vpop.eup %5542 }
0x1076   :  { %v3792_v59 = vmul.f32 0.5, %v3790_v60  ;;  %v3791_v52 = vadd.f32 1.0, %v5543_v55 }
0x1078   :  { %v3797_v7 = vmul.f32 %v3795_v63, %v3792_v59  ;;  %v3793_v2 = vmul.f32 0.5, %v3791_v52 }
0x107a   :  { %v3798_v3 = vadd.f32 %v3797_v7, %v7801_v42  ;;  %v3800_v4 = vsub.f32 1.0, %v3793_v2  ;;  %v3804_v14 = vmul.f32 %v3802_v54, %v3793_v2 }
0x107c   :  { %5544 = vtanh.f32 %v3798_v3 }
0x1089   :  { %v5545_v6 = vpop.eup %5544 }
0x108a   :  { %v3801_v15 = vmul.f32 %v5545_v6, %v3800_v4 }
0x108c   :  { %v7593_v17 = vadd.f32 %v3804_v14, %v3801_v15 }
0x108e   :  { %v3807_v18 = vrot.slane %v7593_v17, 6  ;;  %v3974_v2 = vrot.slane %v7593_v17, 7 }
0x1090   :  { %3874 = vmatmul.mubr.f32.vlgmr.msra.gmra.mxu0 %v3807_v18  ;;  %5302 = vmatmul.mubr.f32.vlgmr.msra.gmra.mxu1 %v3807_v18  ;;  %v4068_v18 = vld [vmem:[#allocation12] sm:$0xff] }
0x1091   :  { %5336 = vmatprep.mubr.msk.f32.mxu0 %vm5791_vm0, %v7732_v46  ;;  %5371 = vmatprep.mubr.msk.f32.mxu1 %vm5791_vm0, %v7732_v46 }
0x1092   :  { %5305 = vmatpush3.msra.mxu0 %v3993_v19  ;;  %5340 = vmatpush3.msra.mxu1 %v4083_v26 }
0x1093   :  { %5306 = vmatprep.subr.mxu0 %v7732_v46  ;;  %5341 = vmatprep.subr.mxu1 %v7732_v46 }
0x1094   :  { %5307 = vmatpush3.msra.mxu0 %v3992_v20  ;;  %5342 = vmatpush3.msra.mxu1 %v4082_v25 }
0x1095   :  { %5308 = vmatprep.subr.mxu0 %v7732_v46  ;;  %5343 = vmatprep.subr.mxu1 %v7732_v46 }
0x1096   :  { %5309 = vmatpush3.msra.mxu0 %v3991_v21  ;;  %5344 = vmatpush3.msra.mxu1 %v4081_v47  ;;  %v4084_v21 = vld [vmem:[%s7658_s12] sm:$0x1] }
0x1097   :  { %5310 = vmatprep.subr.mxu0 %v7732_v46  ;;  %5345 = vmatprep.subr.mxu1 %v7732_v46 }
0x1098   :  { %5311 = vmatpush3.msra.mxu0 %v3990_v30  ;;  %5346 = vmatpush3.msra.mxu1 %v4080_v61 }
0x1099   :  { %5312 = vmatprep.subr.mxu0 %v7732_v46  ;;  %5347 = vmatprep.subr.mxu1 %v7732_v46 }
0x109a   :  { %5313 = vmatpush3.msra.mxu0 %v3989_v22  ;;  %5348 = vmatpush3.msra.mxu1 %v4079_v45 }
0x109b   :  { %5314 = vmatprep.subr.mxu0 %v7732_v46  ;;  %5349 = vmatprep.subr.mxu1 %v7732_v46 }
0x109c   :  { %5315 = vmatpush3.msra.mxu0 %v3988_v28  ;;  %5350 = vmatpush3.msra.mxu1 %v4078_v32 }
0x109d   :  { %5316 = vmatprep.subr.mxu0 %v7732_v46  ;;  %5351 = vmatprep.subr.mxu1 %v7732_v46 }
0x109e   :  { %5317 = vmatpush3.msra.mxu0 %v3987_v49  ;;  %5352 = vmatpush3.msra.mxu1 %v4077_v33 }
0x109f   :  { %5318 = vmatprep.subr.mxu0 %v7732_v46  ;;  %5353 = vmatprep.subr.mxu1 %v7732_v46 }
0x10a0   :  { %5319 = vmatpush3.msra.mxu0 %v3986_v51  ;;  %5354 = vmatpush3.msra.mxu1 %v4076_v37 }
0x10a1   :  { %5320 = vmatprep.subr.mxu0 %v7732_v46  ;;  %5355 = vmatprep.subr.mxu1 %v7732_v46 }
0x10a2   :  { %5321 = vmatpush3.msra.mxu0 %v3985_v27  ;;  %5356 = vmatpush3.msra.mxu1 %v4075_v34 }
0x10a3   :  { %5322 = vmatprep.subr.mxu0 %v7732_v46  ;;  %5357 = vmatprep.subr.mxu1 %v7732_v46 }
0x10a4   :  { %5323 = vmatpush3.msra.mxu0 %v3984_v31  ;;  %5358 = vmatpush3.msra.mxu1 %v4074_v40 }
0x10a5   :  { %5324 = vmatprep.subr.mxu0 %v7732_v46  ;;  %5359 = vmatprep.subr.mxu1 %v7732_v46 }
0x10a6   :  { %5325 = vmatpush3.msra.mxu0 %v3983_v29  ;;  %5360 = vmatpush3.msra.mxu1 %v4073_v13 }
0x10a7   :  { %5326 = vmatprep.subr.mxu0 %v7732_v46  ;;  %5361 = vmatprep.subr.mxu1 %v7732_v46 }
0x10a8   :  { %5327 = vmatpush3.msra.mxu0 %v3982_v24  ;;  %5362 = vmatpush3.msra.mxu1 %v4072_v35 }
0x10a9   :  { %5328 = vmatprep.subr.mxu0 %v7732_v46  ;;  %5363 = vmatprep.subr.mxu1 %v7732_v46 }
0x10aa   :  { %5329 = vmatpush3.msra.mxu0 %v3981_v23  ;;  %5364 = vmatpush3.msra.mxu1 %v4071_v10 }
0x10ab   :  { %5330 = vmatprep.subr.mxu0 %v7732_v46  ;;  %5365 = vmatprep.subr.mxu1 %v7732_v46 }
0x10ac   :  { %5331 = vmatpush3.msra.mxu0 %v3980_v53  ;;  %5366 = vmatpush3.msra.mxu1 %v4070_v12 }
0x10ad   :  { %5332 = vmatprep.subr.mxu0 %v7732_v46  ;;  %5367 = vmatprep.subr.mxu1 %v7732_v46 }
0x10ae   :  { %5333 = vmatpush3.msra.mxu0 %v3979_v1 }
0x10af   :  { %5334 = vmatprep.subr.mxu0 %v7732_v46 }
0x10b0   :  { %5335 = vmatpush3.msra.mxu0 %v3978_v50 }
0x1150   :  { %v3875_v43 = vpop.f32.mrf.mxu0  ;;  %v3946_v41 = vpop.f32.mrf.mxu1 }
0x1151   :  { %v3876_v56 = vadd.f32 %v3875_v43, %v7846_v38  ;;  %v3947_v60 = vadd.f32 %v3946_v41, %v6307_v0  ;;  %v4069_v0 = vld [vmem:[#allocation12 + $0x8] sm:$0xff] }
0x1152   :  { %v3877_v36 = vpop.f32.mrf.mxu0  ;;  %v5303_v11 = vpop.f32.mrf.mxu1  ;;  %5368 = vmatpush3.msra.mxu1 %v4069_v0 }
0x1153   :  { %v3952_v9 = vrot.slane %v3876_v56, 1  ;;  %v3878_v16 = vadd.f32 %v3877_v36, %v6299_v57  ;;  %v3967_v38 = vrot.slane %v3947_v60, 1  ;;  %5369 = vmatprep.subr.mxu1 %v7732_v46 }
0x1154   :  { %5370 = vmatpush3.msra.mxu1 %v4068_v18 }
0x1155   :  { %v3956_v48 = vadd.f32 %v3952_v9, %v7810_v62  ;;  %v3953_v8 = vrot.slane %v3878_v16, 1 }
0x1157   :  { %v3958_v5 = vmul.f32 0.5, %v3956_v48  ;;  %v3957_v44 = vadd.f32 %v3953_v8, %v7800_v39 }
0x1159   :  { %5546 = vtanh.f32 %v3958_v5  ;;  %v3959_v58 = vmul.f32 0.5, %v3957_v44 }
0x115b   :  { %5548 = vtanh.f32 %v3959_v58 }
0x1166   :  { %v5547_v59 = vpop.eup %5546 }
0x1167   :  { %v3962_v63 = vadd.f32 1.0, %v5547_v59 }
0x1168   :  { %v5549_v57 = vpop.eup %5548 }
0x1169   :  { %v3964_v7 = vmul.f32 0.5, %v3962_v63  ;;  %v3963_v52 = vadd.f32 1.0, %v5549_v57 }
0x116b   :  { %v3969_v3 = vmul.f32 %v3967_v38, %v3964_v7  ;;  %v3965_v62 = vmul.f32 0.5, %v3963_v52 }
0x116d   :  { %v3970_v55 = vadd.f32 %v3969_v3, %v7801_v42  ;;  %v3972_v54 = vsub.f32 1.0, %v3965_v62  ;;  %v3976_v6 = vmul.f32 %v3974_v2, %v3965_v62  ;;  %v3994_v42 = vld [vmem:[%s7656_s10] sm:$0x1] }
0x116f   :  { %5550 = vtanh.f32 %v3970_v55 }
0x117c   :  { %v5551_v4 = vpop.eup %5550 }
0x117d   :  { %v3973_v39 = vmul.f32 %v5551_v4, %v3972_v54 }
0x117f   :  { %v3977_v14 = vadd.f32 %v3976_v6, %v3973_v39 }
0x1181   :  { %v3996_v15 = vrot.slane %v3977_v14, 7 }
0x1183   :  { %5337 = vmatmul.mubr.f32.vlgmr.msra.gmra.mxu0 %v3996_v15 }
0x1243   :  { %v4064_v19 = vpop.f32.mrf.mxu0 }
0x1244   :  { %v4065_v20 = vadd.f32 %v4064_v19, %v3994_v42 }
0x1245   :  { %v5338_v17 = vpop.f32.mrf.mxu0 }
0x1246   :  { %5372 = vmatmul.mubr.f32.vlgmr.msra.gmra.mxu1 %v4065_v20 }
0x1306   :  { %v4151_v30 = vpop.f32.mrf.mxu1 }
0x1307   :  { %v4152_v22 = vadd.f32 %v4151_v30, %v4084_v21 }
0x1308   :  { %v5373_v46 = vpop.f32.mrf.mxu1 }
0x1309   :  { %4155 = vst [vmem:[#allocation13] sm:$0x1] %v4152_v22 }
0x130a   :  { %5760 = shalt.err (!%p5757_p1)
}
0x130b   :  { %4165 = dma.vmem_to_hbm [thread:$0]  %s4163_s5, 16, %s7659_s13, [#allocation6]  }
0x130c   :  { %5775 = dma.done.wait [#allocation6], 16  }
0x130d   :  { %5776 = vsyncadd [#allocation6], 4294967280 }
0x130e   :  { %4169 = vsyncpa [#allocation5], 1 }
0x130f   :  { %4170 = vsyncpa [#allocation8], 1 }
0x1310   :  { %4171 = vsyncpa [#allocation11], 1 }
0x1311   :  { %4172 = vsyncpa [#allocation6], 1 }

</bundles_post_ra>
